<compile_context>
chip_gen: v6e
topology: v6e:2x2x1
jax: 0.10.0
libtpu: 0.0.40
codegen_flags: <defaults>
</compile_context>

<pallas_src>
import math
from functools import partial

import jax
import jax.numpy as jnp
from jax.experimental import pallas as pl
from jax.experimental.pallas import tpu as pltpu

EPS = 1e-5
LANE = 128          # channel pad width for production-size channel counts
LPAD = 8            # sublane-aligned left-halo offset in the in-kernel padding scratch
ROW_TILE = 512      # matmul M tile (multiple of 8)
EW_ROW_TILE = 1024  # elementwise row tile (large to amortize per-grid-step overhead)


def _round_up(x, m):
    return ((x + m - 1) // m) * m


def _pad_channels(c):
    # Small channel counts (the benchmarked few-shot shapes) stay unpadded: padding
    # 4-32 channels to 128 lanes inflates HBM traffic and MXU work by up to 32x.
    # Production-size channel counts are rounded to the 128-lane width.
    return c if c <= 32 else _round_up(c, LANE)


# ----------------------------- Pallas kernels ------------------------------

def _conv3x3_s1_bn_kernel(x_ref, w_ref, y_ref, sum_ref, sq_ref,
                          xpad_ref, acc_ref, *, h, w, cin):
    """Direct stride-1 3x3 conv (pad=1) on one image; 9 accumulated MXU matmuls.

    x_ref    : (1, H, W, C) bf16 input block (UNPADDED -- halo built in VMEM)
    w_ref    : (9, C, Cout) bf16 weights, tap-major
    y_ref    : (H*W, Cout)  bf16 conv output for this image
    sum_ref  : (8, Cout) f32 per-image BN partial sum (row 0 valid, rows 1..7 zero)
    sq_ref   : (8, Cout) f32 per-image BN partial sum of squares
    xpad_ref : VMEM (H+2, W+2*LPAD, C) bf16 halo scratch
    acc_ref  : VMEM (H*W, Cout) f32 accumulator
    """
    # Zero halo + aligned interior store: no host-side jnp.pad / extra HBM pass.
    # Re-done every grid step so the "parallel" batch axis stays megacore-safe.
    xpad_ref[...] = jnp.zeros_like(xpad_ref)
    xpad_ref[1:h + 1, LPAD:LPAD + w, :] = x_ref[0]

    acc_ref[...] = jnp.zeros_like(acc_ref)
    # TODO(synk): add an H-row grid axis so very large images fit v7x's 64 MiB VMEM.
    for dh in range(3):
        for dw in range(3):
            c0 = LPAD - 1 + dw
            win = xpad_ref[dh:dh + h, c0:c0 + w, :]
            acc_ref[...] += jnp.dot(win.reshape(h * w, cin), w_ref[dh * 3 + dw],
                                    preferred_element_type=jnp.float32)

    acc = acc_ref[...]
    y_ref[...] = acc.astype(y_ref.dtype)
    row0 = jax.lax.broadcasted_iota(jnp.int32, (8, 1), 0) == 0
    sum_ref[...] = jnp.where(row0, jnp.sum(acc, axis=0, keepdims=True), 0.0)
    sq_ref[...] = jnp.where(row0, jnp.sum(acc * acc, axis=0, keepdims=True), 0.0)


def _conv3x3_s2_bn_kernel(xq_ref, w_ref, y_ref, sum_ref, sq_ref, acc_ref,
                          *, ho, wo, cin):
    """Direct stride-2 3x3 conv (pad=1) on one image from its parity decomposition.

    xq_ref : (4, Hq, Wq, C) bf16 -- slab rp*2+cp holds xpad[2r+rp, 2c+cp] (zero-padded),
             so tap (dh, dw) is slab (dh%2, dw%2) sliced at offset (dh//2, dw//2).
    """
    acc_ref[...] = jnp.zeros_like(acc_ref)
    for dh in range(3):
        for dw in range(3):
            slab = xq_ref[(dh % 2) * 2 + (dw % 2)]                    # (Hq, Wq, C)
            win = slab[dh // 2:dh // 2 + ho, dw // 2:dw // 2 + wo, :]
            acc_ref[...] += jnp.dot(win.reshape(ho * wo, cin), w_ref[dh * 3 + dw],
                                    preferred_element_type=jnp.float32)

    acc = acc_ref[...]
    y_ref[...] = acc.astype(y_ref.dtype)
    row0 = jax.lax.broadcasted_iota(jnp.int32, (8, 1), 0) == 0
    sum_ref[...] = jnp.where(row0, jnp.sum(acc, axis=0, keepdims=True), 0.0)
    sq_ref[...] = jnp.where(row0, jnp.sum(acc * acc, axis=0, keepdims=True), 0.0)


def _matmul_bn_kernel(a_ref, b_ref, o_ref, sum_ref, sq_ref, acc_ref, *, m_total):
    """K-tiled matmul (1x1 shortcut conv) with per-M-tile BN partial statistics."""
    i = pl.program_id(0)
    k = pl.program_id(1)
    nk = pl.num_programs(1)

    @pl.when(k == 0)
    def _():
        acc_ref[...] = jnp.zeros_like(acc_ref)

    acc_ref[...] += jnp.dot(a_ref[...], b_ref[...],
                            preferred_element_type=jnp.float32)

    @pl.when(k == nk - 1)
    def _():
        acc = acc_ref[...]
        o_ref[...] = acc.astype(o_ref.dtype)
        tm = acc.shape[0]
        rows = jax.lax.broadcasted_iota(jnp.int32, (tm, 1), 0) + i * tm
        acc_m = jnp.where(rows < m_total, acc, 0.0)       # mask ragged tail rows
        row0 = jax.lax.broadcasted_iota(jnp.int32, (8, 1), 0) == 0
        sum_ref[...] = jnp.where(row0, jnp.sum(acc_m, axis=0, keepdims=True), 0.0)
        sq_ref[...] = jnp.where(row0, jnp.sum(acc_m * acc_m, axis=0, keepdims=True), 0.0)


def _bn_relu_kernel(y_ref, s_ref, b_ref, o_ref):
    y = y_ref[...].astype(jnp.float32)
    o_ref[...] = jnp.maximum(y * s_ref[...] + b_ref[...], 0.0).astype(o_ref.dtype)


def _bn_add_relu_kernel(y_ref, r_ref, sy_ref, by_ref, sr_ref, br_ref, o_ref):
    # 1x1-conv shortcut: both branches get a fused per-channel BN scale/bias.
    y = y_ref[...].astype(jnp.float32)
    r = r_ref[...].astype(jnp.float32)
    out = y * sy_ref[...] + by_ref[...] + r * sr_ref[...] + br_ref[...]
    o_ref[...] = jnp.maximum(out, 0.0).astype(o_ref.dtype)


def _bn_add_relu_identity_kernel(y_ref, r_ref, sy_ref, by_ref, o_ref):
    # identity shortcut: residual added raw (no scale/bias broadcasts).
    y = y_ref[...].astype(jnp.float32)
    r = r_ref[...].astype(jnp.float32)
    o_ref[...] = jnp.maximum(y * sy_ref[...] + by_ref[...] + r, 0.0).astype(o_ref.dtype)


# ----------------------------- Pallas wrappers ------------------------------

def conv3x3_s1_bn_pallas(x_nhwc, w9):
    """Stride-1 pad-1 3x3 conv, BN partial stats fused.  x_nhwc bf16 UNPADDED."""
    N, H, W, C = x_nhwc.shape
    Cout = w9.shape[-1]
    HW = H * W
    y, s, q = pl.pallas_call(
        partial(_conv3x3_s1_bn_kernel, h=H, w=W, cin=C),
        out_shape=(jax.ShapeDtypeStruct((N, HW, Cout), jnp.bfloat16),
                   jax.ShapeDtypeStruct((N, 8, Cout), jnp.float32),
                   jax.ShapeDtypeStruct((N, 8, Cout), jnp.float32)),
        grid=(N,),
        in_specs=[pl.BlockSpec((1, H, W, C), lambda n: (n, 0, 0, 0)),
                  pl.BlockSpec((9, C, Cout), lambda n: (0, 0, 0))],
        out_specs=(pl.BlockSpec((None, HW, Cout), lambda n: (n, 0, 0)),
                   pl.BlockSpec((None, 8, Cout), lambda n: (n, 0, 0)),
                   pl.BlockSpec((None, 8, Cout), lambda n: (n, 0, 0))),
        scratch_shapes=[pltpu.VMEM((H + 2, W + 2 * LPAD, C), jnp.bfloat16),
                        pltpu.VMEM((HW, Cout), jnp.float32)],
        compiler_params=pltpu.CompilerParams(dimension_semantics=("parallel",)),
    )(x_nhwc, w9)
    return y.reshape(N * HW, Cout), s, q


def conv3x3_s2_bn_pallas(xq4, w9, ho, wo):
    """Stride-2 pad-1 3x3 conv from parity slabs (no im2col), BN partial stats fused."""
    N4, Hq, Wq, C = xq4.shape
    N = N4 // 4
    Cout = w9.shape[-1]
    HW = ho * wo
    y, s, q = pl.pallas_call(
        partial(_conv3x3_s2_bn_kernel, ho=ho, wo=wo, cin=C),
        out_shape=(jax.ShapeDtypeStruct((N, HW, Cout), jnp.bfloat16),
                   jax.ShapeDtypeStruct((N, 8, Cout), jnp.float32),
                   jax.ShapeDtypeStruct((N, 8, Cout), jnp.float32)),
        grid=(N,),
        in_specs=[pl.BlockSpec((4, Hq, Wq, C), lambda n: (n, 0, 0, 0)),
                  pl.BlockSpec((9, C, Cout), lambda n: (0, 0, 0))],
        out_specs=(pl.BlockSpec((None, HW, Cout), lambda n: (n, 0, 0)),
                   pl.BlockSpec((None, 8, Cout), lambda n: (n, 0, 0)),
                   pl.BlockSpec((None, 8, Cout), lambda n: (n, 0, 0))),
        scratch_shapes=[pltpu.VMEM((HW, Cout), jnp.float32)],
        compiler_params=pltpu.CompilerParams(dimension_semantics=("parallel",)),
    )(xq4, w9)
    return y.reshape(N * HW, Cout), s, q


def matmul_bn_pallas(a, b):
    """a (M, K) bf16 @ b (K, N) bf16 -> y bf16 (M, N) + per-tile BN partial stats."""
    M, K = a.shape
    N = b.shape[1]
    tm = min(ROW_TILE, _round_up(M, 8))
    tk = K
    if K > 512:                       # clean MXU-depth K tiles only when K is large
        for cand in (512, 256, 128):
            if K % cand == 0:
                tk = cand
                break
    gm = pl.cdiv(M, tm)
    gk = K // tk
    return pl.pallas_call(
        partial(_matmul_bn_kernel, m_total=M),
        out_shape=(jax.ShapeDtypeStruct((M, N), jnp.bfloat16),
                   jax.ShapeDtypeStruct((gm, 8, N), jnp.float32),
                   jax.ShapeDtypeStruct((gm, 8, N), jnp.float32)),
        grid=(gm, gk),
        in_specs=[pl.BlockSpec((tm, tk), lambda i, k: (i, k)),
                  pl.BlockSpec((tk, N), lambda i, k: (k, 0))],
        out_specs=(pl.BlockSpec((tm, N), lambda i, k: (i, 0)),
                   pl.BlockSpec((None, 8, N), lambda i, k: (i, 0, 0)),
                   pl.BlockSpec((None, 8, N), lambda i, k: (i, 0, 0))),
        scratch_shapes=[pltpu.VMEM((tm, N), jnp.float32)],
        compiler_params=pltpu.CompilerParams(
            dimension_semantics=("parallel", "arbitrary")),
    )(a, b)


def _ew_call(kernel, mats, vecs, out_dtype):
    """Row-tiled elementwise kernel over (M, C) arrays + (1, C) broadcasts."""
    M, C = mats[0].shape
    tm = min(EW_ROW_TILE, _round_up(M, 8))
    mat_spec = pl.BlockSpec((tm, C), lambda i: (i, 0))
    vec_spec = pl.BlockSpec((1, C), lambda i: (0, 0))
    return pl.pallas_call(
        kernel,
        out_shape=jax.ShapeDtypeStruct((M, C), out_dtype),
        grid=(pl.cdiv(M, tm),),
        in_specs=[mat_spec] * len(mats) + [vec_spec] * len(vecs),
        out_specs=mat_spec,
        compiler_params=pltpu.CompilerParams(dimension_semantics=("parallel",)),
    )(*mats, *vecs)


# ------------------------------- glue (JAX) ---------------------------------

def _bn_scale_bias(sum_parts, sq_parts, m_total, gamma, beta):
    """Training-mode BN (biased variance) from fused per-tile partial sums (f32)."""
    c = sum_parts.shape[-1]
    s = jnp.sum(sum_parts.reshape(-1, c), axis=0)
    q = jnp.sum(sq_parts.reshape(-1, c), axis=0)
    mean = s / m_total
    var = jnp.maximum(q / m_total - mean * mean, 0.0)   # guard f32 cancellation
    scale = gamma / jnp.sqrt(var + EPS)
    bias = beta - mean * scale
    return scale.reshape(1, -1), bias.reshape(1, -1)


def _pad_affine(g, b, c_p):
    c = g.shape[0]
    g = jnp.pad(g.astype(jnp.float32), (0, c_p - c))  # zero gamma keeps padded ch. at 0
    b = jnp.pad(b.astype(jnp.float32), (0, c_p - c))
    return g, b


def _prep_conv3x3_weight(w, cin_p, cout_p):
    # PyTorch (Cout, Cin, 3, 3) -> (9, Cin_p, Cout_p) tap-major, zero channel pad, bf16.
    cout, cin = w.shape[0], w.shape[1]
    w = jnp.transpose(w, (2, 3, 1, 0))
    w = jnp.pad(w, ((0, 0), (0, 0), (0, cin_p - cin), (0, cout_p - cout)))
    return w.reshape(9, cin_p, cout_p).astype(jnp.bfloat16)


def _parity_split(x_nhwc, ho, wo):
    """Even/odd row x col decomposition of the pad-1 image for the stride-2 conv.

    Returns xq6 (N, 2, 2, ho+1, wo+1, C) bf16 with xq6[n, rp, cp, r, c] = xpad[n, 2r+rp, 2c+cp].
    Fuses into the same XLA pass as the NCHW->NHWC transpose / bf16 cast.
    """
    N, H, W, C = x_nhwc.shape
    hq, wq = ho + 1, wo + 1
    xp = jnp.pad(x_nhwc, ((0, 0), (1, 2 * hq - H - 1), (1, 2 * wq - W - 1), (0, 0)))
    xq = xp.reshape(N, hq, 2, wq, 2, C).transpose(0, 2, 4, 1, 3, 5)
    return xq.astype(jnp.bfloat16)


def init_simple_block_params(key, indim, outdim):
    """Matches init_layer: conv ~ N(0, sqrt(2/(k*k*out))), BN gamma=1, beta=0."""
    k1, k2, k3 = jax.random.split(key, 3)
    params = {
        'w1': jax.random.normal(k1, (outdim, indim, 3, 3), jnp.float32)
              * math.sqrt(2.0 / (9 * outdim)),
        'g1': jnp.ones((outdim,), jnp.float32),
        'b1': jnp.zeros((outdim,), jnp.float32),
        'w2': jax.random.normal(k2, (outdim, outdim, 3, 3), jnp.float32)
              * math.sqrt(2.0 / (9 * outdim)),
        'g2': jnp.ones((outdim,), jnp.float32),
        'b2': jnp.zeros((outdim,), jnp.float32),
    }
    if indim != outdim:
        params['ws'] = jax.random.normal(k3, (outdim, indim, 1, 1), jnp.float32) \
                       * math.sqrt(2.0 / outdim)
        params['gs'] = jnp.ones((outdim,), jnp.float32)
        params['bs'] = jnp.zeros((outdim,), jnp.float32)
    return params


def simple_block_forward(x_nchw, params, half_res, shortcut_type, out_dtype=jnp.float32):
    """Forward pass of SimpleBlock. Input/output NCHW (PyTorch convention)."""
    stride = 2 if half_res else 1
    assert not (shortcut_type == 'identity' and stride != 1), \
        "identity shortcut requires matching spatial dims (stride 1)"
    Nb, Cin, H, W = x_nchw.shape
    Cout = params['w1'].shape[0]
    Cin_p = _pad_channels(Cin)
    Cout_p = _pad_channels(Cout)

    w1 = _prep_conv3x3_weight(params['w1'], Cin_p, Cout_p)
    w2 = _prep_conv3x3_weight(params['w2'], Cout_p, Cout_p)
    g1, b1 = _pad_affine(params['g1'], params['b1'], Cout_p)
    g2, b2 = _pad_affine(params['g2'], params['b2'], Cout_p)

    # NHWC (+ optional channel pad); fuses into one XLA pass with the bf16 cast below.
    x_nhwc = jnp.transpose(x_nchw, (0, 2, 3, 1)).astype(jnp.float32)
    x_nhwc = jnp.pad(x_nhwc, ((0, 0), (0, 0), (0, 0), (0, Cin_p - Cin)))

    # ---- C1 (3x3, stride 1 or 2) with fused BN1 batch statistics ----
    if stride == 1:
        x_bf = x_nhwc.astype(jnp.bfloat16)
        y1, s1, q1 = conv3x3_s1_bn_pallas(x_bf, w1)
        Ho, Wo = H, W
    else:
        Ho = (H - 1) // 2 + 1
        Wo = (W - 1) // 2 + 1
        xq6 = _parity_split(x_nhwc, Ho, Wo)                  # (N,2,2,Hq,Wq,Cin_p) bf16
        xq4 = xq6.reshape(Nb * 4, Ho + 1, Wo + 1, Cin_p)
        y1, s1, q1 = conv3x3_s2_bn_pallas(xq4, w1, Ho, Wo)
    M = Nb * Ho * Wo

    scale1, bias1 = _bn_scale_bias(s1, q1, M, g1, b1)
    a1 = _ew_call(_bn_relu_kernel, [y1], [scale1, bias1], jnp.bfloat16)

    # ---- C2 (3x3, stride 1): direct in-kernel conv, fused BN2 statistics ----
    y2, s2, q2 = conv3x3_s1_bn_pallas(a1.reshape(Nb, Ho, Wo, Cout_p), w2)
    scale2, bias2 = _bn_scale_bias(s2, q2, M, g2, b2)

    # ---- shortcut branch + fused BN / add / ReLU epilogue ----
    if shortcut_type == '1x1':
        ws = jnp.transpose(params['ws'][:, :, 0, 0])                    # (Cin, Cout)
        ws = jnp.pad(ws, ((0, Cin_p - Cin), (0, Cout_p - Cout))).astype(jnp.bfloat16)
        if stride == 1:
            xs = x_bf.reshape(M, Cin_p)
        else:
            # center tap at even rows/cols == parity slab (1,1): no strided XLA gather
            xs = xq6[:, 1, 1, :Ho, :Wo, :].reshape(M, Cin_p)
        ys, ss, qs = matmul_bn_pallas(xs, ws)
        gs, bs = _pad_affine(params['gs'], params['bs'], Cout_p)
        scale_s, bias_s = _bn_scale_bias(ss, qs, M, gs, bs)
        out = _ew_call(_bn_add_relu_kernel, [y2, ys],
                       [scale2, bias2, scale_s, bias_s], out_dtype)
    else:  # identity shortcut (indim == outdim, stride 1)
        res = x_bf.reshape(M, Cin_p)
        out = _ew_call(_bn_add_relu_identity_kernel, [y2, res],
                       [scale2, bias2], out_dtype)

    out = out.reshape(Nb, Ho, Wo, Cout_p)
    if Cout_p != Cout:
        out = out[..., :Cout]
    return jnp.transpose(out, (0, 3, 1, 2))  # -> NCHW


# --------------------------- pure-JAX reference ------------------------------

def reference_forward(x, params, half_res, shortcut_type):
    stride = 2 if half_res else 1

    def conv(x, w, stride, pad):
        return jax.lax.conv_general_dilated(
            x, w, (stride, stride), [(pad, pad), (pad, pad)],
            dimension_numbers=('NCHW', 'OIHW', 'NCHW'))

    def bn(x, g, b):  # training-mode batch norm (biased variance), eps=1e-5
        mean = jnp.mean(x, axis=(0, 2, 3), keepdims=True)
        var = jnp.mean((x - mean) ** 2, axis=(0, 2, 3), keepdims=True)
        return (x - mean) / jnp.sqrt(var + EPS) * g.reshape(1, -1, 1, 1) \
               + b.reshape(1, -1, 1, 1)

    out = conv(x, params['w1'], stride, 1)
    out = jnp.maximum(bn(out, params['g1'], params['b1']), 0.0)
    out = conv(out, params['w2'], 1, 1)
    out = bn(out, params['g2'], params['b2'])
    if shortcut_type == '1x1':
        s = conv(x, params['ws'], stride, 0)
        s = bn(s, params['gs'], params['bs'])
    else:
        s = x
    return jnp.maximum(out + s, 0.0)


# --------------------------------- main --------------------------------------

if __name__ == "__main__":
    key = jax.random.PRNGKey(0)
    fwd = jax.jit(simple_block_forward,
                  static_argnames=('half_res', 'shortcut_type', 'out_dtype'))

    configs = [
        # (indim, outdim, half_res, H, W)
        (4, 8, True, 16, 16),   # 1x1-conv shortcut, stride-2 first conv (parity path)
        (8, 8, False, 16, 16),  # identity shortcut, both convs on the halo path
    ]
    for cfg_i, (indim, outdim, half_res, H, W) in enumerate(configs):
        kx, kp = jax.random.split(jax.random.fold_in(key, cfg_i))
        shortcut_type = 'identity' if indim == outdim else '1x1'

        x = jax.random.normal(kx, (2, indim, H, W), jnp.float32)   # NCHW
        params = init_simple_block_params(kp, indim, outdim)

        out = jax.block_until_ready(
            fwd(x, params, half_res=half_res, shortcut_type=shortcut_type))
        ref = jax.block_until_ready(
            reference_forward(x, params, half_res, shortcut_type))

        assert out.shape == ref.shape, (out.shape, ref.shape)
        max_err = float(jnp.max(jnp.abs(out - ref)))
        # bf16 matmul operands (f32 accumulation) -> slightly loosened tolerance
        assert jnp.allclose(out, ref, rtol=5e-2, atol=5e-2), \
            f"config {cfg_i}: max abs err {max_err}"

    print("KERNEL_OK")
</pallas_src>

<mosaic_0001>
module attributes {stable_mosaic.version = 11 : i64} {
  func.func @_bn_relu_kernel(%arg0: i32, %arg1: memref<128x8xbf16, #tpu.memory_space<vmem>>, %arg2: memref<1x8xf32, #tpu.memory_space<vmem>>, %arg3: memref<1x8xf32, #tpu.memory_space<vmem>>, %arg4: memref<128x8xbf16, #tpu.memory_space<vmem>>) attributes {dimension_semantics = [#tpu.dimension_semantics<parallel>], iteration_bounds = array<i64: 1>, scalar_prefetch = 0 : i64, scratch_operands = 0 : i64, tpu.core_type = #tpu.core_type<tc>, window_params = [{transform_indices = @transform_0, window_bounds = array<i64: 128, 8>}, {pipeline_mode = #tpu.pipeline_mode<synchronous>, transform_indices = @transform_1, window_bounds = array<i64: 1, 8>}, {pipeline_mode = #tpu.pipeline_mode<synchronous>, transform_indices = @transform_2, window_bounds = array<i64: 1, 8>}, {transform_indices = @transform_3, window_bounds = array<i64: 128, 8>}]} {
    %c0 = arith.constant 0 : index
    %c0_0 = arith.constant 0 : index
    %0 = vector.load %arg1[%c0, %c0_0] : memref<128x8xbf16, #tpu.memory_space<vmem>>, vector<128x8xbf16>
    %1 = arith.extf %0 : vector<128x8xbf16> to vector<128x8xf32>
    %c0_1 = arith.constant 0 : index
    %c0_2 = arith.constant 0 : index
    %2 = vector.load %arg2[%c0_1, %c0_2] : memref<1x8xf32, #tpu.memory_space<vmem>>, vector<1x8xf32>
    %3 = vector.broadcast %2 : vector<1x8xf32> to vector<128x8xf32>
    %4 = arith.mulf %1, %3 : vector<128x8xf32>
    %c0_3 = arith.constant 0 : index
    %c0_4 = arith.constant 0 : index
    %5 = vector.load %arg3[%c0_3, %c0_4] : memref<1x8xf32, #tpu.memory_space<vmem>>, vector<1x8xf32>
    %6 = vector.broadcast %5 : vector<1x8xf32> to vector<128x8xf32>
    %7 = arith.addf %4, %6 : vector<128x8xf32>
    %cst = arith.constant 0.000000e+00 : f32
    %8 = vector.broadcast %cst : f32 to vector<128x8xf32>
    %9 = arith.maximumf %7, %8 : vector<128x8xf32>
    %10 = arith.truncf %9 : vector<128x8xf32> to vector<128x8xbf16>
    %c0_5 = arith.constant 0 : index
    %c0_6 = arith.constant 0 : index
    %11 = vector.load %arg4[%c0_5, %c0_6] : memref<128x8xbf16, #tpu.memory_space<vmem>>, vector<128x8xbf16>
    tpu.vector_store %arg4[%c0_5, %c0_6], %10 {strides = array<i32>} : memref<128x8xbf16, #tpu.memory_space<vmem>>, vector<128x8xbf16>,
    return
  }
  func.func @transform_0(%arg0: i32) -> (i32, i32) {
    %c0_i32 = arith.constant 0 : i32
    %c0_i32_0 = arith.constant 0 : i32
    return %arg0, %c0_i32 : i32, i32
  }
  func.func @transform_1(%arg0: i32) -> (i32, i32) {
    %c0_i32 = arith.constant 0 : i32
    %c0_i32_0 = arith.constant 0 : i32
    %c0_i32_1 = arith.constant 0 : i32
    return %c0_i32, %c0_i32_0 : i32, i32
  }
  func.func @transform_2(%arg0: i32) -> (i32, i32) {
    %c0_i32 = arith.constant 0 : i32
    %c0_i32_0 = arith.constant 0 : i32
    %c0_i32_1 = arith.constant 0 : i32
    return %c0_i32, %c0_i32_0 : i32, i32
  }
  func.func @transform_3(%arg0: i32) -> (i32, i32) {
    %c0_i32 = arith.constant 0 : i32
    %c0_i32_0 = arith.constant 0 : i32
    return %arg0, %c0_i32 : i32, i32
  }
}

module attributes {stable_mosaic.version = 11 : i64} {
  func.func @_conv3x3_s2_bn_kernel(%arg0: i32, %arg1: memref<4x9x9x4xbf16, #tpu.memory_space<vmem>>, %arg2: memref<9x4x8xbf16, #tpu.memory_space<vmem>>, %arg3: memref<1x64x8xbf16, #tpu.memory_space<vmem>>, %arg4: memref<1x8x8xf32, #tpu.memory_space<vmem>>, %arg5: memref<1x8x8xf32, #tpu.memory_space<vmem>>, %arg6: memref<64x8xf32, #tpu.memory_space<vmem>>) attributes {dimension_semantics = [#tpu.dimension_semantics<parallel>], iteration_bounds = array<i64: 2>, scalar_prefetch = 0 : i64, scratch_operands = 1 : i64, tpu.core_type = #tpu.core_type<tc>, window_params = [{transform_indices = @transform_0, window_bounds = array<i64: 4, 9, 9, 4>}, {pipeline_mode = #tpu.pipeline_mode<synchronous>, transform_indices = @transform_1, window_bounds = array<i64: 9, 4, 8>}, {transform_indices = @transform_2, window_bounds = array<i64: 1, 64, 8>}, {transform_indices = @transform_3, window_bounds = array<i64: 1, 8, 8>}, {transform_indices = @transform_4, window_bounds = array<i64: 1, 8, 8>}]} {
    %cst = arith.constant 0.000000e+00 : f32
    %0 = vector.broadcast %cst : f32 to vector<64x8xf32>
    %c0 = arith.constant 0 : index
    %c0_0 = arith.constant 0 : index
    %1 = vector.load %arg6[%c0, %c0_0] : memref<64x8xf32, #tpu.memory_space<vmem>>, vector<64x8xf32>
    tpu.vector_store %arg6[%c0, %c0_0], %0 {strides = array<i32>} : memref<64x8xf32, #tpu.memory_space<vmem>>, vector<64x8xf32>,
    %c0_1 = arith.constant 0 : index
    %c0_2 = arith.constant 0 : index
    %c0_3 = arith.constant 0 : index
    %c0_4 = arith.constant 0 : index
    %2 = vector.load %arg1[%c0_1, %c0_2, %c0_3, %c0_4] : memref<4x9x9x4xbf16, #tpu.memory_space<vmem>>, vector<1x9x9x4xbf16>
    %3 = vector.shape_cast %2 : vector<1x9x9x4xbf16> to vector<9x9x4xbf16>
    %4 = vector.extract_strided_slice %3 {offsets = [0, 0, 0], sizes = [8, 8, 4], strides = [1, 1, 1]} : vector<9x9x4xbf16> to vector<8x8x4xbf16>
    %c0_5 = arith.constant 0 : index
    %c0_6 = arith.constant 0 : index
    %5 = vector.load %arg6[%c0_5, %c0_6] : memref<64x8xf32, #tpu.memory_space<vmem>>, vector<64x8xf32>
    %6 = vector.shape_cast %4 : vector<8x8x4xbf16> to vector<64x4xbf16>
    %c0_7 = arith.constant 0 : index
    %c0_8 = arith.constant 0 : index
    %c0_9 = arith.constant 0 : index
    %7 = vector.load %arg2[%c0_7, %c0_8, %c0_9] : memref<9x4x8xbf16, #tpu.memory_space<vmem>>, vector<1x4x8xbf16>
    %8 = vector.shape_cast %7 : vector<1x4x8xbf16> to vector<4x8xbf16>
    %cst_10 = arith.constant dense<0.000000e+00> : vector<64x8xf32>
    %9 = tpu.matmul %6, %8, %cst_10 {dimension_numbers = #tpu.dot_dimension_numbers<[1], [0], [0], [1], [0, 0, 1, 1], [], []>} : vector<64x4xbf16>, vector<4x8xbf16>, vector<64x8xf32> -> vector<64x8xf32>
    %10 = arith.addf %5, %9 : vector<64x8xf32>
    %c0_11 = arith.constant 0 : index
    %c0_12 = arith.constant 0 : index
    %11 = vector.load %arg6[%c0_11, %c0_12] : memref<64x8xf32, #tpu.memory_space<vmem>>, vector<64x8xf32>
    tpu.vector_store %arg6[%c0_11, %c0_12], %10 {strides = array<i32>} : memref<64x8xf32, #tpu.memory_space<vmem>>, vector<64x8xf32>,
    %c1 = arith.constant 1 : index
    %c0_13 = arith.constant 0 : index
    %c0_14 = arith.constant 0 : index
    %c0_15 = arith.constant 0 : index
    %12 = vector.load %arg1[%c1, %c0_13, %c0_14, %c0_15] : memref<4x9x9x4xbf16, #tpu.memory_space<vmem>>, vector<1x9x9x4xbf16>
    %13 = vector.shape_cast %12 : vector<1x9x9x4xbf16> to vector<9x9x4xbf16>
    %14 = vector.extract_strided_slice %13 {offsets = [0, 0, 0], sizes = [8, 8, 4], strides = [1, 1, 1]} : vector<9x9x4xbf16> to vector<8x8x4xbf16>
    %c0_16 = arith.constant 0 : index
    %c0_17 = arith.constant 0 : index
    %15 = vector.load %arg6[%c0_16, %c0_17] : memref<64x8xf32, #tpu.memory_space<vmem>>, vector<64x8xf32>
    %16 = vector.shape_cast %14 : vector<8x8x4xbf16> to vector<64x4xbf16>
    %c1_18 = arith.constant 1 : index
    %c0_19 = arith.constant 0 : index
    %c0_20 = arith.constant 0 : index
    %17 = vector.load %arg2[%c1_18, %c0_19, %c0_20] : memref<9x4x8xbf16, #tpu.memory_space<vmem>>, vector<1x4x8xbf16>
    %18 = vector.shape_cast %17 : vector<1x4x8xbf16> to vector<4x8xbf16>
    %cst_21 = arith.constant dense<0.000000e+00> : vector<64x8xf32>
    %19 = tpu.matmul %16, %18, %cst_21 {dimension_numbers = #tpu.dot_dimension_numbers<[1], [0], [0], [1], [0, 0, 1, 1], [], []>} : vector<64x4xbf16>, vector<4x8xbf16>, vector<64x8xf32> -> vector<64x8xf32>
    %20 = arith.addf %15, %19 : vector<64x8xf32>
    %c0_22 = arith.constant 0 : index
    %c0_23 = arith.constant 0 : index
    %21 = vector.load %arg6[%c0_22, %c0_23] : memref<64x8xf32, #tpu.memory_space<vmem>>, vector<64x8xf32>
    tpu.vector_store %arg6[%c0_22, %c0_23], %20 {strides = array<i32>} : memref<64x8xf32, #tpu.memory_space<vmem>>, vector<64x8xf32>,
    %c0_24 = arith.constant 0 : index
    %c0_25 = arith.constant 0 : index
    %c0_26 = arith.constant 0 : index
    %c0_27 = arith.constant 0 : index
    %22 = vector.load %arg1[%c0_24, %c0_25, %c0_26, %c0_27] : memref<4x9x9x4xbf16, #tpu.memory_space<vmem>>, vector<1x9x9x4xbf16>
    %23 = vector.shape_cast %22 : vector<1x9x9x4xbf16> to vector<9x9x4xbf16>
    %24 = vector.extract_strided_slice %23 {offsets = [0, 1, 0], sizes = [8, 8, 4], strides = [1, 1, 1]} : vector<9x9x4xbf16> to vector<8x8x4xbf16>
    %c0_28 = arith.constant 0 : index
    %c0_29 = arith.constant 0 : index
    %25 = vector.load %arg6[%c0_28, %c0_29] : memref<64x8xf32, #tpu.memory_space<vmem>>, vector<64x8xf32>
    %26 = vector.shape_cast %24 : vector<8x8x4xbf16> to vector<64x4xbf16>
    %c2 = arith.constant 2 : index
    %c0_30 = arith.constant 0 : index
    %c0_31 = arith.constant 0 : index
    %27 = vector.load %arg2[%c2, %c0_30, %c0_31] : memref<9x4x8xbf16, #tpu.memory_space<vmem>>, vector<1x4x8xbf16>
    %28 = vector.shape_cast %27 : vector<1x4x8xbf16> to vector<4x8xbf16>
    %cst_32 = arith.constant dense<0.000000e+00> : vector<64x8xf32>
    %29 = tpu.matmul %26, %28, %cst_32 {dimension_numbers = #tpu.dot_dimension_numbers<[1], [0], [0], [1], [0, 0, 1, 1], [], []>} : vector<64x4xbf16>, vector<4x8xbf16>, vector<64x8xf32> -> vector<64x8xf32>
    %30 = arith.addf %25, %29 : vector<64x8xf32>
    %c0_33 = arith.constant 0 : index
    %c0_34 = arith.constant 0 : index
    %31 = vector.load %arg6[%c0_33, %c0_34] : memref<64x8xf32, #tpu.memory_space<vmem>>, vector<64x8xf32>
    tpu.vector_store %arg6[%c0_33, %c0_34], %30 {strides = array<i32>} : memref<64x8xf32, #tpu.memory_space<vmem>>, vector<64x8xf32>,
    %c2_35 = arith.constant 2 : index
    %c0_36 = arith.constant 0 : index
    %c0_37 = arith.constant 0 : index
    %c0_38 = arith.constant 0 : index
    %32 = vector.load %arg1[%c2_35, %c0_36, %c0_37, %c0_38] : memref<4x9x9x4xbf16, #tpu.memory_space<vmem>>, vector<1x9x9x4xbf16>
    %33 = vector.shape_cast %32 : vector<1x9x9x4xbf16> to vector<9x9x4xbf16>
    %34 = vector.extract_strided_slice %33 {offsets = [0, 0, 0], sizes = [8, 8, 4], strides = [1, 1, 1]} : vector<9x9x4xbf16> to vector<8x8x4xbf16>
    %c0_39 = arith.constant 0 : index
    %c0_40 = arith.constant 0 : index
    %35 = vector.load %arg6[%c0_39, %c0_40] : memref<64x8xf32, #tpu.memory_space<vmem>>, vector<64x8xf32>
    %36 = vector.shape_cast %34 : vector<8x8x4xbf16> to vector<64x4xbf16>
    %c3 = arith.constant 3 : index
    %c0_41 = arith.constant 0 : index
    %c0_42 = arith.constant 0 : index
    %37 = vector.load %arg2[%c3, %c0_41, %c0_42] : memref<9x4x8xbf16, #tpu.memory_space<vmem>>, vector<1x4x8xbf16>
    %38 = vector.shape_cast %37 : vector<1x4x8xbf16> to vector<4x8xbf16>
    %cst_43 = arith.constant dense<0.000000e+00> : vector<64x8xf32>
    %39 = tpu.matmul %36, %38, %cst_43 {dimension_numbers = #tpu.dot_dimension_numbers<[1], [0], [0], [1], [0, 0, 1, 1], [], []>} : vector<64x4xbf16>, vector<4x8xbf16>, vector<64x8xf32> -> vector<64x8xf32>
    %40 = arith.addf %35, %39 : vector<64x8xf32>
    %c0_44 = arith.constant 0 : index
    %c0_45 = arith.constant 0 : index
    %41 = vector.load %arg6[%c0_44, %c0_45] : memref<64x8xf32, #tpu.memory_space<vmem>>, vector<64x8xf32>
    tpu.vector_store %arg6[%c0_44, %c0_45], %40 {strides = array<i32>} : memref<64x8xf32, #tpu.memory_space<vmem>>, vector<64x8xf32>,
    %c3_46 = arith.constant 3 : index
    %c0_47 = arith.constant 0 : index
    %c0_48 = arith.constant 0 : index
    %c0_49 = arith.constant 0 : index
    %42 = vector.load %arg1[%c3_46, %c0_47, %c0_48, %c0_49] : memref<4x9x9x4xbf16, #tpu.memory_space<vmem>>, vector<1x9x9x4xbf16>
    %43 = vector.shape_cast %42 : vector<1x9x9x4xbf16> to vector<9x9x4xbf16>
    %44 = vector.extract_strided_slice %43 {offsets = [0, 0, 0], sizes = [8, 8, 4], strides = [1, 1, 1]} : vector<9x9x4xbf16> to vector<8x8x4xbf16>
    %c0_50 = arith.constant 0 : index
    %c0_51 = arith.constant 0 : index
    %45 = vector.load %arg6[%c0_50, %c0_51] : memref<64x8xf32, #tpu.memory_space<vmem>>, vector<64x8xf32>
    %46 = vector.shape_cast %44 : vector<8x8x4xbf16> to vector<64x4xbf16>
    %c4 = arith.constant 4 : index
    %c0_52 = arith.constant 0 : index
    %c0_53 = arith.constant 0 : index
    %47 = vector.load %arg2[%c4, %c0_52, %c0_53] : memref<9x4x8xbf16, #tpu.memory_space<vmem>>, vector<1x4x8xbf16>
    %48 = vector.shape_cast %47 : vector<1x4x8xbf16> to vector<4x8xbf16>
    %cst_54 = arith.constant dense<0.000000e+00> : vector<64x8xf32>
    %49 = tpu.matmul %46, %48, %cst_54 {dimension_numbers = #tpu.dot_dimension_numbers<[1], [0], [0], [1], [0, 0, 1, 1], [], []>} : vector<64x4xbf16>, vector<4x8xbf16>, vector<64x8xf32> -> vector<64x8xf32>
    %50 = arith.addf %45, %49 : vector<64x8xf32>
    %c0_55 = arith.constant 0 : index
    %c0_56 = arith.constant 0 : index
    %51 = vector.load %arg6[%c0_55, %c0_56] : memref<64x8xf32, #tpu.memory_space<vmem>>, vector<64x8xf32>
    tpu.vector_store %arg6[%c0_55, %c0_56], %50 {strides = array<i32>} : memref<64x8xf32, #tpu.memory_space<vmem>>, vector<64x8xf32>,
    %c2_57 = arith.constant 2 : index
    %c0_58 = arith.constant 0 : index
    %c0_59 = arith.constant 0 : index
    %c0_60 = arith.constant 0 : index
    %52 = vector.load %arg1[%c2_57, %c0_58, %c0_59, %c0_60] : memref<4x9x9x4xbf16, #tpu.memory_space<vmem>>, vector<1x9x9x4xbf16>
    %53 = vector.shape_cast %52 : vector<1x9x9x4xbf16> to vector<9x9x4xbf16>
    %54 = vector.extract_strided_slice %53 {offsets = [0, 1, 0], sizes = [8, 8, 4], strides = [1, 1, 1]} : vector<9x9x4xbf16> to vector<8x8x4xbf16>
    %c0_61 = arith.constant 0 : index
    %c0_62 = arith.constant 0 : index
    %55 = vector.load %arg6[%c0_61, %c0_62] : memref<64x8xf32, #tpu.memory_space<vmem>>, vector<64x8xf32>
    %56 = vector.shape_cast %54 : vector<8x8x4xbf16> to vector<64x4xbf16>
    %c5 = arith.constant 5 : index
    %c0_63 = arith.constant 0 : index
    %c0_64 = arith.constant 0 : index
    %57 = vector.load %arg2[%c5, %c0_63, %c0_64] : memref<9x4x8xbf16, #tpu.memory_space<vmem>>, vector<1x4x8xbf16>
    %58 = vector.shape_cast %57 : vector<1x4x8xbf16> to vector<4x8xbf16>
    %cst_65 = arith.constant dense<0.000000e+00> : vector<64x8xf32>
    %59 = tpu.matmul %56, %58, %cst_65 {dimension_numbers = #tpu.dot_dimension_numbers<[1], [0], [0], [1], [0, 0, 1, 1], [], []>} : vector<64x4xbf16>, vector<4x8xbf16>, vector<64x8xf32> -> vector<64x8xf32>
    %60 = arith.addf %55, %59 : vector<64x8xf32>
    %c0_66 = arith.constant 0 : index
    %c0_67 = arith.constant 0 : index
    %61 = vector.load %arg6[%c0_66, %c0_67] : memref<64x8xf32, #tpu.memory_space<vmem>>, vector<64x8xf32>
    tpu.vector_store %arg6[%c0_66, %c0_67], %60 {strides = array<i32>} : memref<64x8xf32, #tpu.memory_space<vmem>>, vector<64x8xf32>,
    %c0_68 = arith.constant 0 : index
    %c0_69 = arith.constant 0 : index
    %c0_70 = arith.constant 0 : index
    %c0_71 = arith.constant 0 : index
    %62 = vector.load %arg1[%c0_68, %c0_69, %c0_70, %c0_71] : memref<4x9x9x4xbf16, #tpu.memory_space<vmem>>, vector<1x9x9x4xbf16>
    %63 = vector.shape_cast %62 : vector<1x9x9x4xbf16> to vector<9x9x4xbf16>
    %64 = vector.extract_strided_slice %63 {offsets = [1, 0, 0], sizes = [8, 8, 4], strides = [1, 1, 1]} : vector<9x9x4xbf16> to vector<8x8x4xbf16>
    %c0_72 = arith.constant 0 : index
    %c0_73 = arith.constant 0 : index
    %65 = vector.load %arg6[%c0_72, %c0_73] : memref<64x8xf32, #tpu.memory_space<vmem>>, vector<64x8xf32>
    %66 = vector.shape_cast %64 : vector<8x8x4xbf16> to vector<64x4xbf16>
    %c6 = arith.constant 6 : index
    %c0_74 = arith.constant 0 : index
    %c0_75 = arith.constant 0 : index
    %67 = vector.load %arg2[%c6, %c0_74, %c0_75] : memref<9x4x8xbf16, #tpu.memory_space<vmem>>, vector<1x4x8xbf16>
    %68 = vector.shape_cast %67 : vector<1x4x8xbf16> to vector<4x8xbf16>
    %cst_76 = arith.constant dense<0.000000e+00> : vector<64x8xf32>
    %69 = tpu.matmul %66, %68, %cst_76 {dimension_numbers = #tpu.dot_dimension_numbers<[1], [0], [0], [1], [0, 0, 1, 1], [], []>} : vector<64x4xbf16>, vector<4x8xbf16>, vector<64x8xf32> -> vector<64x8xf32>
    %70 = arith.addf %65, %69 : vector<64x8xf32>
    %c0_77 = arith.constant 0 : index
    %c0_78 = arith.constant 0 : index
    %71 = vector.load %arg6[%c0_77, %c0_78] : memref<64x8xf32, #tpu.memory_space<vmem>>, vector<64x8xf32>
    tpu.vector_store %arg6[%c0_77, %c0_78], %70 {strides = array<i32>} : memref<64x8xf32, #tpu.memory_space<vmem>>, vector<64x8xf32>,
    %c1_79 = arith.constant 1 : index
    %c0_80 = arith.constant 0 : index
    %c0_81 = arith.constant 0 : index
    %c0_82 = arith.constant 0 : index
    %72 = vector.load %arg1[%c1_79, %c0_80, %c0_81, %c0_82] : memref<4x9x9x4xbf16, #tpu.memory_space<vmem>>, vector<1x9x9x4xbf16>
    %73 = vector.shape_cast %72 : vector<1x9x9x4xbf16> to vector<9x9x4xbf16>
    %74 = vector.extract_strided_slice %73 {offsets = [1, 0, 0], sizes = [8, 8, 4], strides = [1, 1, 1]} : vector<9x9x4xbf16> to vector<8x8x4xbf16>
    %c0_83 = arith.constant 0 : index
    %c0_84 = arith.constant 0 : index
    %75 = vector.load %arg6[%c0_83, %c0_84] : memref<64x8xf32, #tpu.memory_space<vmem>>, vector<64x8xf32>
    %76 = vector.shape_cast %74 : vector<8x8x4xbf16> to vector<64x4xbf16>
    %c7 = arith.constant 7 : index
    %c0_85 = arith.constant 0 : index
    %c0_86 = arith.constant 0 : index
    %77 = vector.load %arg2[%c7, %c0_85, %c0_86] : memref<9x4x8xbf16, #tpu.memory_space<vmem>>, vector<1x4x8xbf16>
    %78 = vector.shape_cast %77 : vector<1x4x8xbf16> to vector<4x8xbf16>
    %cst_87 = arith.constant dense<0.000000e+00> : vector<64x8xf32>
    %79 = tpu.matmul %76, %78, %cst_87 {dimension_numbers = #tpu.dot_dimension_numbers<[1], [0], [0], [1], [0, 0, 1, 1], [], []>} : vector<64x4xbf16>, vector<4x8xbf16>, vector<64x8xf32> -> vector<64x8xf32>
    %80 = arith.addf %75, %79 : vector<64x8xf32>
    %c0_88 = arith.constant 0 : index
    %c0_89 = arith.constant 0 : index
    %81 = vector.load %arg6[%c0_88, %c0_89] : memref<64x8xf32, #tpu.memory_space<vmem>>, vector<64x8xf32>
    tpu.vector_store %arg6[%c0_88, %c0_89], %80 {strides = array<i32>} : memref<64x8xf32, #tpu.memory_space<vmem>>, vector<64x8xf32>,
    %c0_90 = arith.constant 0 : index
    %c0_91 = arith.constant 0 : index
    %c0_92 = arith.constant 0 : index
    %c0_93 = arith.constant 0 : index
    %82 = vector.load %arg1[%c0_90, %c0_91, %c0_92, %c0_93] : memref<4x9x9x4xbf16, #tpu.memory_space<vmem>>, vector<1x9x9x4xbf16>
    %83 = vector.shape_cast %82 : vector<1x9x9x4xbf16> to vector<9x9x4xbf16>
    %84 = vector.extract_strided_slice %83 {offsets = [1, 1, 0], sizes = [8, 8, 4], strides = [1, 1, 1]} : vector<9x9x4xbf16> to vector<8x8x4xbf16>
    %c0_94 = arith.constant 0 : index
    %c0_95 = arith.constant 0 : index
    %85 = vector.load %arg6[%c0_94, %c0_95] : memref<64x8xf32, #tpu.memory_space<vmem>>, vector<64x8xf32>
    %86 = vector.shape_cast %84 : vector<8x8x4xbf16> to vector<64x4xbf16>
    %c8 = arith.constant 8 : index
    %c0_96 = arith.constant 0 : index
    %c0_97 = arith.constant 0 : index
    %87 = vector.load %arg2[%c8, %c0_96, %c0_97] : memref<9x4x8xbf16, #tpu.memory_space<vmem>>, vector<1x4x8xbf16>
    %88 = vector.shape_cast %87 : vector<1x4x8xbf16> to vector<4x8xbf16>
    %cst_98 = arith.constant dense<0.000000e+00> : vector<64x8xf32>
    %89 = tpu.matmul %86, %88, %cst_98 {dimension_numbers = #tpu.dot_dimension_numbers<[1], [0], [0], [1], [0, 0, 1, 1], [], []>} : vector<64x4xbf16>, vector<4x8xbf16>, vector<64x8xf32> -> vector<64x8xf32>
    %90 = arith.addf %85, %89 : vector<64x8xf32>
    %c0_99 = arith.constant 0 : index
    %c0_100 = arith.constant 0 : index
    %91 = vector.load %arg6[%c0_99, %c0_100] : memref<64x8xf32, #tpu.memory_space<vmem>>, vector<64x8xf32>
    tpu.vector_store %arg6[%c0_99, %c0_100], %90 {strides = array<i32>} : memref<64x8xf32, #tpu.memory_space<vmem>>, vector<64x8xf32>,
    %c0_101 = arith.constant 0 : index
    %c0_102 = arith.constant 0 : index
    %92 = vector.load %arg6[%c0_101, %c0_102] : memref<64x8xf32, #tpu.memory_space<vmem>>, vector<64x8xf32>
    %93 = arith.truncf %92 : vector<64x8xf32> to vector<64x8xbf16>
    %c0_103 = arith.constant 0 : index
    %c0_104 = arith.constant 0 : index
    %c0_105 = arith.constant 0 : index
    %94 = vector.load %arg3[%c0_103, %c0_104, %c0_105] : memref<1x64x8xbf16, #tpu.memory_space<vmem>>, vector<1x64x8xbf16>
    %95 = vector.shape_cast %94 : vector<1x64x8xbf16> to vector<64x8xbf16>
    %96 = vector.shape_cast %93 : vector<64x8xbf16> to vector<1x64x8xbf16>
    tpu.vector_store %arg3[%c0_103, %c0_104, %c0_105], %96 {strides = array<i32>} : memref<1x64x8xbf16, #tpu.memory_space<vmem>>, vector<1x64x8xbf16>,
    %97 = tpu.iota {dimensions = array<i32: 0>} : vector<8x1xi32>
    %c0_i32 = arith.constant 0 : i32
    %98 = vector.broadcast %c0_i32 : i32 to vector<8x1xi32>
    %99 = arith.cmpi eq, %97, %98 : vector<8x1xi32>
    %cst_106 = arith.constant dense<0.000000e+00> : vector<8xf32>
    %100 = vector.multi_reduction <add>, %92, %cst_106 [0] : vector<64x8xf32> to vector<8xf32>
    %101 = vector.shape_cast %100 : vector<8xf32> to vector<1x8xf32>
    %cst_107 = arith.constant 0.000000e+00 : f32
    %102 = vector.shape_cast %99 : vector<8x1xi1> to vector<8x1xi1>
    %103 = vector.broadcast %102 : vector<8x1xi1> to vector<8x8xi1>
    %104 = vector.shape_cast %101 : vector<1x8xf32> to vector<1x8xf32>
    %105 = vector.broadcast %104 : vector<1x8xf32> to vector<8x8xf32>
    %106 = vector.broadcast %cst_107 : f32 to vector<8x8xf32>
    %107 = arith.select %103, %105, %106 : vector<8x8xi1>, vector<8x8xf32>
    %c0_108 = arith.constant 0 : index
    %c0_109 = arith.constant 0 : index
    %c0_110 = arith.constant 0 : index
    %108 = vector.load %arg4[%c0_108, %c0_109, %c0_110] : memref<1x8x8xf32, #tpu.memory_space<vmem>>, vector<1x8x8xf32>
    %109 = vector.shape_cast %108 : vector<1x8x8xf32> to vector<8x8xf32>
    %110 = vector.shape_cast %107 : vector<8x8xf32> to vector<1x8x8xf32>
    tpu.vector_store %arg4[%c0_108, %c0_109, %c0_110], %110 {strides = array<i32>} : memref<1x8x8xf32, #tpu.memory_space<vmem>>, vector<1x8x8xf32>,
    %111 = arith.mulf %92, %92 : vector<64x8xf32>
    %cst_111 = arith.constant dense<0.000000e+00> : vector<8xf32>
    %112 = vector.multi_reduction <add>, %111, %cst_111 [0] : vector<64x8xf32> to vector<8xf32>
    %113 = vector.shape_cast %112 : vector<8xf32> to vector<1x8xf32>
    %cst_112 = arith.constant 0.000000e+00 : f32
    %114 = vector.shape_cast %99 : vector<8x1xi1> to vector<8x1xi1>
    %115 = vector.broadcast %114 : vector<8x1xi1> to vector<8x8xi1>
    %116 = vector.shape_cast %113 : vector<1x8xf32> to vector<1x8xf32>
    %117 = vector.broadcast %116 : vector<1x8xf32> to vector<8x8xf32>
    %118 = vector.broadcast %cst_112 : f32 to vector<8x8xf32>
    %119 = arith.select %115, %117, %118 : vector<8x8xi1>, vector<8x8xf32>
    %c0_113 = arith.constant 0 : index
    %c0_114 = arith.constant 0 : index
    %c0_115 = arith.constant 0 : index
    %120 = vector.load %arg5[%c0_113, %c0_114, %c0_115] : memref<1x8x8xf32, #tpu.memory_space<vmem>>, vector<1x8x8xf32>
    %121 = vector.shape_cast %120 : vector<1x8x8xf32> to vector<8x8xf32>
    %122 = vector.shape_cast %119 : vector<8x8xf32> to vector<1x8x8xf32>
    tpu.vector_store %arg5[%c0_113, %c0_114, %c0_115], %122 {strides = array<i32>} : memref<1x8x8xf32, #tpu.memory_space<vmem>>, vector<1x8x8xf32>,
    return
  }
  func.func @transform_0(%arg0: i32) -> (i32, i32, i32, i32) {
    %c0_i32 = arith.constant 0 : i32
    %c0_i32_0 = arith.constant 0 : i32
    %c0_i32_1 = arith.constant 0 : i32
    %c0_i32_2 = arith.constant 0 : i32
    return %arg0, %c0_i32, %c0_i32_0, %c0_i32_1 : i32, i32, i32, i32
  }
  func.func @transform_1(%arg0: i32) -> (i32, i32, i32) {
    %c0_i32 = arith.constant 0 : i32
    %c0_i32_0 = arith.constant 0 : i32
    %c0_i32_1 = arith.constant 0 : i32
    %c0_i32_2 = arith.constant 0 : i32
    return %c0_i32, %c0_i32_0, %c0_i32_1 : i32, i32, i32
  }
  func.func @transform_2(%arg0: i32) -> (i32, i32, i32) {
    %c0_i32 = arith.constant 0 : i32
    %c0_i32_0 = arith.constant 0 : i32
    %c0_i32_1 = arith.constant 0 : i32
    return %arg0, %c0_i32, %c0_i32_0 : i32, i32, i32
  }
  func.func @transform_3(%arg0: i32) -> (i32, i32, i32) {
    %c0_i32 = arith.constant 0 : i32
    %c0_i32_0 = arith.constant 0 : i32
    %c0_i32_1 = arith.constant 0 : i32
    return %arg0, %c0_i32, %c0_i32_0 : i32, i32, i32
  }
  func.func @transform_4(%arg0: i32) -> (i32, i32, i32) {
    %c0_i32 = arith.constant 0 : i32
    %c0_i32_0 = arith.constant 0 : i32
    %c0_i32_1 = arith.constant 0 : i32
    return %arg0, %c0_i32, %c0_i32_0 : i32, i32, i32
  }
}

module attributes {stable_mosaic.version = 11 : i64} {
  func.func @_conv3x3_s1_bn_kernel(%arg0: i32, %arg1: memref<1x8x8x8xbf16, #tpu.memory_space<vmem>>, %arg2: memref<9x8x8xbf16, #tpu.memory_space<vmem>>, %arg3: memref<1x64x8xbf16, #tpu.memory_space<vmem>>, %arg4: memref<1x8x8xf32, #tpu.memory_space<vmem>>, %arg5: memref<1x8x8xf32, #tpu.memory_space<vmem>>, %arg6: memref<10x24x8xbf16, #tpu.memory_space<vmem>>, %arg7: memref<64x8xf32, #tpu.memory_space<vmem>>) attributes {dimension_semantics = [#tpu.dimension_semantics<parallel>], iteration_bounds = array<i64: 2>, scalar_prefetch = 0 : i64, scratch_operands = 2 : i64, tpu.core_type = #tpu.core_type<tc>, window_params = [{transform_indices = @transform_0, window_bounds = array<i64: 1, 8, 8, 8>}, {pipeline_mode = #tpu.pipeline_mode<synchronous>, transform_indices = @transform_1, window_bounds = array<i64: 9, 8, 8>}, {transform_indices = @transform_2, window_bounds = array<i64: 1, 64, 8>}, {transform_indices = @transform_3, window_bounds = array<i64: 1, 8, 8>}, {transform_indices = @transform_4, window_bounds = array<i64: 1, 8, 8>}]} {
    %cst = arith.constant 0.000000e+00 : bf16
    %0 = vector.broadcast %cst : bf16 to vector<10x24x8xbf16>
    %c0 = arith.constant 0 : index
    %c0_0 = arith.constant 0 : index
    %c0_1 = arith.constant 0 : index
    %1 = vector.load %arg6[%c0, %c0_0, %c0_1] : memref<10x24x8xbf16, #tpu.memory_space<vmem>>, vector<10x24x8xbf16>
    tpu.vector_store %arg6[%c0, %c0_0, %c0_1], %0 {strides = array<i32>} : memref<10x24x8xbf16, #tpu.memory_space<vmem>>, vector<10x24x8xbf16>,
    %c0_2 = arith.constant 0 : index
    %c0_3 = arith.constant 0 : index
    %c0_4 = arith.constant 0 : index
    %c0_5 = arith.constant 0 : index
    %2 = vector.load %arg1[%c0_2, %c0_3, %c0_4, %c0_5] : memref<1x8x8x8xbf16, #tpu.memory_space<vmem>>, vector<1x8x8x8xbf16>
    %3 = vector.shape_cast %2 : vector<1x8x8x8xbf16> to vector<8x8x8xbf16>
    %c1 = arith.constant 1 : index
    %c8 = arith.constant 8 : index
    %c0_6 = arith.constant 0 : index
    %4 = vector.load %arg6[%c1, %c8, %c0_6] : memref<10x24x8xbf16, #tpu.memory_space<vmem>>, vector<8x8x8xbf16>
    tpu.vector_store %arg6[%c1, %c8, %c0_6], %3 {strides = array<i32>} : memref<10x24x8xbf16, #tpu.memory_space<vmem>>, vector<8x8x8xbf16>,
    %cst_7 = arith.constant 0.000000e+00 : f32
    %5 = vector.broadcast %cst_7 : f32 to vector<64x8xf32>
    %c0_8 = arith.constant 0 : index
    %c0_9 = arith.constant 0 : index
    %6 = vector.load %arg7[%c0_8, %c0_9] : memref<64x8xf32, #tpu.memory_space<vmem>>, vector<64x8xf32>
    tpu.vector_store %arg7[%c0_8, %c0_9], %5 {strides = array<i32>} : memref<64x8xf32, #tpu.memory_space<vmem>>, vector<64x8xf32>,
    %c0_10 = arith.constant 0 : index
    %c7 = arith.constant 7 : index
    %c0_11 = arith.constant 0 : index
    %7 = vector.load %arg6[%c0_10, %c7, %c0_11] : memref<10x24x8xbf16, #tpu.memory_space<vmem>>, vector<8x8x8xbf16>
    %c0_12 = arith.constant 0 : index
    %c0_13 = arith.constant 0 : index
    %8 = vector.load %arg7[%c0_12, %c0_13] : memref<64x8xf32, #tpu.memory_space<vmem>>, vector<64x8xf32>
    %9 = vector.shape_cast %7 : vector<8x8x8xbf16> to vector<64x8xbf16>
    %c0_14 = arith.constant 0 : index
    %c0_15 = arith.constant 0 : index
    %c0_16 = arith.constant 0 : index
    %10 = vector.load %arg2[%c0_14, %c0_15, %c0_16] : memref<9x8x8xbf16, #tpu.memory_space<vmem>>, vector<1x8x8xbf16>
    %11 = vector.shape_cast %10 : vector<1x8x8xbf16> to vector<8x8xbf16>
    %cst_17 = arith.constant dense<0.000000e+00> : vector<64x8xf32>
    %12 = tpu.matmul %9, %11, %cst_17 {dimension_numbers = #tpu.dot_dimension_numbers<[1], [0], [0], [1], [0, 0, 1, 1], [], []>} : vector<64x8xbf16>, vector<8x8xbf16>, vector<64x8xf32> -> vector<64x8xf32>
    %13 = arith.addf %8, %12 : vector<64x8xf32>
    %c0_18 = arith.constant 0 : index
    %c0_19 = arith.constant 0 : index
    %14 = vector.load %arg7[%c0_18, %c0_19] : memref<64x8xf32, #tpu.memory_space<vmem>>, vector<64x8xf32>
    tpu.vector_store %arg7[%c0_18, %c0_19], %13 {strides = array<i32>} : memref<64x8xf32, #tpu.memory_space<vmem>>, vector<64x8xf32>,
    %c0_20 = arith.constant 0 : index
    %c8_21 = arith.constant 8 : index
    %c0_22 = arith.constant 0 : index
    %15 = vector.load %arg6[%c0_20, %c8_21, %c0_22] : memref<10x24x8xbf16, #tpu.memory_space<vmem>>, vector<8x8x8xbf16>
    %c0_23 = arith.constant 0 : index
    %c0_24 = arith.constant 0 : index
    %16 = vector.load %arg7[%c0_23, %c0_24] : memref<64x8xf32, #tpu.memory_space<vmem>>, vector<64x8xf32>
    %17 = vector.shape_cast %15 : vector<8x8x8xbf16> to vector<64x8xbf16>
    %c1_25 = arith.constant 1 : index
    %c0_26 = arith.constant 0 : index
    %c0_27 = arith.constant 0 : index
    %18 = vector.load %arg2[%c1_25, %c0_26, %c0_27] : memref<9x8x8xbf16, #tpu.memory_space<vmem>>, vector<1x8x8xbf16>
    %19 = vector.shape_cast %18 : vector<1x8x8xbf16> to vector<8x8xbf16>
    %cst_28 = arith.constant dense<0.000000e+00> : vector<64x8xf32>
    %20 = tpu.matmul %17, %19, %cst_28 {dimension_numbers = #tpu.dot_dimension_numbers<[1], [0], [0], [1], [0, 0, 1, 1], [], []>} : vector<64x8xbf16>, vector<8x8xbf16>, vector<64x8xf32> -> vector<64x8xf32>
    %21 = arith.addf %16, %20 : vector<64x8xf32>
    %c0_29 = arith.constant 0 : index
    %c0_30 = arith.constant 0 : index
    %22 = vector.load %arg7[%c0_29, %c0_30] : memref<64x8xf32, #tpu.memory_space<vmem>>, vector<64x8xf32>
    tpu.vector_store %arg7[%c0_29, %c0_30], %21 {strides = array<i32>} : memref<64x8xf32, #tpu.memory_space<vmem>>, vector<64x8xf32>,
    %c0_31 = arith.constant 0 : index
    %c9 = arith.constant 9 : index
    %c0_32 = arith.constant 0 : index
    %23 = vector.load %arg6[%c0_31, %c9, %c0_32] : memref<10x24x8xbf16, #tpu.memory_space<vmem>>, vector<8x8x8xbf16>
    %c0_33 = arith.constant 0 : index
    %c0_34 = arith.constant 0 : index
    %24 = vector.load %arg7[%c0_33, %c0_34] : memref<64x8xf32, #tpu.memory_space<vmem>>, vector<64x8xf32>
    %25 = vector.shape_cast %23 : vector<8x8x8xbf16> to vector<64x8xbf16>
    %c2 = arith.constant 2 : index
    %c0_35 = arith.constant 0 : index
    %c0_36 = arith.constant 0 : index
    %26 = vector.load %arg2[%c2, %c0_35, %c0_36] : memref<9x8x8xbf16, #tpu.memory_space<vmem>>, vector<1x8x8xbf16>
    %27 = vector.shape_cast %26 : vector<1x8x8xbf16> to vector<8x8xbf16>
    %cst_37 = arith.constant dense<0.000000e+00> : vector<64x8xf32>
    %28 = tpu.matmul %25, %27, %cst_37 {dimension_numbers = #tpu.dot_dimension_numbers<[1], [0], [0], [1], [0, 0, 1, 1], [], []>} : vector<64x8xbf16>, vector<8x8xbf16>, vector<64x8xf32> -> vector<64x8xf32>
    %29 = arith.addf %24, %28 : vector<64x8xf32>
    %c0_38 = arith.constant 0 : index
    %c0_39 = arith.constant 0 : index
    %30 = vector.load %arg7[%c0_38, %c0_39] : memref<64x8xf32, #tpu.memory_space<vmem>>, vector<64x8xf32>
    tpu.vector_store %arg7[%c0_38, %c0_39], %29 {strides = array<i32>} : memref<64x8xf32, #tpu.memory_space<vmem>>, vector<64x8xf32>,
    %c1_40 = arith.constant 1 : index
    %c7_41 = arith.constant 7 : index
    %c0_42 = arith.constant 0 : index
    %31 = vector.load %arg6[%c1_40, %c7_41, %c0_42] : memref<10x24x8xbf16, #tpu.memory_space<vmem>>, vector<8x8x8xbf16>
    %c0_43 = arith.constant 0 : index
    %c0_44 = arith.constant 0 : index
    %32 = vector.load %arg7[%c0_43, %c0_44] : memref<64x8xf32, #tpu.memory_space<vmem>>, vector<64x8xf32>
    %33 = vector.shape_cast %31 : vector<8x8x8xbf16> to vector<64x8xbf16>
    %c3 = arith.constant 3 : index
    %c0_45 = arith.constant 0 : index
    %c0_46 = arith.constant 0 : index
    %34 = vector.load %arg2[%c3, %c0_45, %c0_46] : memref<9x8x8xbf16, #tpu.memory_space<vmem>>, vector<1x8x8xbf16>
    %35 = vector.shape_cast %34 : vector<1x8x8xbf16> to vector<8x8xbf16>
    %cst_47 = arith.constant dense<0.000000e+00> : vector<64x8xf32>
    %36 = tpu.matmul %33, %35, %cst_47 {dimension_numbers = #tpu.dot_dimension_numbers<[1], [0], [0], [1], [0, 0, 1, 1], [], []>} : vector<64x8xbf16>, vector<8x8xbf16>, vector<64x8xf32> -> vector<64x8xf32>
    %37 = arith.addf %32, %36 : vector<64x8xf32>
    %c0_48 = arith.constant 0 : index
    %c0_49 = arith.constant 0 : index
    %38 = vector.load %arg7[%c0_48, %c0_49] : memref<64x8xf32, #tpu.memory_space<vmem>>, vector<64x8xf32>
    tpu.vector_store %arg7[%c0_48, %c0_49], %37 {strides = array<i32>} : memref<64x8xf32, #tpu.memory_space<vmem>>, vector<64x8xf32>,
    %c1_50 = arith.constant 1 : index
    %c8_51 = arith.constant 8 : index
    %c0_52 = arith.constant 0 : index
    %39 = vector.load %arg6[%c1_50, %c8_51, %c0_52] : memref<10x24x8xbf16, #tpu.memory_space<vmem>>, vector<8x8x8xbf16>
    %c0_53 = arith.constant 0 : index
    %c0_54 = arith.constant 0 : index
    %40 = vector.load %arg7[%c0_53, %c0_54] : memref<64x8xf32, #tpu.memory_space<vmem>>, vector<64x8xf32>
    %41 = vector.shape_cast %39 : vector<8x8x8xbf16> to vector<64x8xbf16>
    %c4 = arith.constant 4 : index
    %c0_55 = arith.constant 0 : index
    %c0_56 = arith.constant 0 : index
    %42 = vector.load %arg2[%c4, %c0_55, %c0_56] : memref<9x8x8xbf16, #tpu.memory_space<vmem>>, vector<1x8x8xbf16>
    %43 = vector.shape_cast %42 : vector<1x8x8xbf16> to vector<8x8xbf16>
    %cst_57 = arith.constant dense<0.000000e+00> : vector<64x8xf32>
    %44 = tpu.matmul %41, %43, %cst_57 {dimension_numbers = #tpu.dot_dimension_numbers<[1], [0], [0], [1], [0, 0, 1, 1], [], []>} : vector<64x8xbf16>, vector<8x8xbf16>, vector<64x8xf32> -> vector<64x8xf32>
    %45 = arith.addf %40, %44 : vector<64x8xf32>
    %c0_58 = arith.constant 0 : index
    %c0_59 = arith.constant 0 : index
    %46 = vector.load %arg7[%c0_58, %c0_59] : memref<64x8xf32, #tpu.memory_space<vmem>>, vector<64x8xf32>
    tpu.vector_store %arg7[%c0_58, %c0_59], %45 {strides = array<i32>} : memref<64x8xf32, #tpu.memory_space<vmem>>, vector<64x8xf32>,
    %c1_60 = arith.constant 1 : index
    %c9_61 = arith.constant 9 : index
    %c0_62 = arith.constant 0 : index
    %47 = vector.load %arg6[%c1_60, %c9_61, %c0_62] : memref<10x24x8xbf16, #tpu.memory_space<vmem>>, vector<8x8x8xbf16>
    %c0_63 = arith.constant 0 : index
    %c0_64 = arith.constant 0 : index
    %48 = vector.load %arg7[%c0_63, %c0_64] : memref<64x8xf32, #tpu.memory_space<vmem>>, vector<64x8xf32>
    %49 = vector.shape_cast %47 : vector<8x8x8xbf16> to vector<64x8xbf16>
    %c5 = arith.constant 5 : index
    %c0_65 = arith.constant 0 : index
    %c0_66 = arith.constant 0 : index
    %50 = vector.load %arg2[%c5, %c0_65, %c0_66] : memref<9x8x8xbf16, #tpu.memory_space<vmem>>, vector<1x8x8xbf16>
    %51 = vector.shape_cast %50 : vector<1x8x8xbf16> to vector<8x8xbf16>
    %cst_67 = arith.constant dense<0.000000e+00> : vector<64x8xf32>
    %52 = tpu.matmul %49, %51, %cst_67 {dimension_numbers = #tpu.dot_dimension_numbers<[1], [0], [0], [1], [0, 0, 1, 1], [], []>} : vector<64x8xbf16>, vector<8x8xbf16>, vector<64x8xf32> -> vector<64x8xf32>
    %53 = arith.addf %48, %52 : vector<64x8xf32>
    %c0_68 = arith.constant 0 : index
    %c0_69 = arith.constant 0 : index
    %54 = vector.load %arg7[%c0_68, %c0_69] : memref<64x8xf32, #tpu.memory_space<vmem>>, vector<64x8xf32>
    tpu.vector_store %arg7[%c0_68, %c0_69], %53 {strides = array<i32>} : memref<64x8xf32, #tpu.memory_space<vmem>>, vector<64x8xf32>,
    %c2_70 = arith.constant 2 : index
    %c7_71 = arith.constant 7 : index
    %c0_72 = arith.constant 0 : index
    %55 = vector.load %arg6[%c2_70, %c7_71, %c0_72] : memref<10x24x8xbf16, #tpu.memory_space<vmem>>, vector<8x8x8xbf16>
    %c0_73 = arith.constant 0 : index
    %c0_74 = arith.constant 0 : index
    %56 = vector.load %arg7[%c0_73, %c0_74] : memref<64x8xf32, #tpu.memory_space<vmem>>, vector<64x8xf32>
    %57 = vector.shape_cast %55 : vector<8x8x8xbf16> to vector<64x8xbf16>
    %c6 = arith.constant 6 : index
    %c0_75 = arith.constant 0 : index
    %c0_76 = arith.constant 0 : index
    %58 = vector.load %arg2[%c6, %c0_75, %c0_76] : memref<9x8x8xbf16, #tpu.memory_space<vmem>>, vector<1x8x8xbf16>
    %59 = vector.shape_cast %58 : vector<1x8x8xbf16> to vector<8x8xbf16>
    %cst_77 = arith.constant dense<0.000000e+00> : vector<64x8xf32>
    %60 = tpu.matmul %57, %59, %cst_77 {dimension_numbers = #tpu.dot_dimension_numbers<[1], [0], [0], [1], [0, 0, 1, 1], [], []>} : vector<64x8xbf16>, vector<8x8xbf16>, vector<64x8xf32> -> vector<64x8xf32>
    %61 = arith.addf %56, %60 : vector<64x8xf32>
    %c0_78 = arith.constant 0 : index
    %c0_79 = arith.constant 0 : index
    %62 = vector.load %arg7[%c0_78, %c0_79] : memref<64x8xf32, #tpu.memory_space<vmem>>, vector<64x8xf32>
    tpu.vector_store %arg7[%c0_78, %c0_79], %61 {strides = array<i32>} : memref<64x8xf32, #tpu.memory_space<vmem>>, vector<64x8xf32>,
    %c2_80 = arith.constant 2 : index
    %c8_81 = arith.constant 8 : index
    %c0_82 = arith.constant 0 : index
    %63 = vector.load %arg6[%c2_80, %c8_81, %c0_82] : memref<10x24x8xbf16, #tpu.memory_space<vmem>>, vector<8x8x8xbf16>
    %c0_83 = arith.constant 0 : index
    %c0_84 = arith.constant 0 : index
    %64 = vector.load %arg7[%c0_83, %c0_84] : memref<64x8xf32, #tpu.memory_space<vmem>>, vector<64x8xf32>
    %65 = vector.shape_cast %63 : vector<8x8x8xbf16> to vector<64x8xbf16>
    %c7_85 = arith.constant 7 : index
    %c0_86 = arith.constant 0 : index
    %c0_87 = arith.constant 0 : index
    %66 = vector.load %arg2[%c7_85, %c0_86, %c0_87] : memref<9x8x8xbf16, #tpu.memory_space<vmem>>, vector<1x8x8xbf16>
    %67 = vector.shape_cast %66 : vector<1x8x8xbf16> to vector<8x8xbf16>
    %cst_88 = arith.constant dense<0.000000e+00> : vector<64x8xf32>
    %68 = tpu.matmul %65, %67, %cst_88 {dimension_numbers = #tpu.dot_dimension_numbers<[1], [0], [0], [1], [0, 0, 1, 1], [], []>} : vector<64x8xbf16>, vector<8x8xbf16>, vector<64x8xf32> -> vector<64x8xf32>
    %69 = arith.addf %64, %68 : vector<64x8xf32>
    %c0_89 = arith.constant 0 : index
    %c0_90 = arith.constant 0 : index
    %70 = vector.load %arg7[%c0_89, %c0_90] : memref<64x8xf32, #tpu.memory_space<vmem>>, vector<64x8xf32>
    tpu.vector_store %arg7[%c0_89, %c0_90], %69 {strides = array<i32>} : memref<64x8xf32, #tpu.memory_space<vmem>>, vector<64x8xf32>,
    %c2_91 = arith.constant 2 : index
    %c9_92 = arith.constant 9 : index
    %c0_93 = arith.constant 0 : index
    %71 = vector.load %arg6[%c2_91, %c9_92, %c0_93] : memref<10x24x8xbf16, #tpu.memory_space<vmem>>, vector<8x8x8xbf16>
    %c0_94 = arith.constant 0 : index
    %c0_95 = arith.constant 0 : index
    %72 = vector.load %arg7[%c0_94, %c0_95] : memref<64x8xf32, #tpu.memory_space<vmem>>, vector<64x8xf32>
    %73 = vector.shape_cast %71 : vector<8x8x8xbf16> to vector<64x8xbf16>
    %c8_96 = arith.constant 8 : index
    %c0_97 = arith.constant 0 : index
    %c0_98 = arith.constant 0 : index
    %74 = vector.load %arg2[%c8_96, %c0_97, %c0_98] : memref<9x8x8xbf16, #tpu.memory_space<vmem>>, vector<1x8x8xbf16>
    %75 = vector.shape_cast %74 : vector<1x8x8xbf16> to vector<8x8xbf16>
    %cst_99 = arith.constant dense<0.000000e+00> : vector<64x8xf32>
    %76 = tpu.matmul %73, %75, %cst_99 {dimension_numbers = #tpu.dot_dimension_numbers<[1], [0], [0], [1], [0, 0, 1, 1], [], []>} : vector<64x8xbf16>, vector<8x8xbf16>, vector<64x8xf32> -> vector<64x8xf32>
    %77 = arith.addf %72, %76 : vector<64x8xf32>
    %c0_100 = arith.constant 0 : index
    %c0_101 = arith.constant 0 : index
    %78 = vector.load %arg7[%c0_100, %c0_101] : memref<64x8xf32, #tpu.memory_space<vmem>>, vector<64x8xf32>
    tpu.vector_store %arg7[%c0_100, %c0_101], %77 {strides = array<i32>} : memref<64x8xf32, #tpu.memory_space<vmem>>, vector<64x8xf32>,
    %c0_102 = arith.constant 0 : index
    %c0_103 = arith.constant 0 : index
    %79 = vector.load %arg7[%c0_102, %c0_103] : memref<64x8xf32, #tpu.memory_space<vmem>>, vector<64x8xf32>
    %80 = arith.truncf %79 : vector<64x8xf32> to vector<64x8xbf16>
    %c0_104 = arith.constant 0 : index
    %c0_105 = arith.constant 0 : index
    %c0_106 = arith.constant 0 : index
    %81 = vector.load %arg3[%c0_104, %c0_105, %c0_106] : memref<1x64x8xbf16, #tpu.memory_space<vmem>>, vector<1x64x8xbf16>
    %82 = vector.shape_cast %81 : vector<1x64x8xbf16> to vector<64x8xbf16>
    %83 = vector.shape_cast %80 : vector<64x8xbf16> to vector<1x64x8xbf16>
    tpu.vector_store %arg3[%c0_104, %c0_105, %c0_106], %83 {strides = array<i32>} : memref<1x64x8xbf16, #tpu.memory_space<vmem>>, vector<1x64x8xbf16>,
    %84 = tpu.iota {dimensions = array<i32: 0>} : vector<8x1xi32>
    %c0_i32 = arith.constant 0 : i32
    %85 = vector.broadcast %c0_i32 : i32 to vector<8x1xi32>
    %86 = arith.cmpi eq, %84, %85 : vector<8x1xi32>
    %cst_107 = arith.constant dense<0.000000e+00> : vector<8xf32>
    %87 = vector.multi_reduction <add>, %79, %cst_107 [0] : vector<64x8xf32> to vector<8xf32>
    %88 = vector.shape_cast %87 : vector<8xf32> to vector<1x8xf32>
    %cst_108 = arith.constant 0.000000e+00 : f32
    %89 = vector.shape_cast %86 : vector<8x1xi1> to vector<8x1xi1>
    %90 = vector.broadcast %89 : vector<8x1xi1> to vector<8x8xi1>
    %91 = vector.shape_cast %88 : vector<1x8xf32> to vector<1x8xf32>
    %92 = vector.broadcast %91 : vector<1x8xf32> to vector<8x8xf32>
    %93 = vector.broadcast %cst_108 : f32 to vector<8x8xf32>
    %94 = arith.select %90, %92, %93 : vector<8x8xi1>, vector<8x8xf32>
    %c0_109 = arith.constant 0 : index
    %c0_110 = arith.constant 0 : index
    %c0_111 = arith.constant 0 : index
    %95 = vector.load %arg4[%c0_109, %c0_110, %c0_111] : memref<1x8x8xf32, #tpu.memory_space<vmem>>, vector<1x8x8xf32>
    %96 = vector.shape_cast %95 : vector<1x8x8xf32> to vector<8x8xf32>
    %97 = vector.shape_cast %94 : vector<8x8xf32> to vector<1x8x8xf32>
    tpu.vector_store %arg4[%c0_109, %c0_110, %c0_111], %97 {strides = array<i32>} : memref<1x8x8xf32, #tpu.memory_space<vmem>>, vector<1x8x8xf32>,
    %98 = arith.mulf %79, %79 : vector<64x8xf32>
    %cst_112 = arith.constant dense<0.000000e+00> : vector<8xf32>
    %99 = vector.multi_reduction <add>, %98, %cst_112 [0] : vector<64x8xf32> to vector<8xf32>
    %100 = vector.shape_cast %99 : vector<8xf32> to vector<1x8xf32>
    %cst_113 = arith.constant 0.000000e+00 : f32
    %101 = vector.shape_cast %86 : vector<8x1xi1> to vector<8x1xi1>
    %102 = vector.broadcast %101 : vector<8x1xi1> to vector<8x8xi1>
    %103 = vector.shape_cast %100 : vector<1x8xf32> to vector<1x8xf32>
    %104 = vector.broadcast %103 : vector<1x8xf32> to vector<8x8xf32>
    %105 = vector.broadcast %cst_113 : f32 to vector<8x8xf32>
    %106 = arith.select %102, %104, %105 : vector<8x8xi1>, vector<8x8xf32>
    %c0_114 = arith.constant 0 : index
    %c0_115 = arith.constant 0 : index
    %c0_116 = arith.constant 0 : index
    %107 = vector.load %arg5[%c0_114, %c0_115, %c0_116] : memref<1x8x8xf32, #tpu.memory_space<vmem>>, vector<1x8x8xf32>
    %108 = vector.shape_cast %107 : vector<1x8x8xf32> to vector<8x8xf32>
    %109 = vector.shape_cast %106 : vector<8x8xf32> to vector<1x8x8xf32>
    tpu.vector_store %arg5[%c0_114, %c0_115, %c0_116], %109 {strides = array<i32>} : memref<1x8x8xf32, #tpu.memory_space<vmem>>, vector<1x8x8xf32>,
    return
  }
  func.func @transform_0(%arg0: i32) -> (i32, i32, i32, i32) {
    %c0_i32 = arith.constant 0 : i32
    %c0_i32_0 = arith.constant 0 : i32
    %c0_i32_1 = arith.constant 0 : i32
    %c0_i32_2 = arith.constant 0 : i32
    return %arg0, %c0_i32, %c0_i32_0, %c0_i32_1 : i32, i32, i32, i32
  }
  func.func @transform_1(%arg0: i32) -> (i32, i32, i32) {
    %c0_i32 = arith.constant 0 : i32
    %c0_i32_0 = arith.constant 0 : i32
    %c0_i32_1 = arith.constant 0 : i32
    %c0_i32_2 = arith.constant 0 : i32
    return %c0_i32, %c0_i32_0, %c0_i32_1 : i32, i32, i32
  }
  func.func @transform_2(%arg0: i32) -> (i32, i32, i32) {
    %c0_i32 = arith.constant 0 : i32
    %c0_i32_0 = arith.constant 0 : i32
    %c0_i32_1 = arith.constant 0 : i32
    return %arg0, %c0_i32, %c0_i32_0 : i32, i32, i32
  }
  func.func @transform_3(%arg0: i32) -> (i32, i32, i32) {
    %c0_i32 = arith.constant 0 : i32
    %c0_i32_0 = arith.constant 0 : i32
    %c0_i32_1 = arith.constant 0 : i32
    return %arg0, %c0_i32, %c0_i32_0 : i32, i32, i32
  }
  func.func @transform_4(%arg0: i32) -> (i32, i32, i32) {
    %c0_i32 = arith.constant 0 : i32
    %c0_i32_0 = arith.constant 0 : i32
    %c0_i32_1 = arith.constant 0 : i32
    return %arg0, %c0_i32, %c0_i32_0 : i32, i32, i32
  }
}

module attributes {stable_mosaic.version = 11 : i64} {
  func.func @_matmul_bn_kernel(%arg0: i32, %arg1: i32, %arg2: memref<128x4xbf16, #tpu.memory_space<vmem>>, %arg3: memref<4x8xbf16, #tpu.memory_space<vmem>>, %arg4: memref<128x8xbf16, #tpu.memory_space<vmem>>, %arg5: memref<1x8x8xf32, #tpu.memory_space<vmem>>, %arg6: memref<1x8x8xf32, #tpu.memory_space<vmem>>, %arg7: memref<128x8xf32, #tpu.memory_space<vmem>>) attributes {dimension_semantics = [#tpu.dimension_semantics<parallel>, #tpu.dimension_semantics<arbitrary>], iteration_bounds = array<i64: 1, 1>, scalar_prefetch = 0 : i64, scratch_operands = 1 : i64, tpu.core_type = #tpu.core_type<tc>, window_params = [{transform_indices = @transform_0, window_bounds = array<i64: 128, 4>}, {transform_indices = @transform_1, window_bounds = array<i64: 4, 8>}, {transform_indices = @transform_2, window_bounds = array<i64: 128, 8>}, {transform_indices = @transform_3, window_bounds = array<i64: 1, 8, 8>}, {transform_indices = @transform_4, window_bounds = array<i64: 1, 8, 8>}]} {
    %c0_i32 = arith.constant 0 : i32
    %0 = arith.cmpi eq, %arg1, %c0_i32 : i32
    %1 = arith.extui %0 : i1 to i32
    %c0_i32_0 = arith.constant 0 : i32
    %2 = arith.cmpi ne, %1, %c0_i32_0 : i32
    scf.if %2 {
      %cst_10 = arith.constant 0.000000e+00 : f32
      %12 = vector.broadcast %cst_10 : f32 to vector<128x8xf32>
      %c0_11 = arith.constant 0 : index
      %c0_12 = arith.constant 0 : index
      %13 = vector.load %arg7[%c0_11, %c0_12] : memref<128x8xf32, #tpu.memory_space<vmem>>, vector<128x8xf32>
      tpu.vector_store %arg7[%c0_11, %c0_12], %12 {strides = array<i32>} : memref<128x8xf32, #tpu.memory_space<vmem>>, vector<128x8xf32>,
    } else {
    }
    %c0 = arith.constant 0 : index
    %c0_1 = arith.constant 0 : index
    %3 = vector.load %arg7[%c0, %c0_1] : memref<128x8xf32, #tpu.memory_space<vmem>>, vector<128x8xf32>
    %c0_2 = arith.constant 0 : index
    %c0_3 = arith.constant 0 : index
    %4 = vector.load %arg2[%c0_2, %c0_3] : memref<128x4xbf16, #tpu.memory_space<vmem>>, vector<128x4xbf16>
    %c0_4 = arith.constant 0 : index
    %c0_5 = arith.constant 0 : index
    %5 = vector.load %arg3[%c0_4, %c0_5] : memref<4x8xbf16, #tpu.memory_space<vmem>>, vector<4x8xbf16>
    %cst = arith.constant dense<0.000000e+00> : vector<128x8xf32>
    %6 = tpu.matmul %4, %5, %cst {dimension_numbers = #tpu.dot_dimension_numbers<[1], [0], [0], [1], [0, 0, 1, 1], [], []>} : vector<128x4xbf16>, vector<4x8xbf16>, vector<128x8xf32> -> vector<128x8xf32>
    %7 = arith.addf %3, %6 : vector<128x8xf32>
    %c0_6 = arith.constant 0 : index
    %c0_7 = arith.constant 0 : index
    %8 = vector.load %arg7[%c0_6, %c0_7] : memref<128x8xf32, #tpu.memory_space<vmem>>, vector<128x8xf32>
    tpu.vector_store %arg7[%c0_6, %c0_7], %7 {strides = array<i32>} : memref<128x8xf32, #tpu.memory_space<vmem>>, vector<128x8xf32>,
    %c0_i32_8 = arith.constant 0 : i32
    %9 = arith.cmpi eq, %arg1, %c0_i32_8 : i32
    %10 = arith.extui %9 : i1 to i32
    %c0_i32_9 = arith.constant 0 : i32
    %11 = arith.cmpi ne, %10, %c0_i32_9 : i32
    scf.if %11 {
      %c0_10 = arith.constant 0 : index
      %c0_11 = arith.constant 0 : index
      %12 = vector.load %arg7[%c0_10, %c0_11] : memref<128x8xf32, #tpu.memory_space<vmem>>, vector<128x8xf32>
      %13 = arith.truncf %12 : vector<128x8xf32> to vector<128x8xbf16>
      %c0_12 = arith.constant 0 : index
      %c0_13 = arith.constant 0 : index
      %14 = vector.load %arg4[%c0_12, %c0_13] : memref<128x8xbf16, #tpu.memory_space<vmem>>, vector<128x8xbf16>
      tpu.vector_store %arg4[%c0_12, %c0_13], %13 {strides = array<i32>} : memref<128x8xbf16, #tpu.memory_space<vmem>>, vector<128x8xbf16>,
      %15 = tpu.iota {dimensions = array<i32: 0>} : vector<128x1xi32>
      %c128_i32 = arith.constant 128 : i32
      %16 = arith.muli %arg0, %c128_i32 : i32
      %17 = vector.broadcast %16 : i32 to vector<128x1xi32>
      %18 = arith.addi %15, %17 : vector<128x1xi32>
      %c128_i32_14 = arith.constant 128 : i32
      %19 = vector.broadcast %c128_i32_14 : i32 to vector<128x1xi32>
      %20 = arith.cmpi slt, %18, %19 : vector<128x1xi32>
      %cst_15 = arith.constant 0.000000e+00 : f32
      %21 = vector.shape_cast %20 : vector<128x1xi1> to vector<128x1xi1>
      %22 = vector.broadcast %21 : vector<128x1xi1> to vector<128x8xi1>
      %23 = vector.broadcast %cst_15 : f32 to vector<128x8xf32>
      %24 = arith.select %22, %12, %23 : vector<128x8xi1>, vector<128x8xf32>
      %25 = tpu.iota {dimensions = array<i32: 0>} : vector<8x1xi32>
      %c0_i32_16 = arith.constant 0 : i32
      %26 = vector.broadcast %c0_i32_16 : i32 to vector<8x1xi32>
      %27 = arith.cmpi eq, %25, %26 : vector<8x1xi32>
      %cst_17 = arith.constant dense<0.000000e+00> : vector<8xf32>
      %28 = vector.multi_reduction <add>, %24, %cst_17 [0] : vector<128x8xf32> to vector<8xf32>
      %29 = vector.shape_cast %28 : vector<8xf32> to vector<1x8xf32>
      %cst_18 = arith.constant 0.000000e+00 : f32
      %30 = vector.shape_cast %27 : vector<8x1xi1> to vector<8x1xi1>
      %31 = vector.broadcast %30 : vector<8x1xi1> to vector<8x8xi1>
      %32 = vector.shape_cast %29 : vector<1x8xf32> to vector<1x8xf32>
      %33 = vector.broadcast %32 : vector<1x8xf32> to vector<8x8xf32>
      %34 = vector.broadcast %cst_18 : f32 to vector<8x8xf32>
      %35 = arith.select %31, %33, %34 : vector<8x8xi1>, vector<8x8xf32>
      %c0_19 = arith.constant 0 : index
      %c0_20 = arith.constant 0 : index
      %c0_21 = arith.constant 0 : index
      %36 = vector.load %arg5[%c0_19, %c0_20, %c0_21] : memref<1x8x8xf32, #tpu.memory_space<vmem>>, vector<1x8x8xf32>
      %37 = vector.shape_cast %36 : vector<1x8x8xf32> to vector<8x8xf32>
      %38 = vector.shape_cast %35 : vector<8x8xf32> to vector<1x8x8xf32>
      tpu.vector_store %arg5[%c0_19, %c0_20, %c0_21], %38 {strides = array<i32>} : memref<1x8x8xf32, #tpu.memory_space<vmem>>, vector<1x8x8xf32>,
      %39 = arith.mulf %24, %24 : vector<128x8xf32>
      %cst_22 = arith.constant dense<0.000000e+00> : vector<8xf32>
      %40 = vector.multi_reduction <add>, %39, %cst_22 [0] : vector<128x8xf32> to vector<8xf32>
      %41 = vector.shape_cast %40 : vector<8xf32> to vector<1x8xf32>
      %cst_23 = arith.constant 0.000000e+00 : f32
      %42 = vector.shape_cast %27 : vector<8x1xi1> to vector<8x1xi1>
      %43 = vector.broadcast %42 : vector<8x1xi1> to vector<8x8xi1>
      %44 = vector.shape_cast %41 : vector<1x8xf32> to vector<1x8xf32>
      %45 = vector.broadcast %44 : vector<1x8xf32> to vector<8x8xf32>
      %46 = vector.broadcast %cst_23 : f32 to vector<8x8xf32>
      %47 = arith.select %43, %45, %46 : vector<8x8xi1>, vector<8x8xf32>
      %c0_24 = arith.constant 0 : index
      %c0_25 = arith.constant 0 : index
      %c0_26 = arith.constant 0 : index
      %48 = vector.load %arg6[%c0_24, %c0_25, %c0_26] : memref<1x8x8xf32, #tpu.memory_space<vmem>>, vector<1x8x8xf32>
      %49 = vector.shape_cast %48 : vector<1x8x8xf32> to vector<8x8xf32>
      %50 = vector.shape_cast %47 : vector<8x8xf32> to vector<1x8x8xf32>
      tpu.vector_store %arg6[%c0_24, %c0_25, %c0_26], %50 {strides = array<i32>} : memref<1x8x8xf32, #tpu.memory_space<vmem>>, vector<1x8x8xf32>,
    } else {
    }
    return
  }
  func.func @transform_0(%arg0: i32, %arg1: i32) -> (i32, i32) {
    %c0_i32 = arith.constant 0 : i32
    return %arg0, %arg1 : i32, i32
  }
  func.func @transform_1(%arg0: i32, %arg1: i32) -> (i32, i32) {
    %c0_i32 = arith.constant 0 : i32
    %c0_i32_0 = arith.constant 0 : i32
    return %arg1, %c0_i32 : i32, i32
  }
  func.func @transform_2(%arg0: i32, %arg1: i32) -> (i32, i32) {
    %c0_i32 = arith.constant 0 : i32
    %c0_i32_0 = arith.constant 0 : i32
    return %arg0, %c0_i32 : i32, i32
  }
  func.func @transform_3(%arg0: i32, %arg1: i32) -> (i32, i32, i32) {
    %c0_i32 = arith.constant 0 : i32
    %c0_i32_0 = arith.constant 0 : i32
    %c0_i32_1 = arith.constant 0 : i32
    return %arg0, %c0_i32, %c0_i32_0 : i32, i32, i32
  }
  func.func @transform_4(%arg0: i32, %arg1: i32) -> (i32, i32, i32) {
    %c0_i32 = arith.constant 0 : i32
    %c0_i32_0 = arith.constant 0 : i32
    %c0_i32_1 = arith.constant 0 : i32
    return %arg0, %c0_i32, %c0_i32_0 : i32, i32, i32
  }
}

module attributes {stable_mosaic.version = 11 : i64} {
  func.func @_bn_add_relu_kernel(%arg0: i32, %arg1: memref<128x8xbf16, #tpu.memory_space<vmem>>, %arg2: memref<128x8xbf16, #tpu.memory_space<vmem>>, %arg3: memref<1x8xf32, #tpu.memory_space<vmem>>, %arg4: memref<1x8xf32, #tpu.memory_space<vmem>>, %arg5: memref<1x8xf32, #tpu.memory_space<vmem>>, %arg6: memref<1x8xf32, #tpu.memory_space<vmem>>, %arg7: memref<128x8xf32, #tpu.memory_space<vmem>>) attributes {dimension_semantics = [#tpu.dimension_semantics<parallel>], iteration_bounds = array<i64: 1>, scalar_prefetch = 0 : i64, scratch_operands = 0 : i64, tpu.core_type = #tpu.core_type<tc>, window_params = [{transform_indices = @transform_0, window_bounds = array<i64: 128, 8>}, {transform_indices = @transform_1, window_bounds = array<i64: 128, 8>}, {pipeline_mode = #tpu.pipeline_mode<synchronous>, transform_indices = @transform_2, window_bounds = array<i64: 1, 8>}, {pipeline_mode = #tpu.pipeline_mode<synchronous>, transform_indices = @transform_3, window_bounds = array<i64: 1, 8>}, {pipeline_mode = #tpu.pipeline_mode<synchronous>, transform_indices = @transform_4, window_bounds = array<i64: 1, 8>}, {pipeline_mode = #tpu.pipeline_mode<synchronous>, transform_indices = @transform_5, window_bounds = array<i64: 1, 8>}, {transform_indices = @transform_6, window_bounds = array<i64: 128, 8>}]} {
    %c0 = arith.constant 0 : index
    %c0_0 = arith.constant 0 : index
    %0 = vector.load %arg1[%c0, %c0_0] : memref<128x8xbf16, #tpu.memory_space<vmem>>, vector<128x8xbf16>
    %1 = arith.extf %0 : vector<128x8xbf16> to vector<128x8xf32>
    %c0_1 = arith.constant 0 : index
    %c0_2 = arith.constant 0 : index
    %2 = vector.load %arg2[%c0_1, %c0_2] : memref<128x8xbf16, #tpu.memory_space<vmem>>, vector<128x8xbf16>
    %3 = arith.extf %2 : vector<128x8xbf16> to vector<128x8xf32>
    %c0_3 = arith.constant 0 : index
    %c0_4 = arith.constant 0 : index
    %4 = vector.load %arg3[%c0_3, %c0_4] : memref<1x8xf32, #tpu.memory_space<vmem>>, vector<1x8xf32>
    %5 = vector.broadcast %4 : vector<1x8xf32> to vector<128x8xf32>
    %6 = arith.mulf %1, %5 : vector<128x8xf32>
    %c0_5 = arith.constant 0 : index
    %c0_6 = arith.constant 0 : index
    %7 = vector.load %arg4[%c0_5, %c0_6] : memref<1x8xf32, #tpu.memory_space<vmem>>, vector<1x8xf32>
    %8 = vector.broadcast %7 : vector<1x8xf32> to vector<128x8xf32>
    %9 = arith.addf %6, %8 : vector<128x8xf32>
    %c0_7 = arith.constant 0 : index
    %c0_8 = arith.constant 0 : index
    %10 = vector.load %arg5[%c0_7, %c0_8] : memref<1x8xf32, #tpu.memory_space<vmem>>, vector<1x8xf32>
    %11 = vector.broadcast %10 : vector<1x8xf32> to vector<128x8xf32>
    %12 = arith.mulf %3, %11 : vector<128x8xf32>
    %13 = arith.addf %9, %12 : vector<128x8xf32>
    %c0_9 = arith.constant 0 : index
    %c0_10 = arith.constant 0 : index
    %14 = vector.load %arg6[%c0_9, %c0_10] : memref<1x8xf32, #tpu.memory_space<vmem>>, vector<1x8xf32>
    %15 = vector.broadcast %14 : vector<1x8xf32> to vector<128x8xf32>
    %16 = arith.addf %13, %15 : vector<128x8xf32>
    %cst = arith.constant 0.000000e+00 : f32
    %17 = vector.broadcast %cst : f32 to vector<128x8xf32>
    %18 = arith.maximumf %16, %17 : vector<128x8xf32>
    %c0_11 = arith.constant 0 : index
    %c0_12 = arith.constant 0 : index
    %19 = vector.load %arg7[%c0_11, %c0_12] : memref<128x8xf32, #tpu.memory_space<vmem>>, vector<128x8xf32>
    tpu.vector_store %arg7[%c0_11, %c0_12], %18 {strides = array<i32>} : memref<128x8xf32, #tpu.memory_space<vmem>>, vector<128x8xf32>,
    return
  }
  func.func @transform_0(%arg0: i32) -> (i32, i32) {
    %c0_i32 = arith.constant 0 : i32
    %c0_i32_0 = arith.constant 0 : i32
    return %arg0, %c0_i32 : i32, i32
  }
  func.func @transform_1(%arg0: i32) -> (i32, i32) {
    %c0_i32 = arith.constant 0 : i32
    %c0_i32_0 = arith.constant 0 : i32
    return %arg0, %c0_i32 : i32, i32
  }
  func.func @transform_2(%arg0: i32) -> (i32, i32) {
    %c0_i32 = arith.constant 0 : i32
    %c0_i32_0 = arith.constant 0 : i32
    %c0_i32_1 = arith.constant 0 : i32
    return %c0_i32, %c0_i32_0 : i32, i32
  }
  func.func @transform_3(%arg0: i32) -> (i32, i32) {
    %c0_i32 = arith.constant 0 : i32
    %c0_i32_0 = arith.constant 0 : i32
    %c0_i32_1 = arith.constant 0 : i32
    return %c0_i32, %c0_i32_0 : i32, i32
  }
  func.func @transform_4(%arg0: i32) -> (i32, i32) {
    %c0_i32 = arith.constant 0 : i32
    %c0_i32_0 = arith.constant 0 : i32
    %c0_i32_1 = arith.constant 0 : i32
    return %c0_i32, %c0_i32_0 : i32, i32
  }
  func.func @transform_5(%arg0: i32) -> (i32, i32) {
    %c0_i32 = arith.constant 0 : i32
    %c0_i32_0 = arith.constant 0 : i32
    %c0_i32_1 = arith.constant 0 : i32
    return %c0_i32, %c0_i32_0 : i32, i32
  }
  func.func @transform_6(%arg0: i32) -> (i32, i32) {
    %c0_i32 = arith.constant 0 : i32
    %c0_i32_0 = arith.constant 0 : i32
    return %arg0, %c0_i32 : i32, i32
  }
}

</mosaic_0001>

<bundles_post_ra>
// kernel: simple_block_forward.6
= control target key start
LH: loop header
LB: loop body
LE: loop exit
PB: predicated region body
PF: predicated region fallthrough
CT: control target
= control target key end

     0   :  { %vm172_vm0 = vcmask 60416   ;;  %s416_s0 = inlined_call_operand.vmem [shape: bf16[128,8], index: 0, kind: input, shape index: {}]   ;;  %s417_s1 = inlined_call_operand.vmem [shape: f32[1,8], index: 1, kind: input, shape index: {}]   ;;  %s418_s2 = inlined_call_operand.vmem [shape: f32[1,8], index: 2, kind: input, shape index: {}]   ;;  %s419_s3 = inlined_call_operand.vmem [shape: bf16[128,8], index: 3, kind: output, shape index: {}]  }
   0x1   :  { %v228_v0 = vld [vmem:[%s416_s0] sm:$0xff]   ;;  %v259_v4 = vld [vmem:[%s416_s0 + $0x8] sm:$0xff]   ;;  %v260_v5 = vld [vmem:[%s416_s0 + $0x10] sm:$0xff]  }
   0x2   :  { %v292_v1 = vld [vmem:[%s417_s1] ss:$0 sm:$0xff]  ;;  %v229_v2 = vunpack.c.l.bf16 %v228_v0  ;;  %v230_v3 = vunpack.c.h.bf16 %v228_v0  ;;  %v261_v6 = vld [vmem:[%s416_s0 + $0x18] sm:$0xff]   ;;  %v233_v8 = vunpack.c.l.bf16 %v259_v4  ;;  %v234_v9 = vunpack.c.h.bf16 %v259_v4  ;;  %v263_v41 = vld [vmem:[%s416_s0 + $0x28] sm:$0xff]  }
   0x3   :  { %v306_v7 = vld [vmem:[%s418_s2] ss:$0 sm:$0xff]  ;;  %v237_v10 = vunpack.c.l.bf16 %v260_v5  ;;  %v238_v11 = vunpack.c.h.bf16 %v260_v5  ;;  %v241_v14 = vunpack.c.l.bf16 %v261_v6  ;;  %v242_v15 = vunpack.c.h.bf16 %v261_v6  ;;  %v264_v42 = vld [vmem:[%s416_s0 + $0x30] sm:$0xff]   ;;  %v265_v47 = vld [vmem:[%s416_s0 + $0x38] sm:$0xff]  }
   0x4   :  { %v53_v12 = vmul.f32 %v229_v2, %v292_v1  ;;  %v54_v13 = vmul.f32 %v230_v3, %v292_v1  ;;  %v55_v16 = vmul.f32 %v233_v8, %v292_v1  ;;  %v56_v17 = vmul.f32 %v234_v9, %v292_v1  ;;  %v262_v36 = vld [vmem:[%s416_s0 + $0x20] sm:$0xff]  }
   0x5   :  { %v57_v18 = vmul.f32 %v237_v10, %v292_v1  ;;  %v58_v19 = vmul.f32 %v238_v11, %v292_v1  ;;  %v59_v22 = vmul.f32 %v241_v14, %v292_v1  ;;  %v60_v23 = vmul.f32 %v242_v15, %v292_v1 }
   0x6   :  { %v76_v20 = vadd.f32 %v306_v7, %v53_v12  ;;  %v77_v21 = vadd.f32 %v306_v7, %v54_v13  ;;  %v78_v24 = vadd.f32 %v306_v7, %v55_v16  ;;  %v79_v25 = vadd.f32 %v306_v7, %v56_v17 }
   0x7   :  { %v80_v26 = vadd.f32 %v306_v7, %v57_v18  ;;  %v81_v27 = vadd.f32 %v306_v7, %v58_v19  ;;  %v82_v30 = vadd.f32 %v306_v7, %v59_v22  ;;  %v83_v31 = vadd.f32 %v306_v7, %v60_v23 }
   0x8   :  { %v92_v28 = vmax.f32 %v76_v20, 0.0  ;;  %v93_v29 = vmax.f32 %v77_v21, 0.0  ;;  %v94_v32 = vmax.f32 %v78_v24, 0.0  ;;  %v95_v33 = vmax.f32 %v79_v25, 0.0 }
   0x9   :  { %v96_v34 = vmax.f32 %v80_v26, 0.0  ;;  %v97_v35 = vmax.f32 %v81_v27, 0.0  ;;  %v98_v39 = vmax.f32 %v82_v30, 0.0  ;;  %v99_v40 = vmax.f32 %v83_v31, 0.0 }
   0xa   :  { %v211_v37 = vpack.c.bf16 %v92_v28, %v92_v28  ;;  %v212_v38 = vpack.c.bf16 %v93_v29, %v93_v29  ;;  %v213_v43 = vpack.c.bf16 %v94_v32, %v94_v32  ;;  %v214_v44 = vpack.c.bf16 %v95_v33, %v95_v33 }
   0xb   :  { %v215_v45 = vpack.c.bf16 %v96_v34, %v96_v34  ;;  %v216_v46 = vpack.c.bf16 %v97_v35, %v97_v35  ;;  %v217_v48 = vpack.c.bf16 %v98_v39, %v98_v39  ;;  %v218_v49 = vpack.c.bf16 %v99_v40, %v99_v40 }
   0xc   :  { %173 = vst.msk [vmem:[%s419_s3] sm:$0xf] %vm172_vm0, %v211_v37  ;;  %174 = vst.msk [vmem:[%s419_s3 + $0x4] sm:$0xf] %vm172_vm0, %v212_v38  ;;  %v245_v50 = vunpack.c.l.bf16 %v262_v36  ;;  %v246_v51 = vunpack.c.h.bf16 %v262_v36  ;;  %v249_v52 = vunpack.c.l.bf16 %v263_v41  ;;  %v250_v53 = vunpack.c.h.bf16 %v263_v41 }
   0xd   :  { %175 = vst.msk [vmem:[%s419_s3 + $0x8] sm:$0xf] %vm172_vm0, %v213_v43  ;;  %176 = vst.msk [vmem:[%s419_s3 + $0xc] sm:$0xf] %vm172_vm0, %v214_v44  ;;  %v253_v54 = vunpack.c.l.bf16 %v264_v42  ;;  %v254_v55 = vunpack.c.h.bf16 %v264_v42  ;;  %v257_v58 = vunpack.c.l.bf16 %v265_v47  ;;  %v258_v59 = vunpack.c.h.bf16 %v265_v47 }
   0xe   :  { %177 = vst.msk [vmem:[%s419_s3 + $0x10] sm:$0xf] %vm172_vm0, %v215_v45  ;;  %178 = vst.msk [vmem:[%s419_s3 + $0x14] sm:$0xf] %vm172_vm0, %v216_v46  ;;  %v61_v56 = vmul.f32 %v245_v50, %v292_v1  ;;  %v62_v57 = vmul.f32 %v246_v51, %v292_v1  ;;  %v63_v60 = vmul.f32 %v249_v52, %v292_v1 }
   0xf   :  { %179 = vst.msk [vmem:[%s419_s3 + $0x18] sm:$0xf] %vm172_vm0, %v217_v48  ;;  %180 = vst.msk [vmem:[%s419_s3 + $0x1c] sm:$0xf] %vm172_vm0, %v218_v49  ;;  %v64_v61 = vmul.f32 %v250_v53, %v292_v1  ;;  %v65_v62 = vmul.f32 %v253_v54, %v292_v1  ;;  %v66_v63 = vmul.f32 %v254_v55, %v292_v1 }
  0x10   :  { %v84_v0 = vadd.f32 %v306_v7, %v61_v56  ;;  %v85_v2 = vadd.f32 %v306_v7, %v62_v57  ;;  %v67_v3 = vmul.f32 %v257_v58, %v292_v1  ;;  %v68_v4 = vmul.f32 %v258_v59, %v292_v1 }
  0x11   :  { %v86_v5 = vadd.f32 %v306_v7, %v63_v60  ;;  %v87_v6 = vadd.f32 %v306_v7, %v64_v61  ;;  %v88_v8 = vadd.f32 %v306_v7, %v65_v62  ;;  %v89_v9 = vadd.f32 %v306_v7, %v66_v63 }
  0x12   :  { %v100_v10 = vmax.f32 %v84_v0, 0.0  ;;  %v101_v11 = vmax.f32 %v85_v2, 0.0  ;;  %v90_v12 = vadd.f32 %v306_v7, %v67_v3  ;;  %v91_v13 = vadd.f32 %v306_v7, %v68_v4 }
  0x13   :  { %v102_v14 = vmax.f32 %v86_v5, 0.0  ;;  %v103_v15 = vmax.f32 %v87_v6, 0.0  ;;  %v104_v16 = vmax.f32 %v88_v8, 0.0  ;;  %v105_v17 = vmax.f32 %v89_v9, 0.0 }
  0x14   :  { %v219_v18 = vpack.c.bf16 %v100_v10, %v100_v10  ;;  %v220_v1 = vpack.c.bf16 %v101_v11, %v101_v11  ;;  %v106_v19 = vmax.f32 %v90_v12, 0.0  ;;  %v107_v20 = vmax.f32 %v91_v13, 0.0 }
  0x15   :  { %v221_v21 = vpack.c.bf16 %v102_v14, %v102_v14  ;;  %v222_v22 = vpack.c.bf16 %v103_v15, %v103_v15  ;;  %v223_v23 = vpack.c.bf16 %v104_v16, %v104_v16  ;;  %v224_v24 = vpack.c.bf16 %v105_v17, %v105_v17 }
  0x16   :  { %181 = vst.msk [vmem:[%s419_s3 + $0x20] sm:$0xf] %vm172_vm0, %v219_v18  ;;  %182 = vst.msk [vmem:[%s419_s3 + $0x24] sm:$0xf] %vm172_vm0, %v220_v1  ;;  %v225_v7 = vpack.c.bf16 %v106_v19, %v106_v19  ;;  %v226_v25 = vpack.c.bf16 %v107_v20, %v107_v20 }
  0x17   :  { %183 = vst.msk [vmem:[%s419_s3 + $0x28] sm:$0xf] %vm172_vm0, %v221_v21  ;;  %184 = vst.msk [vmem:[%s419_s3 + $0x2c] sm:$0xf] %vm172_vm0, %v222_v22 }
  0x18   :  { %185 = vst.msk [vmem:[%s419_s3 + $0x30] sm:$0xf] %vm172_vm0, %v223_v23  ;;  %186 = vst.msk [vmem:[%s419_s3 + $0x34] sm:$0xf] %vm172_vm0, %v224_v24 }
  0x19   :  { %187 = vst.msk [vmem:[%s419_s3 + $0x38] sm:$0xf] %vm172_vm0, %v225_v7  ;;  %188 = vst.msk [vmem:[%s419_s3 + $0x3c] sm:$0xf] %vm172_vm0, %v226_v25 }

// kernel: simple_block_forward.9
= control target key start
LH: loop header
LB: loop body
LE: loop exit
PB: predicated region body
PF: predicated region fallthrough
CT: control target
= control target key end

     0   :  { %vm211_vm0 = vcmask 64512   ;;  %s545_s0 = inlined_call_operand.vmem [shape: bf16[128,8], index: 0, kind: input, shape index: {}]   ;;  %s546_s1 = inlined_call_operand.vmem [shape: bf16[128,8], index: 1, kind: input, shape index: {}]   ;;  %s547_s2 = inlined_call_operand.vmem [shape: f32[1,8], index: 2, kind: input, shape index: {}]   ;;  %s548_s3 = inlined_call_operand.vmem [shape: f32[1,8], index: 3, kind: input, shape index: {}]   ;;  %s549_s4 = inlined_call_operand.vmem [shape: f32[1,8], index: 4, kind: input, shape index: {}]   ;;  %s550_s5 = inlined_call_operand.vmem [shape: f32[1,8], index: 5, kind: input, shape index: {}]   ;;  %s551_s6 = inlined_call_operand.vmem [shape: f32[128,8], index: 6, kind: output, shape index: {}]  }
   0x1   :  { %v237_v0 = vld [vmem:[%s545_s0] sm:$0xff]   ;;  %v300_v9 = vld [vmem:[%s545_s0 + $0x8] sm:$0xff]   ;;  %v301_v11 = vld [vmem:[%s545_s0 + $0x10] sm:$0xff]  }
   0x2   :  { %v269_v1 = vld [vmem:[%s546_s1] sm:$0xff]   ;;  %v238_v3 = vunpack.c.l.bf16 %v237_v0  ;;  %v239_v7 = vunpack.c.h.bf16 %v237_v0  ;;  %v307_v10 = vld [vmem:[%s546_s1 + $0x8] sm:$0xff]   ;;  %v308_v16 = vld [vmem:[%s546_s1 + $0x10] sm:$0xff]   ;;  %v242_v17 = vunpack.c.l.bf16 %v300_v9  ;;  %v243_v19 = vunpack.c.h.bf16 %v300_v9 }
   0x3   :  { %v358_v2 = vld [vmem:[%s547_s2] ss:$0 sm:$0xff]  ;;  %v270_v4 = vunpack.c.l.bf16 %v269_v1  ;;  %v271_v8 = vunpack.c.h.bf16 %v269_v1  ;;  %v274_v18 = vunpack.c.l.bf16 %v307_v10  ;;  %v275_v20 = vunpack.c.h.bf16 %v307_v10  ;;  %v302_v30 = vld [vmem:[%s545_s0 + $0x18] sm:$0xff]  }
   0x4   :  { %v363_v5 = vld [vmem:[%s548_s3] ss:$0 sm:$0xff]  ;;  %v94_v12 = vmul.f32 %v238_v3, %v358_v2  ;;  %v95_v14 = vmul.f32 %v239_v7, %v358_v2  ;;  %v246_v23 = vunpack.c.l.bf16 %v301_v11  ;;  %v278_v24 = vunpack.c.l.bf16 %v308_v16  ;;  %v309_v39 = vld [vmem:[%s546_s1 + $0x18] sm:$0xff]   ;;  %v304_v3 = vld [vmem:[%s545_s0 + $0x28] sm:$0xff]  }
   0x5   :  { %v368_v6 = vld [vmem:[%s549_s4] ss:$0 sm:$0xff]  ;;  %v96_v26 = vmul.f32 %v242_v17, %v358_v2  ;;  %v97_v28 = vmul.f32 %v243_v19, %v358_v2  ;;  %v247_v37 = vunpack.c.h.bf16 %v301_v11  ;;  %v279_v38 = vunpack.c.h.bf16 %v308_v16 }
   0x6   :  { %v140_v13 = vmul.f32 %v270_v4, %v368_v6  ;;  %v141_v15 = vmul.f32 %v271_v8, %v368_v6  ;;  %v117_v21 = vadd.f32 %v363_v5, %v94_v12  ;;  %v118_v22 = vadd.f32 %v363_v5, %v95_v14  ;;  %v391_v25 = vld [vmem:[%s550_s5] ss:$0 sm:$0xff]  ;;  %v311_v14 = vld [vmem:[%s546_s1 + $0x28] sm:$0xff]  }
   0x7   :  { %v142_v27 = vmul.f32 %v274_v18, %v368_v6  ;;  %v143_v29 = vmul.f32 %v275_v20, %v368_v6  ;;  %v98_v33 = vmul.f32 %v246_v23, %v358_v2  ;;  %v144_v34 = vmul.f32 %v278_v24, %v368_v6  ;;  %v303_v56 = vld [vmem:[%s545_s0 + $0x20] sm:$0xff]  }
   0x8   :  { %v156_v31 = vadd.f32 %v140_v13, %v117_v21  ;;  %v157_v32 = vadd.f32 %v141_v15, %v118_v22  ;;  %v119_v35 = vadd.f32 %v363_v5, %v96_v26  ;;  %v120_v36 = vadd.f32 %v363_v5, %v97_v28  ;;  %v310_v61 = vld [vmem:[%s546_s1 + $0x20] sm:$0xff]   ;;  %v305_v28 = vld [vmem:[%s545_s0 + $0x30] sm:$0xff]  }
   0x9   :  { %v121_v42 = vadd.f32 %v363_v5, %v98_v33  ;;  %v250_v43 = vunpack.c.l.bf16 %v302_v30  ;;  %v99_v46 = vmul.f32 %v247_v37, %v358_v2  ;;  %v145_v47 = vmul.f32 %v279_v38, %v368_v6  ;;  %v312_v33 = vld [vmem:[%s546_s1 + $0x30] sm:$0xff]  }
   0xa   :  { %v179_v40 = vadd.f32 %v391_v25, %v156_v31  ;;  %v180_v41 = vadd.f32 %v391_v25, %v157_v32  ;;  %v158_v44 = vadd.f32 %v142_v27, %v119_v35  ;;  %v159_v45 = vadd.f32 %v143_v29, %v120_v36 }
   0xb   :  { %v160_v50 = vadd.f32 %v144_v34, %v121_v42  ;;  %v282_v51 = vunpack.c.l.bf16 %v309_v39  ;;  %v122_v54 = vadd.f32 %v363_v5, %v99_v46  ;;  %v100_v55 = vmul.f32 %v250_v43, %v358_v2 }
   0xc   :  { %v195_v48 = vmax.f32 %v179_v40, 0.0  ;;  %v196_v49 = vmax.f32 %v180_v41, 0.0  ;;  %v181_v52 = vadd.f32 %v391_v25, %v158_v44  ;;  %v182_v53 = vadd.f32 %v391_v25, %v159_v45 }
   0xd   :  { %v183_v57 = vadd.f32 %v391_v25, %v160_v50  ;;  %v146_v58 = vmul.f32 %v282_v51, %v368_v6  ;;  %v251_v59 = vunpack.c.h.bf16 %v302_v30  ;;  %v283_v60 = vunpack.c.h.bf16 %v309_v39  ;;  %v306_v50 = vld [vmem:[%s545_s0 + $0x38] sm:$0xff]  }
   0xe   :  { %212 = vst.msk [vmem:[%s551_s6] sm:$0xff] %vm211_vm0, %v195_v48  ;;  %213 = vst.msk [vmem:[%s551_s6 + $0x8] sm:$0xff] %vm211_vm0, %v196_v49  ;;  %v197_v62 = vmax.f32 %v181_v52, 0.0  ;;  %v198_v63 = vmax.f32 %v182_v53, 0.0  ;;  %v161_v0 = vadd.f32 %v145_v47, %v122_v54  ;;  %v123_v1 = vadd.f32 %v363_v5, %v100_v55  ;;  %v313_v51 = vld [vmem:[%s546_s1 + $0x38] sm:$0xff]  }
   0xf   :  { %v199_v4 = vmax.f32 %v183_v57, 0.0  ;;  %v101_v7 = vmul.f32 %v251_v59, %v358_v2  ;;  %v147_v8 = vmul.f32 %v283_v60, %v368_v6  ;;  %v254_v9 = vunpack.c.l.bf16 %v303_v56 }
  0x10   :  { %214 = vst.msk [vmem:[%s551_s6 + $0x10] sm:$0xff] %vm211_vm0, %v197_v62  ;;  %215 = vst.msk [vmem:[%s551_s6 + $0x18] sm:$0xff] %vm211_vm0, %v198_v63  ;;  %v184_v10 = vadd.f32 %v391_v25, %v161_v0  ;;  %v162_v11 = vadd.f32 %v146_v58, %v123_v1  ;;  %v286_v12 = vunpack.c.l.bf16 %v310_v61  ;;  %v255_v13 = vunpack.c.h.bf16 %v303_v56 }
  0x11   :  { %216 = vst.msk [vmem:[%s551_s6 + $0x20] sm:$0xff] %vm211_vm0, %v199_v4  ;;  %v124_v15 = vadd.f32 %v363_v5, %v101_v7  ;;  %v102_v16 = vmul.f32 %v254_v9, %v358_v2  ;;  %v287_v17 = vunpack.c.h.bf16 %v310_v61  ;;  %v258_v18 = vunpack.c.l.bf16 %v304_v3 }
  0x12   :  { %v200_v19 = vmax.f32 %v184_v10, 0.0  ;;  %v185_v20 = vadd.f32 %v391_v25, %v162_v11  ;;  %v148_v21 = vmul.f32 %v286_v12, %v368_v6  ;;  %v103_v22 = vmul.f32 %v255_v13, %v358_v2 }
  0x13   :  { %v163_v23 = vadd.f32 %v147_v8, %v124_v15  ;;  %v125_v24 = vadd.f32 %v363_v5, %v102_v16  ;;  %v149_v26 = vmul.f32 %v287_v17, %v368_v6  ;;  %v290_v27 = vunpack.c.l.bf16 %v311_v14 }
  0x14   :  { %217 = vst.msk [vmem:[%s551_s6 + $0x28] sm:$0xff] %vm211_vm0, %v200_v19  ;;  %v201_v29 = vmax.f32 %v185_v20, 0.0  ;;  %v126_v30 = vadd.f32 %v363_v5, %v103_v22  ;;  %v104_v31 = vmul.f32 %v258_v18, %v358_v2  ;;  %v259_v32 = vunpack.c.h.bf16 %v304_v3 }
  0x15   :  { %v186_v34 = vadd.f32 %v391_v25, %v163_v23  ;;  %v164_v35 = vadd.f32 %v148_v21, %v125_v24  ;;  %v150_v36 = vmul.f32 %v290_v27, %v368_v6  ;;  %v291_v37 = vunpack.c.h.bf16 %v311_v14 }
  0x16   :  { %218 = vst.msk [vmem:[%s551_s6 + $0x30] sm:$0xff] %vm211_vm0, %v201_v29  ;;  %v165_v38 = vadd.f32 %v149_v26, %v126_v30  ;;  %v127_v39 = vadd.f32 %v363_v5, %v104_v31  ;;  %v105_v40 = vmul.f32 %v259_v32, %v358_v2  ;;  %v262_v41 = vunpack.c.l.bf16 %v305_v28 }
  0x17   :  { %v202_v42 = vmax.f32 %v186_v34, 0.0  ;;  %v187_v43 = vadd.f32 %v391_v25, %v164_v35  ;;  %v151_v44 = vmul.f32 %v291_v37, %v368_v6  ;;  %v294_v45 = vunpack.c.l.bf16 %v312_v33 }
  0x18   :  { %v188_v46 = vadd.f32 %v391_v25, %v165_v38  ;;  %v166_v47 = vadd.f32 %v150_v36, %v127_v39  ;;  %v128_v48 = vadd.f32 %v363_v5, %v105_v40  ;;  %v106_v49 = vmul.f32 %v262_v41, %v358_v2 }
  0x19   :  { %219 = vst.msk [vmem:[%s551_s6 + $0x38] sm:$0xff] %vm211_vm0, %v202_v42  ;;  %v203_v52 = vmax.f32 %v187_v43, 0.0  ;;  %v152_v53 = vmul.f32 %v294_v45, %v368_v6  ;;  %v263_v54 = vunpack.c.h.bf16 %v305_v28  ;;  %v295_v55 = vunpack.c.h.bf16 %v312_v33 }
  0x1a   :  { %v204_v56 = vmax.f32 %v188_v46, 0.0  ;;  %v189_v57 = vadd.f32 %v391_v25, %v166_v47  ;;  %v167_v58 = vadd.f32 %v151_v44, %v128_v48  ;;  %v129_v59 = vadd.f32 %v363_v5, %v106_v49 }
  0x1b   :  { %220 = vst.msk [vmem:[%s551_s6 + $0x40] sm:$0xff] %vm211_vm0, %v203_v52  ;;  %v107_v60 = vmul.f32 %v263_v54, %v358_v2  ;;  %v153_v61 = vmul.f32 %v295_v55, %v368_v6  ;;  %v266_v62 = vunpack.c.l.bf16 %v306_v50  ;;  %v298_v63 = vunpack.c.l.bf16 %v313_v51 }
  0x1c   :  { %221 = vst.msk [vmem:[%s551_s6 + $0x48] sm:$0xff] %vm211_vm0, %v204_v56  ;;  %v205_v0 = vmax.f32 %v189_v57, 0.0  ;;  %v190_v1 = vadd.f32 %v391_v25, %v167_v58  ;;  %v168_v3 = vadd.f32 %v152_v53, %v129_v59  ;;  %v267_v4 = vunpack.c.h.bf16 %v306_v50 }
  0x1d   :  { %v130_v7 = vadd.f32 %v363_v5, %v107_v60  ;;  %v108_v8 = vmul.f32 %v266_v62, %v358_v2  ;;  %v154_v9 = vmul.f32 %v298_v63, %v368_v6  ;;  %v299_v10 = vunpack.c.h.bf16 %v313_v51 }
  0x1e   :  { %222 = vst.msk [vmem:[%s551_s6 + $0x50] sm:$0xff] %vm211_vm0, %v205_v0  ;;  %v206_v11 = vmax.f32 %v190_v1, 0.0  ;;  %v191_v12 = vadd.f32 %v391_v25, %v168_v3  ;;  %v109_v13 = vmul.f32 %v267_v4, %v358_v2 }
  0x1f   :  { %v169_v14 = vadd.f32 %v153_v61, %v130_v7  ;;  %v131_v15 = vadd.f32 %v363_v5, %v108_v8  ;;  %v155_v16 = vmul.f32 %v299_v10, %v368_v6 }
  0x20   :  { %223 = vst.msk [vmem:[%s551_s6 + $0x58] sm:$0xff] %vm211_vm0, %v206_v11  ;;  %v207_v17 = vmax.f32 %v191_v12, 0.0  ;;  %v132_v18 = vadd.f32 %v363_v5, %v109_v13 }
  0x21   :  { %v192_v19 = vadd.f32 %v391_v25, %v169_v14  ;;  %v170_v20 = vadd.f32 %v154_v9, %v131_v15 }
  0x22   :  { %224 = vst.msk [vmem:[%s551_s6 + $0x60] sm:$0xff] %vm211_vm0, %v207_v17  ;;  %v171_v2 = vadd.f32 %v155_v16, %v132_v18 }
  0x23   :  { %v208_v21 = vmax.f32 %v192_v19, 0.0  ;;  %v193_v6 = vadd.f32 %v391_v25, %v170_v20 }
  0x24   :  { %v194_v22 = vadd.f32 %v391_v25, %v171_v2 }
  0x25   :  { %225 = vst.msk [vmem:[%s551_s6 + $0x68] sm:$0xff] %vm211_vm0, %v208_v21  ;;  %v209_v5 = vmax.f32 %v193_v6, 0.0 }
  0x26   :  { %v210_v23 = vmax.f32 %v194_v22, 0.0 }
  0x27   :  { %226 = vst.msk [vmem:[%s551_s6 + $0x70] sm:$0xff] %vm211_vm0, %v209_v5 }
  0x28   :  { %227 = vst.msk [vmem:[%s551_s6 + $0x78] sm:$0xff] %vm211_vm0, %v210_v23 }

// kernel: simple_block_forward.8
= control target key start
LH: loop header
LB: loop body
LE: loop exit
PB: predicated region body
PF: predicated region fallthrough
CT: control target
= control target key end

     0   :  { %vm134_vm0 = vcmask 1041408   ;;  %vm109_vm1 = vcmask 31744   ;;  %vm19_vm2 = vcmask 64512   ;;  %v664_v1 = vmov 0.0   ;;  %s899_s1 = inlined_call_operand.vmem [shape: bf16[4,8], index: 1, kind: input, shape index: {}]   ;;  %s900_s0 = inlined_call_operand.vmem [shape: bf16[128,4], index: 0, kind: input, shape index: {}]   ;;  %s901_s2 = inlined_call_operand.vmem [shape: bf16[128,8], index: 2, kind: output, shape index: {0}]   ;;  %s902_s3 = inlined_call_operand.vmem [shape: f32[1,8,8], index: 3, kind: output, shape index: {1}]   ;;  %s903_s4 = inlined_call_operand.vmem [shape: f32[1,8,8], index: 4, kind: output, shape index: {2}]  }
   0x1   :  { %v68_v0 = vld [vmem:[%s899_s1] sm:$0x3]  ;;  %22 = vst.msk [vmem:[#allocation2 + $0x10] sm:$0xff] %vm19_vm2, %v664_v1  ;;  %20 = vst.msk [vmem:[#allocation2] sm:$0xff] %vm19_vm2, %v664_v1  ;;  %v657_v4 = vld [vmem:[%s900_s0 + $0x8] sm:$0xff]   ;;  %vm351_vm3 = vcmask 60416  }
   0x2   :  { %21 = vst.msk [vmem:[#allocation2 + $0x8] sm:$0xff] %vm19_vm2, %v664_v1  ;;  %23 = vst.msk [vmem:[#allocation2 + $0x18] sm:$0xff] %vm19_vm2, %v664_v1  ;;  %653 = vmatprep.subr.msk.bf16.mxu0 %vm134_vm0, %v68_v0  ;;  %v136_v2 = vsel %vm134_vm0, %v68_v0, 0  ;;  %v656_v3 = vld [vmem:[%s900_s0] sm:$0xff]   ;;  %654 = vmatprep.subr.msk.bf16.mxu1 %vm134_vm0, %v68_v0  ;;  %v658_v5 = vld [vmem:[%s900_s0 + $0x10] sm:$0xff]  }
   0x3   :  { %24 = vst.msk [vmem:[#allocation2 + $0x20] sm:$0xff] %vm19_vm2, %v664_v1  ;;  %25 = vst.msk [vmem:[#allocation2 + $0x28] sm:$0xff] %vm19_vm2, %v664_v1  ;;  %634 = vmatpush3.bf16.msra.mxu0 %v136_v2  ;;  %652 = vmatpush3.bf16.msra.mxu1 %v136_v2  ;;  %v660_v6 = vld [vmem:[%s900_s0 + $0x20] sm:$0xff]   ;;  %v661_v7 = vld [vmem:[%s900_s0 + $0x28] sm:$0xff]  }
   0x4   :  { %26 = vst.msk [vmem:[#allocation2 + $0x30] sm:$0xff] %vm19_vm2, %v664_v1  ;;  %27 = vst.msk [vmem:[#allocation2 + $0x38] sm:$0xff] %vm19_vm2, %v664_v1  ;;  %635 = vmatprep.mubr.msk.bf16.mxu0 %vm109_vm1, %v656_v3  ;;  %643 = vmatprep.mubr.msk.bf16.mxu1 %vm109_vm1, %v660_v6  ;;  %v662_v8 = vld [vmem:[%s900_s0 + $0x30] sm:$0xff]   ;;  %v659_v9 = vld [vmem:[%s900_s0 + $0x18] sm:$0xff]  }
   0x5   :  { %28 = vst.msk [vmem:[#allocation2 + $0x40] sm:$0xff] %vm19_vm2, %v664_v1  ;;  %29 = vst.msk [vmem:[#allocation2 + $0x48] sm:$0xff] %vm19_vm2, %v664_v1  ;;  %v663_v10 = vld [vmem:[%s900_s0 + $0x38] sm:$0xff]  }
   0x6   :  { %30 = vst.msk [vmem:[#allocation2 + $0x50] sm:$0xff] %vm19_vm2, %v664_v1  ;;  %31 = vst.msk [vmem:[#allocation2 + $0x58] sm:$0xff] %vm19_vm2, %v664_v1  ;;  %636 = vmatmul.mubr.msk.bf16.vlgmr.msra.gmra.mxu0 %vm109_vm1, %v657_v4  ;;  %644 = vmatmul.mubr.msk.bf16.vlgmr.msra.gmra.mxu1 %vm109_vm1, %v661_v7 }
   0x7   :  { %32 = vst.msk [vmem:[#allocation2 + $0x60] sm:$0xff] %vm19_vm2, %v664_v1  ;;  %33 = vst.msk [vmem:[#allocation2 + $0x68] sm:$0xff] %vm19_vm2, %v664_v1  ;;  %639 = vmatprep.mubr.msk.bf16.mxu0 %vm109_vm1, %v658_v5  ;;  %647 = vmatprep.mubr.msk.bf16.mxu1 %vm109_vm1, %v662_v8 }
   0x8   :  { %34 = vst.msk [vmem:[#allocation2 + $0x70] sm:$0xff] %vm19_vm2, %v664_v1  ;;  %35 = vst.msk [vmem:[#allocation2 + $0x78] sm:$0xff] %vm19_vm2, %v664_v1  ;;  %v38_v11 = vld [vmem:[#allocation2 + $0x10] sm:$0xff]  ;;  %v36_v13 = vld [vmem:[#allocation2] sm:$0xff] }
   0x9   :  { %v39_v17 = vld [vmem:[#allocation2 + $0x18] sm:$0xff]  ;;  %v37_v22 = vld [vmem:[#allocation2 + $0x8] sm:$0xff] }
   0xa   :  { %v40_v34 = vld [vmem:[#allocation2 + $0x20] sm:$0xff]  ;;  %v41_v57 = vld [vmem:[#allocation2 + $0x28] sm:$0xff] }
   0xb   :  { %v42_v28 = vld [vmem:[#allocation2 + $0x30] sm:$0xff]  ;;  %v43_v44 = vld [vmem:[#allocation2 + $0x38] sm:$0xff] }
   0xc   :  { %v44_v20 = vld [vmem:[#allocation2 + $0x40] sm:$0xff]  ;;  %v45_v32 = vld [vmem:[#allocation2 + $0x48] sm:$0xff] }
   0xd   :  { %v46_v15 = vld [vmem:[#allocation2 + $0x50] sm:$0xff]  ;;  %v47_v26 = vld [vmem:[#allocation2 + $0x58] sm:$0xff] }
   0xe   :  { %640 = vmatmul.mubr.msk.bf16.gmra.mxu0 %vm109_vm1, %v659_v9  ;;  %648 = vmatmul.mubr.msk.bf16.gmra.mxu1 %vm109_vm1, %v663_v10 }
   0xf   :  { %v50_v38 = vld [vmem:[#allocation2 + $0x70] sm:$0xff] }
  0xc6   :  { %v637_v12 = vpop.f32.mrf.mxu0  ;;  %v645_v19 = vpop.f32.mrf.mxu1 }
  0xc7   :  { %v237_v14 = vadd.f32 %v637_v12, %v38_v11  ;;  %v245_v23 = vadd.f32 %v645_v19, %v46_v15 }
  0xc8   :  { %v172_v16 = vpop.f32.mrf.mxu0  ;;  %v204_v25 = vpop.f32.mrf.mxu1 }
  0xc9   :  { %254 = vst.msk [vmem:[#allocation2 + $0x10] sm:$0xff] %vm19_vm2, %v237_v14  ;;  %v235_v18 = vadd.f32 %v172_v16, %v36_v13  ;;  %262 = vst.msk [vmem:[#allocation2 + $0x50] sm:$0xff] %vm19_vm2, %v245_v23  ;;  %v243_v29 = vadd.f32 %v204_v25, %v44_v20 }
  0xca   :  { %v638_v21 = vpop.f32.mrf.mxu0  ;;  %v646_v31 = vpop.f32.mrf.mxu1 }
  0xcb   :  { %252 = vst.msk [vmem:[#allocation2] sm:$0xff] %vm19_vm2, %v235_v18  ;;  %v238_v24 = vadd.f32 %v638_v21, %v39_v17  ;;  %260 = vst.msk [vmem:[#allocation2 + $0x40] sm:$0xff] %vm19_vm2, %v243_v29  ;;  %v246_v35 = vadd.f32 %v646_v31, %v47_v26  ;;  %v48_v26 = vld [vmem:[#allocation2 + $0x60] sm:$0xff]  ;;  %v49_v31 = vld [vmem:[#allocation2 + $0x68] sm:$0xff] }
  0xcc   :  { %v175_v27 = vpop.f32.mrf.mxu0  ;;  %v207_v37 = vpop.f32.mrf.mxu1 }
  0xcd   :  { %255 = vst.msk [vmem:[#allocation2 + $0x18] sm:$0xff] %vm19_vm2, %v238_v24  ;;  %v236_v30 = vadd.f32 %v175_v27, %v37_v22  ;;  %263 = vst.msk [vmem:[#allocation2 + $0x58] sm:$0xff] %vm19_vm2, %v246_v35  ;;  %v244_v41 = vadd.f32 %v207_v37, %v45_v32 }
  0xce   :  { %v641_v33 = vpop.f32.mrf.mxu0  ;;  %v649_v45 = vpop.f32.mrf.mxu1 }
  0xcf   :  { %253 = vst.msk [vmem:[#allocation2 + $0x8] sm:$0xff] %vm19_vm2, %v236_v30  ;;  %v241_v36 = vadd.f32 %v641_v33, %v42_v28  ;;  %261 = vst.msk [vmem:[#allocation2 + $0x48] sm:$0xff] %vm19_vm2, %v244_v41  ;;  %v249_v48 = vadd.f32 %v649_v45, %v50_v38  ;;  %v51_v30 = vld [vmem:[#allocation2 + $0x78] sm:$0xff] }
  0xd0   :  { %v273_v39 = vld [vmem:[#allocation2 + $0x10] sm:$0xff]  ;;  %v188_v40 = vpop.f32.mrf.mxu0  ;;  %v220_v59 = vpop.f32.mrf.mxu1 }
  0xd1   :  { %v610_v42 = vpack.c.bf16 %v273_v39, %v273_v39  ;;  %258 = vst.msk [vmem:[#allocation2 + $0x30] sm:$0xff] %vm19_vm2, %v241_v36  ;;  %v239_v43 = vadd.f32 %v188_v40, %v40_v34  ;;  %v758_v50 = vld [vmem:[#allocation2 + $0x50] sm:$0xff]  ;;  %266 = vst.msk [vmem:[#allocation2 + $0x70] sm:$0xff] %vm19_vm2, %v249_v48  ;;  %v511_v60 = vmul.f32 %v273_v39, %v273_v39  ;;  %v471_v4 = vsel %vm19_vm2, %v273_v39, 0.0 }
  0xd2   :  { %v271_v46 = vld [vmem:[#allocation2] sm:$0xff]  ;;  %v642_v47 = vpop.f32.mrf.mxu0  ;;  %v618_v52 = vpack.c.bf16 %v758_v50, %v758_v50  ;;  %v650_v14 = vpop.f32.mrf.mxu1  ;;  %v247_v38 = vadd.f32 %v220_v59, %v48_v26 }
  0xd3   :  { %354 = vst.msk [vmem:[%s901_s2 + $0x8] sm:$0xf] %vm351_vm3, %v610_v42  ;;  %v608_v49 = vpack.c.bf16 %v271_v46, %v271_v46  ;;  %v242_v53 = vadd.f32 %v642_v47, %v43_v44  ;;  %v509_v54 = vmul.f32 %v271_v46, %v271_v46  ;;  %v767_v56 = vld [vmem:[#allocation2 + $0x40] sm:$0xff]  ;;  %v468_v63 = vsel %vm19_vm2, %v271_v46, 0.0 }
  0xd4   :  { %256 = vst.msk [vmem:[#allocation2 + $0x20] sm:$0xff] %vm19_vm2, %v239_v43  ;;  %v274_v51 = vld [vmem:[#allocation2 + $0x18] sm:$0xff]  ;;  %v191_v58 = vpop.f32.mrf.mxu0  ;;  %v616_v62 = vpack.c.bf16 %v767_v56, %v767_v56  ;;  %v528_v18 = vsel %vm19_vm2, %v511_v60, 0.0  ;;  %v223_v32 = vpop.f32.mrf.mxu1  ;;  %v250_v39 = vadd.f32 %v650_v14, %v51_v30  ;;  %264 = vst.msk [vmem:[#allocation2 + $0x60] sm:$0xff] %vm19_vm2, %v247_v38 }
  0xd5   :  { %352 = vst.msk [vmem:[%s901_s2] sm:$0xf] %vm351_vm3, %v608_v49  ;;  %v611_v55 = vpack.c.bf16 %v274_v51, %v274_v51  ;;  %362 = vst.msk [vmem:[%s901_s2 + $0x28] sm:$0xf] %vm351_vm3, %v618_v52  ;;  %v782_v3 = vld [vmem:[#allocation2 + $0x58] sm:$0xff]  ;;  %v240_v7 = vadd.f32 %v191_v58, %v41_v57  ;;  %v525_v9 = vsel %vm19_vm2, %v509_v54, 0.0  ;;  %v512_v10 = vmul.f32 %v274_v51, %v274_v51 }
  0xd6   :  { %v272_v61 = vld [vmem:[#allocation2 + $0x8] sm:$0xff]  ;;  %259 = vst.msk [vmem:[#allocation2 + $0x38] sm:$0xff] %vm19_vm2, %v242_v53  ;;  %v619_v8 = vpack.c.bf16 %v782_v3, %v782_v3  ;;  %v473_v19 = vsel %vm19_vm2, %v274_v51, 0.0  ;;  %v248_v40 = vadd.f32 %v223_v32, %v49_v31  ;;  %267 = vst.msk [vmem:[#allocation2 + $0x78] sm:$0xff] %vm19_vm2, %v250_v39  ;;  %v517_v57 = vmul.f32 %v767_v56, %v767_v56 }
  0xd7   :  { %355 = vst.msk [vmem:[%s901_s2 + $0xc] sm:$0xf] %vm351_vm3, %v611_v55  ;;  %v609_v0 = vpack.c.bf16 %v272_v61, %v272_v61  ;;  %v469_v1 = vsel %vm19_vm2, %v272_v61, 0.0  ;;  %v510_v2 = vmul.f32 %v272_v61, %v272_v61  ;;  %360 = vst.msk [vmem:[%s901_s2 + $0x20] sm:$0xf] %vm351_vm3, %v616_v62  ;;  %v797_v13 = vld [vmem:[#allocation2 + $0x48] sm:$0xff] }
  0xd8   :  { %v470_v5 = vadd.f32 %v469_v1, %v468_v63  ;;  %v277_v6 = vld [vmem:[#allocation2 + $0x30] sm:$0xff]  ;;  %257 = vst.msk [vmem:[#allocation2 + $0x28] sm:$0xff] %vm19_vm2, %v240_v7  ;;  %v617_v25 = vpack.c.bf16 %v797_v13, %v797_v13  ;;  %v530_v27 = vsel %vm19_vm2, %v512_v10, 0.0  ;;  %265 = vst.msk [vmem:[#allocation2 + $0x68] sm:$0xff] %vm19_vm2, %v248_v40  ;;  %v483_v61 = vsel %vm19_vm2, %v767_v56, 0.0 }
  0xd9   :  { %353 = vst.msk [vmem:[%s901_s2 + $0x4] sm:$0xf] %vm351_vm3, %v609_v0  ;;  %v526_v11 = vsel %vm19_vm2, %v510_v2, 0.0  ;;  %v614_v12 = vpack.c.bf16 %v277_v6, %v277_v6  ;;  %363 = vst.msk [vmem:[%s901_s2 + $0x2c] sm:$0xf] %vm351_vm3, %v619_v8  ;;  %v810_v21 = vld [vmem:[#allocation2 + $0x70] sm:$0xff]  ;;  %v515_v43 = vmul.f32 %v277_v6, %v277_v6  ;;  %v518_v62 = vmul.f32 %v797_v13, %v797_v13 }
  0xda   :  { %v472_v15 = vadd.f32 %v471_v4, %v470_v5  ;;  %v527_v16 = vadd.f32 %v526_v11, %v525_v9  ;;  %v622_v29 = vpack.c.bf16 %v810_v21, %v810_v21  ;;  %361 = vst.msk [vmem:[%s901_s2 + $0x24] sm:$0xf] %vm351_vm3, %v617_v25  ;;  %v479_v48 = vsel %vm19_vm2, %v277_v6, 0.0 }
  0xdb   :  { %v275_v17 = vld [vmem:[#allocation2 + $0x20] sm:$0xff]  ;;  %358 = vst.msk [vmem:[%s901_s2 + $0x18] sm:$0xf] %vm351_vm3, %v614_v12  ;;  %v536_v54 = vsel %vm19_vm2, %v515_v43, 0.0  ;;  %v519_v63 = vmul.f32 %v758_v50, %v758_v50  ;;  %v540_v6 = vsel %vm19_vm2, %v517_v57, 0.0  ;;  %v485_v7 = vsel %vm19_vm2, %v797_v13, 0.0 }
  0xdc   :  { %v612_v20 = vpack.c.bf16 %v275_v17, %v275_v17  ;;  %v529_v22 = vadd.f32 %v528_v18, %v527_v16  ;;  %v474_v23 = vadd.f32 %v473_v19, %v472_v15  ;;  %v513_v24 = vmul.f32 %v275_v17, %v275_v17  ;;  %366 = vst.msk [vmem:[%s901_s2 + $0x38] sm:$0xf] %vm351_vm3, %v622_v29  ;;  %v283_v2 = vld [vmem:[#allocation2 + $0x60] sm:$0xff] }
  0xdd   :  { %v278_v28 = vld [vmem:[#allocation2 + $0x38] sm:$0xff]  ;;  %v475_v33 = vsel %vm19_vm2, %v275_v17, 0.0  ;;  %v620_v8 = vpack.c.bf16 %v283_v2, %v283_v2  ;;  %v487_v11 = vsel %vm19_vm2, %v758_v50, 0.0  ;;  %v520_v12 = vmul.f32 %v782_v3, %v782_v3 }
  0xde   :  { %356 = vst.msk [vmem:[%s901_s2 + $0x10] sm:$0xf] %vm351_vm3, %v612_v20  ;;  %v531_v34 = vadd.f32 %v530_v27, %v529_v22  ;;  %v615_v35 = vpack.c.bf16 %v278_v28, %v278_v28  ;;  %v476_v36 = vadd.f32 %v475_v33, %v474_v23  ;;  %v532_v37 = vsel %vm19_vm2, %v513_v24, 0.0  ;;  %v286_v4 = vld [vmem:[#allocation2 + $0x78] sm:$0xff] }
  0xdf   :  { %v276_v42 = vld [vmem:[#allocation2 + $0x28] sm:$0xff]  ;;  %v516_v49 = vmul.f32 %v278_v28, %v278_v28  ;;  %v481_v55 = vsel %vm19_vm2, %v278_v28, 0.0  ;;  %v623_v9 = vpack.c.bf16 %v286_v4, %v286_v4  ;;  %v542_v14 = vsel %vm19_vm2, %v518_v62, 0.0  ;;  %364 = vst.msk [vmem:[%s901_s2 + $0x30] sm:$0xf] %vm351_vm3, %v620_v8 }
  0xe0   :  { %359 = vst.msk [vmem:[%s901_s2 + $0x1c] sm:$0xf] %vm351_vm3, %v615_v35  ;;  %v533_v41 = vadd.f32 %v532_v37, %v531_v34  ;;  %v613_v44 = vpack.c.bf16 %v276_v42, %v276_v42  ;;  %v477_v45 = vsel %vm19_vm2, %v276_v42, 0.0  ;;  %v514_v46 = vmul.f32 %v276_v42, %v276_v42  ;;  %v284_v5 = vld [vmem:[#allocation2 + $0x68] sm:$0xff] }
  0xe1   :  { %v478_v47 = vadd.f32 %v477_v45, %v476_v36  ;;  %v538_v60 = vsel %vm19_vm2, %v516_v49, 0.0  ;;  %367 = vst.msk [vmem:[%s901_s2 + $0x3c] sm:$0xf] %vm351_vm3, %v623_v9  ;;  %v621_v13 = vpack.c.bf16 %v284_v5, %v284_v5  ;;  %v544_v50 = vsel %vm19_vm2, %v519_v63, 0.0 }
  0xe2   :  { %357 = vst.msk [vmem:[%s901_s2 + $0x14] sm:$0xf] %vm351_vm3, %v613_v44  ;;  %v534_v51 = vsel %vm19_vm2, %v514_v46, 0.0  ;;  %v489_v17 = vsel %vm19_vm2, %v782_v3, 0.0  ;;  %v521_v18 = vmul.f32 %v283_v2, %v283_v2  ;;  %v546_v22 = vsel %vm19_vm2, %v520_v12, 0.0 }
  0xe3   :  { %v480_v52 = vadd.f32 %v479_v48, %v478_v47  ;;  %v535_v53 = vadd.f32 %v534_v51, %v533_v41  ;;  %365 = vst.msk [vmem:[%s901_s2 + $0x34] sm:$0xf] %vm351_vm3, %v621_v13  ;;  %v491_v23 = vsel %vm19_vm2, %v283_v2, 0.0  ;;  %v522_v24 = vmul.f32 %v284_v5, %v284_v5 }
  0xe4   :  { %v523_v27 = vmul.f32 %v810_v21, %v810_v21  ;;  %v548_v3 = vsel %vm19_vm2, %v521_v18, 0.0  ;;  %v493_v28 = vsel %vm19_vm2, %v284_v5, 0.0  ;;  %v495_v31 = vsel %vm19_vm2, %v810_v21, 0.0 }
  0xe5   :  { %v537_v58 = vadd.f32 %v536_v54, %v535_v53  ;;  %v482_v59 = vadd.f32 %v481_v55, %v480_v52  ;;  %v524_v32 = vmul.f32 %v286_v4, %v286_v4  ;;  %v550_v33 = vsel %vm19_vm2, %v522_v24, 0.0 }
  0xe6   :  { %v552_v36 = vsel %vm19_vm2, %v523_v27, 0.0  ;;  %v497_v37 = vsel %vm19_vm2, %v286_v4, 0.0  ;;  %v368_v43 = vlaneseq }
  0xe7   :  { %v484_v0 = vadd.f32 %v483_v61, %v482_v59  ;;  %v539_v1 = vadd.f32 %v538_v60, %v537_v58  ;;  %v554_v40 = vsel %vm19_vm2, %v524_v32, 0.0 }
  0xe8   :  { %v369_v47 = vshrl.u32 %v368_v43, 7 }
  0xe9   :  { %v486_v10 = vadd.f32 %v485_v7, %v484_v0  ;;  %v541_v56 = vadd.f32 %v540_v6, %v539_v1 }
  0xea   :  { %vm467_vm4 = vcmp.eq.s32.totalorder %v369_v47, 0 }
  0xeb   :  { %v488_v15 = vadd.f32 %v487_v11, %v486_v10  ;;  %v543_v16 = vadd.f32 %v542_v14, %v541_v56 }
  0xed   :  { %v545_v19 = vadd.f32 %v544_v50, %v543_v16  ;;  %v490_v20 = vadd.f32 %v489_v17, %v488_v15 }
  0xef   :  { %v492_v25 = vadd.f32 %v491_v23, %v490_v20  ;;  %v547_v26 = vadd.f32 %v546_v22, %v545_v19 }
  0xf1   :  { %v549_v29 = vadd.f32 %v548_v3, %v547_v26  ;;  %v494_v30 = vadd.f32 %v493_v28, %v492_v25 }
  0xf3   :  { %v496_v34 = vadd.f32 %v495_v31, %v494_v30  ;;  %v551_v35 = vadd.f32 %v550_v33, %v549_v29 }
  0xf5   :  { %v498_v38 = vadd.f32 %v497_v37, %v496_v34  ;;  %v553_v39 = vadd.f32 %v552_v36, %v551_v35 }
  0xf7   :  { %v499_v41 = vrot.slane %v498_v38, 4  ;;  %v555_v42 = vadd.f32 %v554_v40, %v553_v39 }
  0xf9   :  { %v500_v44 = vadd.f32 %v499_v41, %v498_v38  ;;  %v556_v45 = vrot.slane %v555_v42, 4 }
  0xfb   :  { %v501_v46 = vrot.slane %v500_v44, 2  ;;  %v557_v21 = vadd.f32 %v556_v45, %v555_v42 }
  0xfd   :  { %v502_v48 = vadd.f32 %v501_v46, %v500_v44  ;;  %v558_v49 = vrot.slane %v557_v21, 2 }
  0xff   :  { %v503_v51 = vrot.slane %v502_v48, 1  ;;  %v559_v52 = vadd.f32 %v558_v49, %v557_v21 }
 0x101   :  { %v504_v53 = vadd.f32 %v503_v51, %v502_v48  ;;  %v560_v54 = vrot.slane %v559_v52, 1 }
 0x103   :  { %v507_v55 = vsel %vm467_vm4, %v504_v53, 0.0  ;;  %v561_v57 = vadd.f32 %v560_v54, %v559_v52 }
 0x104   :  { %508 = vst.msk [vmem:[%s902_s3] sm:$0xff] %vm19_vm2, %v507_v55 }
 0x105   :  { %v562_v58 = vsel %vm467_vm4, %v561_v57, 0.0 }
 0x106   :  { %563 = vst.msk [vmem:[%s903_s4] sm:$0xff] %vm19_vm2, %v562_v58 }

// kernel: simple_block_forward.7
= control target key start
LH: loop header
LB: loop body
LE: loop exit
PB: predicated region body
PF: predicated region fallthrough
CT: control target
= control target key end

     0   :  { %s2701_s15 = smov 0   ;;  %s3130_s0 = inlined_call_operand.vmem [shape: bf16[2,8,8,8], index: 0, kind: input, shape index: {}]   ;;  %s3131_s1 = inlined_call_operand.vmem [shape: bf16[9,8,8], index: 1, kind: input, shape index: {}]   ;;  %s3132_s2 = inlined_call_operand.vmem [shape: bf16[2,64,8], index: 2, kind: output, shape index: {0}]   ;;  %s3133_s3 = inlined_call_operand.vmem [shape: f32[2,8,8], index: 3, kind: output, shape index: {1}]   ;;  %s3134_s4 = inlined_call_operand.vmem [shape: f32[2,8,8], index: 4, kind: output, shape index: {2}]  }
   0x1 LB: > { %s2362_s16 = sadd.s32 4294967295, %s2672_s15   ;;  %p2366_p0 = scmp.ge.s32.totalorder %s2672_s15, 1  ;;  %s2672_s15 = sphi %s2701_s15, %s15_s15  }
   0x2   : > { %p167_p1 = scmp.lt.s32.totalorder %s2672_s15, 3 }
   0x4   : > { %p168_p2 = pnand %p2366_p0, %p167_p1 }
   0x5   : > { %p2714_p3 = scmp.lt.s32.totalorder (!%p168_p2), %s2362_s16, 1 }
   0x6   : > { %171 = sbr.rel (%p168_p2) target bundleno = 376 (0x178), region = 28 }
   0xb   : > { %v408_v0 = vld [vmem:[%s3131_s1] sm:$0xf]  ;;  %vm433_vm0 = vcmask 1043456   ;;  %vm220_vm1 = vcmask 60416   ;;  %v2674_v2 = vmov 0   ;;  %vm268_vm2 = vcmask 64512  }
   0xc   : > { %2634 = vmatprep.subr.msk.bf16.mxu0 %vm433_vm0, %v408_v0  ;;  %2635 = vmatprep.subr.msk.bf16.mxu1 %vm433_vm0, %v408_v0  ;;  %v435_v1 = vsel %vm433_vm0, %v408_v0, 0  ;;  %221 = vst.msk [vmem:[#allocation2] sm:$0xf] %vm220_vm1, %v2674_v2  ;;  %222 = vst.msk [vmem:[#allocation2 + $0x4] sm:$0xf] %vm220_vm1, %v2674_v2  ;;  %s3141_s16 = smov (!%p2714_p3, %s2362_s16), 1 }
   0xd   : > { %224 = vst.msk [vmem:[#allocation2 + $0xc] sm:$0xf] %vm220_vm1, %v2674_v2  ;;  %225 = vst.msk [vmem:[#allocation2 + $0x10] sm:$0xf] %vm220_vm1, %v2674_v2  ;;  %2543 = vmatpush3.bf16.msra.mxu0 %v435_v1  ;;  %2633 = vmatpush3.bf16.msra.mxu1 %v435_v1  ;;  %v2389_v3 = vld [vmem:[%s3131_s1 + $0x4] sm:$0xf] }
   0xe   : > { %223 = vst.msk [vmem:[#allocation2 + $0x8] sm:$0xf] %vm220_vm1, %v2674_v2  ;;  %226 = vst.msk [vmem:[#allocation2 + $0x14] sm:$0xf] %vm220_vm1, %v2674_v2  ;;  %v2398_v4 = vld [vmem:[%s3131_s1 + $0x8] sm:$0xf]  ;;  %2636 = vmatprep.subr.msk.bf16.mxu1 %vm433_vm0, %v2389_v3 }
   0xf   : > { %227 = vst.msk [vmem:[#allocation2 + $0x18] sm:$0xf] %vm220_vm1, %v2674_v2  ;;  %228 = vst.msk [vmem:[#allocation2 + $0x1c] sm:$0xf] %vm220_vm1, %v2674_v2  ;;  %2637 = vmatprep.subr.msk.bf16.mxu0 %vm433_vm0, %v2398_v4  ;;  %v2675_v5 = vmov 0.0   ;;  %s2487_s24 = sshll.u32 %s3141_s16, 5 }
  0x10   : > { %229 = vst.msk [vmem:[#allocation2 + $0x20] sm:$0xf] %vm220_vm1, %v2674_v2  ;;  %230 = vst.msk [vmem:[#allocation2 + $0x24] sm:$0xf] %vm220_vm1, %v2674_v2  ;;  %s2779_s27 = scalar_lea.vmem %s3130_s0, %s2487_s24  ;;  %vm301_vm3 = vsmask.f32 256  ;;  %s3080_s18 = scalar_lea.vmem %s3132_s2, %s2487_s24 }
  0x11   : > { %231 = vst.msk [vmem:[#allocation2 + $0x28] sm:$0xf] %vm220_vm1, %v2674_v2  ;;  %232 = vst.msk [vmem:[#allocation2 + $0x2c] sm:$0xf] %vm220_vm1, %v2674_v2  ;;  %vm302_vm4 = vsmask.f32 4368 }
  0x12   : > { %233 = vst.msk [vmem:[#allocation2 + $0x30] sm:$0xf] %vm220_vm1, %v2674_v2  ;;  %234 = vst.msk [vmem:[#allocation2 + $0x34] sm:$0xf] %vm220_vm1, %v2674_v2  ;;  %v251_v6 = vld [vmem:[%s2779_s27] sm:$0xf] }
  0x13   : > { %235 = vst.msk [vmem:[#allocation2 + $0x38] sm:$0xf] %vm220_vm1, %v2674_v2  ;;  %236 = vst.msk [vmem:[#allocation2 + $0x3c] sm:$0xf] %vm220_vm1, %v2674_v2  ;;  %v254_v7 = vld [vmem:[%s2779_s27 + $0xc] sm:$0xf] }
  0x14   : > { %237 = vst.msk [vmem:[#allocation2 + $0x40] sm:$0xf] %vm220_vm1, %v2674_v2  ;;  %238 = vst.msk [vmem:[#allocation2 + $0x44] sm:$0xf] %vm220_vm1, %v2674_v2  ;;  %v255_v8 = vld [vmem:[%s2779_s27 + $0x10] sm:$0xf] }
  0x15   : > { %239 = vst.msk [vmem:[#allocation2 + $0x48] sm:$0xf] %vm220_vm1, %v2674_v2  ;;  %240 = vst.msk [vmem:[#allocation2 + $0x4c] sm:$0xf] %vm220_vm1, %v2674_v2  ;;  %v252_v9 = vld [vmem:[%s2779_s27 + $0x4] sm:$0xf] }
  0x16   : > { %241 = vst.msk [vmem:[#allocation2 + $0x50] sm:$0xf] %vm220_vm1, %v2674_v2  ;;  %242 = vst.msk [vmem:[#allocation2 + $0x54] sm:$0xf] %vm220_vm1, %v2674_v2  ;;  %v253_v10 = vld [vmem:[%s2779_s27 + $0x8] sm:$0xf] }
  0x17   : > { %243 = vst.msk [vmem:[#allocation2 + $0x58] sm:$0xf] %vm220_vm1, %v2674_v2  ;;  %244 = vst.msk [vmem:[#allocation2 + $0x5c] sm:$0xf] %vm220_vm1, %v2674_v2  ;;  %v256_v11 = vld [vmem:[%s2779_s27 + $0x14] sm:$0xf] }
  0x18   : > { %245 = vst.msk [vmem:[#allocation2 + $0x60] sm:$0xf] %vm220_vm1, %v2674_v2  ;;  %246 = vst.msk [vmem:[#allocation2 + $0x64] sm:$0xf] %vm220_vm1, %v2674_v2  ;;  %v2793_v12 = vld [vmem:[%s3131_s1 + $0xc] sm:$0xf] }
  0x19   : > { %247 = vst.msk [vmem:[#allocation2 + $0x68] sm:$0xf] %vm220_vm1, %v2674_v2  ;;  %248 = vst.msk [vmem:[#allocation2 + $0x6c] sm:$0xf] %vm220_vm1, %v2674_v2  ;;  %v277_v13 = vld [vmem:[#allocation2] sm:$0x8] }
  0x1a   : > { %249 = vst.msk [vmem:[#allocation2 + $0x70] sm:$0xf] %vm220_vm1, %v2674_v2  ;;  %250 = vst.msk [vmem:[#allocation2 + $0x74] sm:$0xf] %vm220_vm1, %v2674_v2  ;;  %v278_v14 = vld [vmem:[#allocation2 + $0x4] sm:$0xf] }
  0x1b   : > { %271 = vst.msk [vmem:[#allocation3 + $0x10] sm:$0xff] %vm268_vm2, %v2675_v5  ;;  %269 = vst.msk [vmem:[#allocation3] sm:$0xff] %vm268_vm2, %v2675_v5  ;;  %v279_v15 = vld [vmem:[#allocation2 + $0xc] sm:$0x8]  ;;  %v305_v16 = vshrl.u32 %v277_v13, 16  ;;  %v310_v17 = vshrl.u32 %v278_v14, 16 }
  0x1c   : > { %270 = vst.msk [vmem:[#allocation3 + $0x8] sm:$0xff] %vm268_vm2, %v2675_v5  ;;  %272 = vst.msk [vmem:[#allocation3 + $0x18] sm:$0xff] %vm268_vm2, %v2675_v5  ;;  %v313_v18 = vshll.u32 %v278_v14, 16  ;;  %v318_v19 = vshrl.u32 %v279_v15, 16  ;;  %v285_v20 = vld [vmem:[#allocation2 + $0x30] sm:$0x8] }
  0x1d   : > { %273 = vst.msk [vmem:[#allocation3 + $0x20] sm:$0xff] %vm268_vm2, %v2675_v5  ;;  %274 = vst.msk [vmem:[#allocation3 + $0x28] sm:$0xff] %vm268_vm2, %v2675_v5  ;;  %v287_v21 = vld [vmem:[#allocation2 + $0x3c] sm:$0x8]  ;;  %v357_v22 = vshrl.u32 %v285_v20, 16  ;;  %v2373_v24 = vrot.slane %v305_v16, 11 }
  0x1e   : > { %275 = vst.msk [vmem:[#allocation3 + $0x30] sm:$0xff] %vm268_vm2, %v2675_v5  ;;  %276 = vst.msk [vmem:[#allocation3 + $0x38] sm:$0xff] %vm268_vm2, %v2675_v5  ;;  %v281_v23 = vld [vmem:[#allocation2 + $0x18] sm:$0x8]  ;;  %v312_v25 = vrot.slane %v310_v17, 7  ;;  %v370_v26 = vshrl.u32 %v287_v21, 16 }
  0x1f   : > { %260 = vst.msk [vmem:[#allocation2 + $0x10] sm:$0xf] %vm220_vm1, %v251_v6  ;;  %263 = vst.msk [vmem:[#allocation2 + $0x34] sm:$0xf] %vm220_vm1, %v254_v7  ;;  %v283_v27 = vld [vmem:[#allocation2 + $0x24] sm:$0x8] }
  0x20   : > { %264 = vst.msk [vmem:[#allocation2 + $0x40] sm:$0xf] %vm220_vm1, %v255_v8  ;;  %261 = vst.msk [vmem:[#allocation2 + $0x1c] sm:$0xf] %vm220_vm1, %v252_v9  ;;  %v2799_v28 = vsel %vm433_vm0, %v2389_v3, 0  ;;  %v2374_v30 = vrot.slane %v318_v19, 11  ;;  %v315_v35 = vor.u32 %v313_v18, %v312_v25 }
  0x21   : > { %262 = vst.msk [vmem:[#allocation2 + $0x28] sm:$0xf] %vm220_vm1, %v253_v10  ;;  %265 = vst.msk [vmem:[#allocation2 + $0x4c] sm:$0xf] %vm220_vm1, %v256_v11  ;;  %v331_v31 = vshrl.u32 %v281_v23, 16  ;;  %v2809_v33 = vsel %vm433_vm0, %v2398_v4, 0 }
  0x22   : > { %vm2803_vm5 = vmor %vm301_vm3, %vm302_vm4  ;;  %v257_v32 = vld [vmem:[%s2779_s27 + $0x18] sm:$0xf]  ;;  %v2813_v34 = vsel %vm433_vm0, %v2793_v12, 0  ;;  %v2377_v36 = vrot.slane %v357_v22, 11  ;;  %v2378_v37 = vrot.slane %v370_v26, 11  ;;  %v344_v38 = vshrl.u32 %v283_v27, 16 }
  0x23   : > { %266 = vst.msk [vmem:[#allocation2 + $0x58] sm:$0xf] %vm220_vm1, %v257_v32  ;;  %v289_v42 = vld [vmem:[#allocation2 + $0x48] sm:$0x8]  ;;  %v316_v43 = vsel %vm2803_vm5, %v2373_v24, %v315_v35  ;;  %v2375_v52 = vrot.slane %v331_v31, 11  ;;  %s2371_s19 = sshll.u32 %s3141_s16, 3 }
  0x24   : > { %v2376_v59 = vrot.slane %v344_v38, 11  ;;  %v291_v1 = vld [vmem:[#allocation2 + $0x54] sm:$0x8]  ;;  %v383_v2 = vshrl.u32 %v289_v42, 16  ;;  %vm676_vm6 = vsmask.f32 3328  ;;  %s214_s22 = scalar_lea.vmem %s3133_s3, %s2371_s19  ;;  %s218_s25 = scalar_lea.vmem %s3134_s4, %s2371_s19 }
  0x25   : > { %vm677_vm7 = vsmask.f32 7440  ;;  %v652_v17 = vld [vmem:[#allocation2 + $0x4] sm:$0xf]  ;;  %v396_v20 = vshrl.u32 %v291_v1, 16 }
  0x26   : > { %v280_v39 = vld [vmem:[#allocation2 + $0x10] sm:$0xf]  ;;  %v286_v40 = vld [vmem:[#allocation2 + $0x34] sm:$0xf]  ;;  %v2379_v11 = vrot.slane %v383_v2, 11  ;;  %vm2852_vm8 = vmor %vm676_vm6, %vm677_vm7 }
  0x27   : > { %v288_v41 = vld [vmem:[#allocation2 + $0x40] sm:$0xf]  ;;  %v323_v44 = vshrl.u32 %v280_v39, 16  ;;  %v326_v45 = vshll.u32 %v280_v39, 16  ;;  %v362_v46 = vshrl.u32 %v286_v40, 16  ;;  %v365_v48 = vshll.u32 %v286_v40, 16 }
  0x28   : > { %v282_v47 = vld [vmem:[#allocation2 + $0x1c] sm:$0xf]  ;;  %v375_v49 = vshrl.u32 %v288_v41, 16  ;;  %v378_v50 = vshll.u32 %v288_v41, 16  ;;  %v284_v51 = vld [vmem:[#allocation2 + $0x28] sm:$0xf] }
  0x29   : > { %v325_v53 = vrot.slane %v323_v44, 7  ;;  %v364_v54 = vrot.slane %v362_v46, 7  ;;  %v336_v55 = vshrl.u32 %v282_v47, 16  ;;  %v339_v56 = vshll.u32 %v282_v47, 16  ;;  %v290_v57 = vld [vmem:[#allocation2 + $0x4c] sm:$0xf] }
  0x2a   : > { %v377_v58 = vrot.slane %v375_v49, 7  ;;  %v349_v60 = vshrl.u32 %v284_v51, 16  ;;  %v352_v61 = vshll.u32 %v284_v51, 16  ;;  %v292_v5 = vld [vmem:[#allocation2 + $0x58] sm:$0xf]  ;;  %v388_v6 = vshrl.u32 %v290_v57, 16 }
  0x2b   : > { %v328_v62 = vor.u32 %v326_v45, %v325_v53  ;;  %v367_v63 = vor.u32 %v365_v48, %v364_v54  ;;  %v338_v0 = vrot.slane %v336_v55, 7  ;;  %v391_v7 = vshll.u32 %v290_v57, 16  ;;  %v653_v22 = vld [vmem:[#allocation2 + $0x8] sm:$0x1]  ;;  %v654_v23 = vld [vmem:[#allocation2 + $0x10] sm:$0xf] }
  0x2c   : > { %v380_v3 = vor.u32 %v378_v50, %v377_v58  ;;  %v351_v4 = vrot.slane %v349_v60, 7  ;;  %v390_v16 = vrot.slane %v388_v6, 7  ;;  %v401_v21 = vshrl.u32 %v292_v5, 16  ;;  %v655_v27 = vld [vmem:[#allocation2 + $0x14] sm:$0x1] }
  0x2d   : > { %v329_v8 = vsel %vm2803_vm5, %v2374_v30, %v328_v62  ;;  %v368_v9 = vsel %vm2803_vm5, %v2377_v36, %v367_v63  ;;  %v341_v10 = vor.u32 %v339_v56, %v338_v0  ;;  %v404_v26 = vshll.u32 %v292_v5, 16  ;;  %v2424_v31 = vld [vmem:[%s3131_s1 + $0x10] sm:$0xf]  ;;  %v656_v38 = vld [vmem:[#allocation2 + $0x1c] sm:$0xf] }
  0x2e   : > { %v2381_v13 = vcombine.low %v316_v43, %v329_v8  ;;  %v381_v14 = vsel %vm2803_vm5, %v2378_v37, %v380_v3  ;;  %v354_v15 = vor.u32 %v352_v61, %v351_v4  ;;  %v393_v25 = vor.u32 %v391_v7, %v390_v16  ;;  %v657_v43 = vld [vmem:[#allocation2 + $0x20] sm:$0x1]  ;;  %v2654_v45 = vld [vmem:[#allocation2 + $0x4] ss:$12 sps:$4 sm:$0xff]   ;;  %v658_v49 = vld [vmem:[#allocation2 + $0x28] sm:$0xf] }
  0x2f   : > { %v2383_v18 = vcombine.low %v368_v9, %v381_v14  ;;  %v342_v19 = vsel %vm2803_vm5, %v2375_v52, %v341_v10  ;;  %v680_v30 = vshrl.u32 %v652_v17, 16  ;;  %v2380_v35 = vrot.slane %v396_v20, 11  ;;  %v659_v58 = vld [vmem:[#allocation2 + $0x2c] sm:$0x1]  ;;  %v660_v8 = vld [vmem:[#allocation2 + $0x34] sm:$0xf] }
  0x30   : > { %2544 = vmatprep.mubr.msk.bf16.mxu0 %vm268_vm2, %v2381_v13  ;;  %v355_v24 = vsel %vm2803_vm5, %v2376_v59, %v354_v15  ;;  %v403_v36 = vrot.slane %v401_v21, 7  ;;  %v683_v37 = vshll.u32 %v652_v17, 16  ;;  %v394_v39 = vsel %vm2803_vm5, %v2379_v11, %v393_v25  ;;  %v2843_v59 = vld [vmem:[%s3131_s1 + $0x14] sm:$0xf]  ;;  %v661_v15 = vld [vmem:[#allocation2 + $0x38] sm:$0x1] }
  0x31   : > { %2548 = vmatprep.mubr.msk.bf16.mxu1 %vm268_vm2, %v2383_v18  ;;  %v2382_v32 = vcombine.low %v342_v19, %v355_v24  ;;  %v682_v40 = vrot.slane %v680_v30, 4  ;;  %v689_v41 = vshll.u32 %v653_v22, 16  ;;  %v694_v42 = vshrl.u32 %v654_v23, 16  ;;  %v662_v18 = vld [vmem:[#allocation2 + $0x40] sm:$0xf]  ;;  %v297_v61 = vld [vmem:[#allocation3 + $0x20] sm:$0xff] }
  0x32   : > { %v406_v44 = vor.u32 %v404_v26, %v403_v36  ;;  %v685_v46 = vrot.slane %v683_v37, 5  ;;  %v697_v47 = vshll.u32 %v654_v23, 16  ;;  %v703_v48 = vshll.u32 %v655_v27, 16  ;;  %v663_v22 = vld [vmem:[#allocation2 + $0x44] sm:$0x1] }
  0x33   : > { %2545 = vmatmul.mubr.msk.bf16.vlgmr.msra.gmra.mxu0 %vm268_vm2, %v2382_v32  ;;  %v691_v50 = vrot.slane %v689_v41, 5  ;;  %v696_v51 = vrot.slane %v694_v42, 4  ;;  %v708_v52 = vshrl.u32 %v656_v38, 16  ;;  %v711_v53 = vshll.u32 %v656_v38, 16  ;;  %v664_v25 = vld [vmem:[#allocation2 + $0x4c] sm:$0xf] }
  0x34   : > { %2563 = vmatpush3.bf16.msra.mxu0 %v2809_v33  ;;  %v407_v54 = vsel %vm2803_vm5, %v2380_v35, %v406_v44  ;;  %v686_v55 = vor.u32 %v685_v46, %v682_v40  ;;  %v699_v56 = vrot.slane %v697_v47, 5  ;;  %v705_v57 = vrot.slane %v703_v48, 5  ;;  %v2848_v33 = vld [vmem:[%s3131_s1 + $0x18] sm:$0xf]  ;;  %v2656_v30 = vld [vmem:[#allocation2 + $0x34] ss:$12 sps:$4 sm:$0xff]  }
  0x35   : > { %2639 = vmatprep.subr.msk.bf16.mxu0 %vm433_vm0, %v2424_v31  ;;  %v2384_v60 = vcombine.low %v394_v39, %v407_v54  ;;  %v710_v62 = vrot.slane %v708_v52, 4  ;;  %v713_v63 = vrot.slane %v711_v53, 5  ;;  %v717_v0 = vshll.u32 %v657_v43, 16  ;;  %v665_v39 = vld [vmem:[#allocation2 + $0x50] sm:$0x1] }
  0x36   : > { %v687_v1 = vrot.slane %v686_v55, 4  ;;  %v700_v2 = vor.u32 %v699_v56, %v696_v51  ;;  %v722_v3 = vshrl.u32 %v658_v49, 16  ;;  %v725_v4 = vshll.u32 %v658_v49, 16  ;;  %v666_v43 = vld [vmem:[#allocation2 + $0x58] sm:$0xf] }
  0x37   : > { %2549 = vmatmul.mubr.msk.bf16.vlgmr.msra.gmra.mxu1 %vm268_vm2, %v2384_v60  ;;  %v714_v5 = vor.u32 %v713_v63, %v710_v62  ;;  %v719_v6 = vrot.slane %v717_v0, 5  ;;  %v731_v7 = vshll.u32 %v659_v58, 16  ;;  %v2858_v9 = vsel %vm433_vm0, %v2424_v31, 0  ;;  %v667_v48 = vld [vmem:[#allocation2 + $0x5c] sm:$0x1] }
  0x38   : > { %2553 = vmatpush3.bf16.msra.mxu1 %v2799_v28  ;;  %2554 = vmatprep.mubr.msk.bf16.mxu1 %vm268_vm2, %v2654_v45  ;;  %v692_v10 = vsel %vm2852_vm8, %v687_v1, %v691_v50  ;;  %v701_v11 = vrot.slane %v700_v2, 4  ;;  %v724_v13 = vrot.slane %v722_v3, 4  ;;  %v727_v14 = vrot.slane %v725_v4, 5  ;;  %v901_v50 = vld [vmem:[#allocation2 + $0xc] sm:$0x8] }
  0x39   : > { %2638 = vmatprep.subr.msk.bf16.mxu1 %vm433_vm0, %v2793_v12  ;;  %v715_v16 = vrot.slane %v714_v5, 4  ;;  %v733_v17 = vrot.slane %v731_v7, 5  ;;  %v2868_v19 = vsel %vm433_vm0, %v2843_v59, 0  ;;  %v2872_v28 = vsel %vm433_vm0, %v2848_v33, 0  ;;  %v2655_v12 = vld [vmem:[#allocation2 + $0x1c] ss:$12 sps:$4 sm:$0xff]  }
  0x3a   : > { %v706_v20 = vsel %vm2852_vm8, %v701_v11, %v705_v57  ;;  %v728_v21 = vor.u32 %v727_v14, %v724_v13  ;;  %v736_v23 = vshrl.u32 %v660_v8, 16  ;;  %v739_v24 = vshll.u32 %v660_v8, 16  ;;  %v902_v60 = vld [vmem:[#allocation2 + $0x10] sm:$0xf]  ;;  %v2657_v62 = vld [vmem:[#allocation2 + $0x4c] ss:$12 sps:$4 sm:$0xff]  }
  0x3b   : > { %v2399_v26 = vcombine.low %v692_v10, %v706_v20  ;;  %v720_v27 = vsel %vm2852_vm8, %v715_v16, %v719_v6  ;;  %v745_v31 = vshll.u32 %v661_v15, 16  ;;  %v750_v32 = vshrl.u32 %v662_v18, 16  ;;  %v903_v2 = vld [vmem:[#allocation2 + $0x18] sm:$0x8]  ;;  %v904_v7 = vld [vmem:[#allocation2 + $0x1c] sm:$0xf] }
  0x3c   : > { %v729_v35 = vrot.slane %v728_v21, 4  ;;  %v738_v36 = vrot.slane %v736_v23, 4  ;;  %v741_v37 = vrot.slane %v739_v24, 5  ;;  %v753_v38 = vshll.u32 %v662_v18, 16  ;;  %v905_v8 = vld [vmem:[#allocation2 + $0x24] sm:$0x8] }
  0x3d   : > { %2564 = vmatprep.mubr.msk.bf16.mxu0 %vm268_vm2, %v2399_v26  ;;  %v747_v40 = vrot.slane %v745_v31, 5  ;;  %v752_v41 = vrot.slane %v750_v32, 4  ;;  %v759_v42 = vshll.u32 %v663_v22, 16  ;;  %v764_v44 = vshrl.u32 %v664_v25, 16  ;;  %v906_v15 = vld [vmem:[#allocation2 + $0x28] sm:$0xf] }
  0x3e   : > { %v734_v45 = vsel %vm2852_vm8, %v729_v35, %v733_v17  ;;  %v742_v46 = vor.u32 %v741_v37, %v738_v36  ;;  %v755_v47 = vrot.slane %v753_v38, 5  ;;  %v767_v49 = vshll.u32 %v664_v25, 16  ;;  %v907_v20 = vld [vmem:[#allocation2 + $0x30] sm:$0x8]  ;;  %v908_v24 = vld [vmem:[#allocation2 + $0x34] sm:$0xf] }
  0x3f   : > { %2555 = vmatmul.mubr.msk.bf16.vlgmr.msra.gmra.mxu1 %vm268_vm2, %v2655_v12  ;;  %v2400_v51 = vcombine.low %v720_v27, %v734_v45  ;;  %v761_v52 = vrot.slane %v759_v42, 5  ;;  %v766_v53 = vrot.slane %v764_v44, 4  ;;  %v773_v54 = vshll.u32 %v665_v39, 16  ;;  %v258_v25 = vld [vmem:[%s2779_s27 + $0x1c] sm:$0xf] }
  0x40   : > { %2573 = vmatpush3.bf16.msra.mxu1 %v2813_v34  ;;  %2558 = vmatprep.mubr.msk.bf16.mxu1 %vm268_vm2, %v2656_v30  ;;  %v743_v55 = vrot.slane %v742_v46, 4  ;;  %v756_v56 = vor.u32 %v755_v47, %v752_v41  ;;  %v769_v57 = vrot.slane %v767_v49, 5  ;;  %v778_v58 = vshrl.u32 %v666_v43, 16  ;;  %v910_v31 = vld [vmem:[#allocation2 + $0x40] sm:$0xf] }
  0x41   : > { %2565 = vmatmul.mubr.msk.bf16.vlgmr.msra.gmra.mxu0 %vm268_vm2, %v2400_v51  ;;  %v775_v63 = vrot.slane %v773_v54, 5  ;;  %v781_v0 = vshll.u32 %v666_v43, 16  ;;  %v787_v1 = vshll.u32 %v667_v48, 16  ;;  %v926_v3 = vshrl.u32 %v901_v50, 16  ;;  %2640 = vmatprep.subr.msk.bf16.mxu1 %vm433_vm0, %v2843_v59  ;;  %267 = vst.msk [vmem:[#allocation2 + $0x64] sm:$0xf] %vm220_vm1, %v258_v25 }
  0x42   : > { %v748_v34 = vsel %vm2852_vm8, %v743_v55, %v747_v40  ;;  %v757_v4 = vrot.slane %v756_v56, 4  ;;  %v770_v5 = vor.u32 %v769_v57, %v766_v53  ;;  %v780_v6 = vrot.slane %v778_v58, 4  ;;  %2583 = vmatpush3.bf16.msra.mxu0 %v2858_v9  ;;  %v911_v38 = vld [vmem:[#allocation2 + $0x48] sm:$0x8]  ;;  %v912_v43 = vld [vmem:[#allocation2 + $0x4c] sm:$0xf] }
  0x43   : > { %v783_v10 = vrot.slane %v781_v0, 5  ;;  %v789_v11 = vrot.slane %v787_v1, 5  ;;  %v2407_v13 = vrot.slane %v926_v3, 11  ;;  %v931_v14 = vshrl.u32 %v902_v60, 16  ;;  %2641 = vmatprep.subr.msk.bf16.mxu0 %vm433_vm0, %v2848_v33  ;;  %v909_v33 = vld [vmem:[#allocation2 + $0x3c] sm:$0x8] }
  0x44   : > { %v762_v59 = vsel %vm2852_vm8, %v757_v4, %v761_v52  ;;  %v771_v16 = vrot.slane %v770_v5, 4  ;;  %v934_v17 = vshll.u32 %v902_v60, 16  ;;  %v939_v18 = vshrl.u32 %v903_v2, 16  ;;  %v913_v48 = vld [vmem:[#allocation2 + $0x54] sm:$0x8] }
  0x45   : > { %v2401_v21 = vcombine.low %v748_v34, %v762_v59  ;;  %v784_v22 = vor.u32 %v783_v10, %v780_v6  ;;  %v933_v23 = vrot.slane %v931_v14, 7  ;;  %v944_v9 = vshrl.u32 %v904_v7, 16  ;;  %v914_v53 = vld [vmem:[#allocation2 + $0x58] sm:$0xf]  ;;  %v2658_v54 = vld [vmem:[#allocation2 + $0x10] ss:$12 sps:$4 sm:$0xff]  }
  0x46   : > { %v776_v12 = vsel %vm2852_vm8, %v771_v16, %v775_v63  ;;  %v2408_v26 = vrot.slane %v939_v18, 11  ;;  %v947_v27 = vshll.u32 %v904_v7, 16  ;;  %v952_v30 = vshrl.u32 %v905_v8, 16  ;;  %v915_v1 = vld [vmem:[#allocation2 + $0x60] sm:$0x8] }
  0x47   : > { %2559 = vmatmul.mubr.msk.bf16.gmra.mxu1 %vm268_vm2, %v2657_v62  ;;  %2568 = vmatprep.mubr.msk.bf16.mxu0 %vm268_vm2, %v2401_v21  ;;  %v785_v32 = vrot.slane %v784_v22, 4  ;;  %v936_v35 = vor.u32 %v934_v17, %v933_v23  ;;  %v946_v36 = vrot.slane %v944_v9, 7  ;;  %v957_v37 = vshrl.u32 %v906_v15, 16  ;;  %v2659_v59 = vld [vmem:[#allocation2 + $0x28] ss:$12 sps:$4 sm:$0xff]  }
  0x48   : > { %v2409_v39 = vrot.slane %v952_v30, 11  ;;  %v960_v40 = vshll.u32 %v906_v15, 16  ;;  %v965_v41 = vshrl.u32 %v907_v20, 16  ;;  %v970_v42 = vshrl.u32 %v908_v24, 16  ;;  %v916_v5 = vld [vmem:[#allocation2 + $0x64] sm:$0xf] }
  0x49   : > { %v790_v44 = vsel %vm2852_vm8, %v785_v32, %v789_v11  ;;  %v937_v45 = vsel %vm2803_vm5, %v2407_v13, %v936_v35  ;;  %v949_v46 = vor.u32 %v947_v27, %v946_v36  ;;  %v959_v47 = vrot.slane %v957_v37, 7  ;;  %v1273_v25 = vld [vmem:[#allocation2 + $0x10] sm:$0xf]  ;;  %v1274_v27 = vld [vmem:[#allocation2 + $0x14] sm:$0x1] }
  0x4a   : > { %v2402_v49 = vcombine.low %v776_v12, %v790_v44  ;;  %v2410_v50 = vrot.slane %v965_v41, 11  ;;  %v972_v51 = vrot.slane %v970_v42, 7  ;;  %v973_v52 = vshll.u32 %v908_v24, 16  ;;  %v2660_v24 = vld [vmem:[#allocation2 + $0x40] ss:$12 sps:$4 sm:$0xff]  }
  0x4b   : > { %v950_v55 = vsel %vm2803_vm5, %v2408_v26, %v949_v46  ;;  %v962_v56 = vor.u32 %v960_v40, %v959_v47  ;;  %v978_v57 = vshrl.u32 %v909_v33, 16  ;;  %v983_v58 = vshrl.u32 %v910_v31, 16  ;;  %v1275_v30 = vld [vmem:[#allocation2 + $0x1c] sm:$0xf]  ;;  %v1276_v32 = vld [vmem:[#allocation2 + $0x20] sm:$0x1] }
  0x4c   : > { %2569 = vmatmul.mubr.msk.bf16.gmra.mxu0 %vm268_vm2, %v2402_v49  ;;  %v2416_v60 = vcombine.low %v937_v45, %v950_v55  ;;  %v975_v62 = vor.u32 %v973_v52, %v972_v51  ;;  %v986_v63 = vshll.u32 %v910_v31, 16  ;;  %v991_v0 = vshrl.u32 %v911_v38, 16  ;;  %v1277_v41 = vld [vmem:[#allocation2 + $0x28] sm:$0xf]  ;;  %v1278_v42 = vld [vmem:[#allocation2 + $0x2c] sm:$0x1] }
  0x4d   : > { %v963_v2 = vsel %vm2803_vm5, %v2409_v39, %v962_v56  ;;  %v2411_v3 = vrot.slane %v978_v57, 11  ;;  %v985_v34 = vrot.slane %v983_v58, 7  ;;  %v996_v4 = vshrl.u32 %v912_v43, 16  ;;  %2584 = vmatprep.mubr.msk.bf16.mxu0 %vm268_vm2, %v2658_v54  ;;  %v1279_v46 = vld [vmem:[#allocation2 + $0x34] sm:$0xf] }
  0x4e   : > { %2574 = vmatprep.mubr.msk.bf16.mxu1 %vm268_vm2, %v2416_v60  ;;  %v976_v6 = vsel %vm2803_vm5, %v2410_v50, %v975_v62  ;;  %v2412_v7 = vrot.slane %v991_v0, 11  ;;  %v999_v8 = vshll.u32 %v912_v43, 16  ;;  %v1004_v10 = vshrl.u32 %v913_v48, 16  ;;  %v2661_v52 = vld [vmem:[#allocation2 + $0x58] ss:$12 sps:$4 sm:$0xff]  }
  0x4f   : > { %v2417_v11 = vcombine.low %v963_v2, %v976_v6  ;;  %v988_v13 = vor.u32 %v986_v63, %v985_v34  ;;  %v998_v14 = vrot.slane %v996_v4, 7  ;;  %v1009_v15 = vshrl.u32 %v914_v53, 16  ;;  %v1280_v55 = vld [vmem:[#allocation2 + $0x38] sm:$0x1]  ;;  %v1281_v63 = vld [vmem:[#allocation2 + $0x40] sm:$0xf] }
  0x50   : > { %v2413_v16 = vrot.slane %v1004_v10, 11  ;;  %v1012_v17 = vshll.u32 %v914_v53, 16  ;;  %v1017_v18 = vshrl.u32 %v915_v1, 16  ;;  %v1022_v20 = vshrl.u32 %v916_v5, 16 }
  0x51   : > { %2575 = vmatmul.mubr.msk.bf16.vlgmr.msra.gmra.mxu1 %vm268_vm2, %v2417_v11  ;;  %v989_v21 = vsel %vm2803_vm5, %v2411_v3, %v988_v13  ;;  %v1001_v22 = vor.u32 %v999_v8, %v998_v14  ;;  %v1011_v23 = vrot.slane %v1009_v15, 7  ;;  %v1025_v9 = vshll.u32 %v916_v5, 16  ;;  %v1282_v3 = vld [vmem:[#allocation2 + $0x44] sm:$0x1] }
  0x52   : > { %v2414_v12 = vrot.slane %v1017_v18, 11  ;;  %v1024_v26 = vrot.slane %v1022_v20, 7  ;;  %2593 = vmatpush3.bf16.msra.mxu1 %v2868_v19  ;;  %v1298_v35 = vshrl.u32 %v1273_v25, 16  ;;  %v1301_v36 = vshll.u32 %v1273_v25, 16 }
  0x53   : > { %v1002_v33 = vsel %vm2803_vm5, %v2412_v7, %v1001_v22  ;;  %v1014_v31 = vor.u32 %v1012_v17, %v1011_v23  ;;  %v1307_v39 = vshll.u32 %v1274_v27, 16  ;;  %v1312_v40 = vshrl.u32 %v1275_v30, 16  ;;  %v1283_v7 = vld [vmem:[#allocation2 + $0x4c] sm:$0xf]  ;;  %v1285_v23 = vld [vmem:[#allocation2 + $0x58] sm:$0xf] }
  0x54   : > { %v2418_v37 = vcombine.low %v989_v21, %v1002_v33  ;;  %v1027_v38 = vor.u32 %v1025_v9, %v1024_v26  ;;  %2585 = vmatmul.mubr.msk.bf16.vlgmr.msra.gmra.mxu0 %vm268_vm2, %v2659_v59  ;;  %v1300_v43 = vrot.slane %v1298_v35, 4  ;;  %v1303_v44 = vrot.slane %v1301_v36, 5  ;;  %v1284_v59 = vld [vmem:[#allocation2 + $0x50] sm:$0x1]  ;;  %v1286_v26 = vld [vmem:[#allocation2 + $0x5c] sm:$0x1] }
  0x55   : > { %v1015_v19 = vsel %vm2803_vm5, %v2413_v16, %v1014_v31  ;;  %2588 = vmatprep.mubr.msk.bf16.mxu0 %vm268_vm2, %v2660_v24  ;;  %v1315_v45 = vshll.u32 %v1275_v30, 16  ;;  %2603 = vmatpush3.bf16.msra.mxu0 %v2872_v28  ;;  %v1309_v48 = vrot.slane %v1307_v39, 5  ;;  %v1314_v49 = vrot.slane %v1312_v40, 4  ;;  %v2939_v40 = vld [vmem:[%s3131_s1 + $0x1c] sm:$0xf] }
  0x56   : > { %2578 = vmatprep.mubr.msk.bf16.mxu1 %vm268_vm2, %v2418_v37  ;;  %v1028_v47 = vsel %vm2803_vm5, %v2414_v12, %v1027_v38  ;;  %v1321_v50 = vshll.u32 %v1276_v32, 16  ;;  %v1304_v53 = vor.u32 %v1303_v44, %v1300_v43  ;;  %v1326_v56 = vshrl.u32 %v1277_v41, 16  ;;  %v1287_v32 = vld [vmem:[#allocation2 + $0x64] sm:$0xf]  ;;  %v1288_v37 = vld [vmem:[#allocation2 + $0x68] sm:$0x1]  ;;  %2642 = vmatprep.subr.msk.bf16.mxu1 %vm433_vm0, %v2939_v40 }
  0x57   : > { %v2419_v51 = vcombine.low %v1015_v19, %v1028_v47  ;;  %v1317_v54 = vrot.slane %v1315_v45, 5  ;;  %v1329_v58 = vshll.u32 %v1277_v41, 16  ;;  %v1335_v60 = vshll.u32 %v1278_v42, 16  ;;  %v1520_v44 = vld [vmem:[#allocation2 + $0x18] sm:$0x8] }
  0x58   : > { %v1323_v57 = vrot.slane %v1321_v50, 5  ;;  %v1340_v62 = vshrl.u32 %v1279_v46, 16  ;;  %v1305_v28 = vrot.slane %v1304_v53, 4  ;;  %v1328_v1 = vrot.slane %v1326_v56, 4 }
  0x59   : > { %2579 = vmatmul.mubr.msk.bf16.gmra.mxu1 %vm268_vm2, %v2419_v51  ;;  %v1318_v0 = vor.u32 %v1317_v54, %v1314_v49  ;;  %v1343_v2 = vshll.u32 %v1279_v46, 16  ;;  %v1331_v34 = vrot.slane %v1329_v58, 5  ;;  %v1337_v4 = vrot.slane %v1335_v60, 5  ;;  %v1521_v49 = vld [vmem:[#allocation2 + $0x1c] sm:$0xf] }
  0x5a   : > { %v1342_v5 = vrot.slane %v1340_v62, 4  ;;  %v1349_v6 = vshll.u32 %v1280_v55, 16  ;;  %v1310_v8 = vsel %vm2852_vm8, %v1305_v28, %v1309_v48  ;;  %v1354_v13 = vshrl.u32 %v1281_v63, 16  ;;  %v1523_v28 = vld [vmem:[#allocation2 + $0x28] sm:$0xf] }
  0x5b   : > { %v1319_v10 = vrot.slane %v1318_v0, 4  ;;  %v1345_v11 = vrot.slane %v1343_v2, 5  ;;  %v1332_v14 = vor.u32 %v1331_v34, %v1328_v1  ;;  %v1357_v16 = vshll.u32 %v1281_v63, 16 }
  0x5c   : > { %2589 = vmatmul.mubr.msk.bf16.gmra.mxu0 %vm268_vm2, %v2661_v52  ;;  %v1351_v15 = vrot.slane %v1349_v6, 5  ;;  %v1363_v17 = vshll.u32 %v1282_v3, 16  ;;  %v1356_v21 = vrot.slane %v1354_v13, 4  ;;  %v1368_v22 = vshrl.u32 %v1283_v7, 16 }
  0x5d   : > { %v1324_v18 = vsel %vm2852_vm8, %v1319_v10, %v1323_v57  ;;  %v1346_v20 = vor.u32 %v1345_v11, %v1342_v5  ;;  %v1333_v24 = vrot.slane %v1332_v14, 4  ;;  %v1359_v25 = vrot.slane %v1357_v16, 5  ;;  %v1522_v57 = vld [vmem:[#allocation2 + $0x24] sm:$0x8]  ;;  %v1525_v10 = vld [vmem:[#allocation2 + $0x34] sm:$0xf] }
  0x5e   : > { %v2434_v9 = vcombine.low %v1310_v8, %v1324_v18  ;;  %v1365_v12 = vrot.slane %v1363_v17, 5  ;;  %v1370_v30 = vrot.slane %v1368_v22, 4  ;;  %v1371_v33 = vshll.u32 %v1283_v7, 16  ;;  %v1526_v11 = vld [vmem:[#allocation2 + $0x3c] sm:$0x8] }
  0x5f   : > { %v1347_v27 = vrot.slane %v1346_v20, 4  ;;  %v1377_v31 = vshll.u32 %v1284_v59, 16  ;;  %v1338_v35 = vsel %vm2852_vm8, %v1333_v24, %v1337_v4  ;;  %v1360_v36 = vor.u32 %v1359_v25, %v1356_v21  ;;  %v1524_v4 = vld [vmem:[#allocation2 + $0x30] sm:$0x8]  ;;  %v1527_v16 = vld [vmem:[#allocation2 + $0x40] sm:$0xf] }
  0x60   : > { %2594 = vmatprep.mubr.msk.bf16.mxu1 %vm268_vm2, %v2434_v9  ;;  %v1382_v38 = vshrl.u32 %v1285_v23, 16  ;;  %v1385_v39 = vshll.u32 %v1285_v23, 16  ;;  %v1373_v42 = vrot.slane %v1371_v33, 5  ;;  %v1391_v43 = vshll.u32 %v1286_v26, 16  ;;  %v1528_v17 = vld [vmem:[#allocation2 + $0x48] sm:$0x8] }
  0x61   : > { %v1352_v41 = vsel %vm2852_vm8, %v1347_v27, %v1351_v15  ;;  %v1379_v19 = vrot.slane %v1377_v31, 5  ;;  %v1361_v46 = vrot.slane %v1360_v36, 4  ;;  %v1396_v52 = vshrl.u32 %v1287_v32, 16  ;;  %v1529_v23 = vld [vmem:[#allocation2 + $0x4c] sm:$0xf] }
  0x62   : > { %v2435_v45 = vcombine.low %v1338_v35, %v1352_v41  ;;  %v1384_v47 = vrot.slane %v1382_v38, 4  ;;  %v1387_v48 = vrot.slane %v1385_v39, 5  ;;  %v1374_v50 = vor.u32 %v1373_v42, %v1370_v30  ;;  %v1530_v26 = vld [vmem:[#allocation2 + $0x54] sm:$0x8]  ;;  %v2662_v35 = vld [vmem:[#allocation2 + $0x1c] ss:$12 sps:$4 sm:$0xff]  }
  0x63   : > { %v1393_v51 = vrot.slane %v1391_v43, 5  ;;  %v1399_v53 = vshll.u32 %v1287_v32, 16  ;;  %v1366_v54 = vsel %vm2852_vm8, %v1361_v46, %v1365_v12  ;;  %v1405_v56 = vshll.u32 %v1288_v37, 16  ;;  %v1531_v32 = vld [vmem:[#allocation2 + $0x58] sm:$0xf] }
  0x64   : > { %2595 = vmatmul.mubr.msk.bf16.vlgmr.msra.gmra.mxu1 %vm268_vm2, %v2435_v45  ;;  %v1388_v55 = vor.u32 %v1387_v48, %v1384_v47  ;;  %v1545_v58 = vshrl.u32 %v1520_v44, 16  ;;  %v1375_v60 = vrot.slane %v1374_v50, 4  ;;  %v1398_v62 = vrot.slane %v1396_v52, 4  ;;  %v2468_v36 = vld [vmem:[%s3131_s1 + $0x20] sm:$0xf] }
  0x65   : > { %v1401_v63 = vrot.slane %v1399_v53, 5  ;;  %v1550_v0 = vshrl.u32 %v1521_v49, 16  ;;  %v1407_v2 = vrot.slane %v1405_v56, 5  ;;  %v1553_v34 = vshll.u32 %v1521_v49, 16  ;;  %v1532_v42 = vld [vmem:[#allocation2 + $0x60] sm:$0x8]  ;;  %2643 = vmatprep.subr.msk.bf16.mxu0 %vm433_vm0, %v2468_v36 }
  0x66   : > { %v1389_v1 = vrot.slane %v1388_v55, 4  ;;  %v2442_v3 = vrot.slane %v1545_v58, 11  ;;  %v1380_v5 = vsel %vm2852_vm8, %v1375_v60, %v1379_v19  ;;  %v1558_v8 = vshrl.u32 %v1522_v57, 16  ;;  %v1533_v46 = vld [vmem:[#allocation2 + $0x64] sm:$0xf] }
  0x67   : > { %v1402_v6 = vor.u32 %v1401_v63, %v1398_v62  ;;  %v1552_v7 = vrot.slane %v1550_v0, 7  ;;  %v2436_v13 = vcombine.low %v1366_v54, %v1380_v5  ;;  %v1563_v15 = vshrl.u32 %v1523_v28, 16  ;;  %v1535_v56 = vld [vmem:[#allocation2 + $0x70] sm:$0xf]  ;;  %v2663_v62 = vld [vmem:[#allocation2 + $0x34] ss:$12 sps:$4 sm:$0xff]  }
  0x68   : > { %v1394_v14 = vsel %vm2852_vm8, %v1389_v1, %v1393_v51  ;;  %v1566_v59 = vshll.u32 %v1523_v28, 16  ;;  %v2443_v21 = vrot.slane %v1558_v8, 11  ;;  %v1571_v22 = vshrl.u32 %v1524_v4, 16  ;;  %v1534_v51 = vld [vmem:[#allocation2 + $0x6c] sm:$0x8] }
  0x69   : > { %v1403_v18 = vrot.slane %v1402_v6, 4  ;;  %v1555_v20 = vor.u32 %v1553_v34, %v1552_v7  ;;  %2598 = vmatprep.mubr.msk.bf16.mxu1 %vm268_vm2, %v2436_v13  ;;  %v1565_v9 = vrot.slane %v1563_v15, 7  ;;  %v1576_v24 = vshrl.u32 %v1525_v10, 16  ;;  %v1892_v6 = vld [vmem:[#allocation2 + $0x1c] sm:$0xf] }
  0x6a   : > { %v1579_v25 = vshll.u32 %v1525_v10, 16  ;;  %v1584_v12 = vshrl.u32 %v1526_v11, 16  ;;  %v2444_v33 = vrot.slane %v1571_v22, 11  ;;  %v1589_v31 = vshrl.u32 %v1527_v16, 16  ;;  %v1893_v7 = vld [vmem:[#allocation2 + $0x20] sm:$0x1] }
  0x6b   : > { %v1408_v27 = vsel %vm2852_vm8, %v1403_v18, %v1407_v2  ;;  %v1556_v30 = vsel %vm2803_vm5, %v2442_v3, %v1555_v20  ;;  %v1568_v38 = vor.u32 %v1566_v59, %v1565_v9  ;;  %v1578_v39 = vrot.slane %v1576_v24, 7  ;;  %v2664_v2 = vld [vmem:[#allocation2 + $0x4c] ss:$12 sps:$4 sm:$0xff]  }
  0x6c   : > { %v2437_v37 = vcombine.low %v1394_v14, %v1408_v27  ;;  %v2445_v41 = vrot.slane %v1584_v12, 11  ;;  %v1591_v19 = vrot.slane %v1589_v31, 7  ;;  %v1592_v43 = vshll.u32 %v1527_v16, 16  ;;  %v1894_v14 = vld [vmem:[#allocation2 + $0x28] sm:$0xf] }
  0x6d   : > { %v1809_v44 = vsel %vm433_vm0, %v2939_v40, 0  ;;  %v1597_v45 = vshrl.u32 %v1528_v17, 16  ;;  %v1569_v47 = vsel %vm2803_vm5, %v2443_v21, %v1568_v38  ;;  %v1581_v48 = vor.u32 %v1579_v25, %v1578_v39  ;;  %v1895_v22 = vld [vmem:[#allocation2 + $0x2c] sm:$0x1]  ;;  %v1898_v39 = vld [vmem:[#allocation2 + $0x40] sm:$0xf] }
  0x6e   : > { %2599 = vmatmul.mubr.msk.bf16.gmra.mxu1 %vm268_vm2, %v2437_v37  ;;  %v1602_v49 = vshrl.u32 %v1529_v23, 16  ;;  %v1605_v50 = vshll.u32 %v1529_v23, 16  ;;  %v2451_v52 = vcombine.low %v1556_v30, %v1569_v47  ;;  %v1594_v53 = vor.u32 %v1592_v43, %v1591_v19 }
  0x6f   : > { %2613 = vmatpush3.bf16.msra.mxu1 %v1809_v44  ;;  %v2446_v54 = vrot.slane %v1597_v45, 11  ;;  %v1610_v55 = vshrl.u32 %v1530_v26, 16  ;;  %2614 = vmatprep.mubr.msk.bf16.mxu1 %vm268_vm2, %v2662_v35  ;;  %v1582_v40 = vsel %vm2803_vm5, %v2444_v33, %v1581_v48  ;;  %v1615_v58 = vshrl.u32 %v1531_v32, 16  ;;  %v1896_v26 = vld [vmem:[#allocation2 + $0x34] sm:$0xf] }
  0x70   : > { %v1604_v57 = vrot.slane %v1602_v49, 7  ;;  %v1618_v60 = vshll.u32 %v1531_v32, 16  ;;  %2604 = vmatprep.mubr.msk.bf16.mxu0 %vm268_vm2, %v2451_v52  ;;  %v1595_v63 = vsel %vm2803_vm5, %v2445_v41, %v1594_v53  ;;  %v1623_v0 = vshrl.u32 %v1532_v42, 16  ;;  %v1897_v32 = vld [vmem:[#allocation2 + $0x38] sm:$0x1] }
  0x71   : > { %v2447_v28 = vrot.slane %v1610_v55, 11  ;;  %v1628_v1 = vshrl.u32 %v1533_v46, 16  ;;  %v2452_v3 = vcombine.low %v1582_v40, %v1595_v63  ;;  %v1617_v4 = vrot.slane %v1615_v58, 7  ;;  %v2665_v42 = vld [vmem:[#allocation2 + $0x64] ss:$12 sps:$4 sm:$0xff]  }
  0x72   : > { %v1607_v34 = vor.u32 %v1605_v50, %v1604_v57  ;;  %v1631_v5 = vshll.u32 %v1533_v46, 16  ;;  %v2448_v8 = vrot.slane %v1623_v0, 11  ;;  %v1636_v11 = vshrl.u32 %v1534_v51, 16  ;;  %v1899_v48 = vld [vmem:[#allocation2 + $0x44] sm:$0x1] }
  0x73   : > { %v1630_v10 = vrot.slane %v1628_v1, 7  ;;  %v1641_v13 = vshrl.u32 %v1535_v56, 16  ;;  %2605 = vmatmul.mubr.msk.bf16.vlgmr.msra.gmra.mxu0 %vm268_vm2, %v2452_v3  ;;  %v1620_v59 = vor.u32 %v1618_v60, %v1617_v4  ;;  %v1644_v16 = vshll.u32 %v1535_v56, 16  ;;  %v1900_v50 = vld [vmem:[#allocation2 + $0x4c] sm:$0xf] }
  0x74   : > { %v1608_v15 = vsel %vm2803_vm5, %v2446_v54, %v1607_v34  ;;  %v2055_v17 = vsel %vm433_vm0, %v2468_v36, 0  ;;  %v2449_v20 = vrot.slane %v1636_v11, 11  ;;  %v1917_v23 = vshrl.u32 %v1892_v6, 16  ;;  %v1901_v57 = vld [vmem:[#allocation2 + $0x50] sm:$0x1] }
  0x75   : > { %v1633_v18 = vor.u32 %v1631_v5, %v1630_v10  ;;  %v1643_v21 = vrot.slane %v1641_v13, 7  ;;  %2623 = vmatpush3.bf16.msra.mxu0 %v2055_v17  ;;  %v1621_v9 = vsel %vm2803_vm5, %v2447_v28, %v1620_v59  ;;  %v1920_v24 = vshll.u32 %v1892_v6, 16  ;;  %v1902_v63 = vld [vmem:[#allocation2 + $0x58] sm:$0xf]  ;;  %v1903_v5 = vld [vmem:[#allocation2 + $0x5c] sm:$0x1] }
  0x76   : > { %2615 = vmatmul.mubr.msk.bf16.vlgmr.msra.gmra.mxu1 %vm268_vm2, %v2663_v62  ;;  %v1926_v25 = vshll.u32 %v1893_v7, 16  ;;  %v1931_v12 = vshrl.u32 %v1894_v14, 16  ;;  %v2453_v27 = vcombine.low %v1608_v15, %v1621_v9  ;;  %v1919_v31 = vrot.slane %v1917_v23, 4  ;;  %v1905_v15 = vld [vmem:[#allocation2 + $0x68] sm:$0x1] }
  0x77   : > { %v1634_v30 = vsel %vm2803_vm5, %v2448_v8, %v1633_v18  ;;  %v1646_v33 = vor.u32 %v1644_v16, %v1643_v21  ;;  %2618 = vmatprep.mubr.msk.bf16.mxu1 %vm268_vm2, %v2664_v2  ;;  %v1922_v35 = vrot.slane %v1920_v24, 5  ;;  %v1934_v38 = vshll.u32 %v1894_v14, 16  ;;  %v1904_v14 = vld [vmem:[#allocation2 + $0x64] sm:$0xf] }
  0x78   : > { %v1928_v36 = vrot.slane %v1926_v25, 5  ;;  %v1933_v37 = vrot.slane %v1931_v12, 4  ;;  %2608 = vmatprep.mubr.msk.bf16.mxu0 %vm268_vm2, %v2453_v27  ;;  %v1940_v19 = vshll.u32 %v1895_v22, 16  ;;  %v1945_v43 = vshrl.u32 %v1896_v26, 16 }
  0x79   : > { %v1647_v41 = vsel %vm2803_vm5, %v2449_v20, %v1646_v33  ;;  %v1948_v44 = vshll.u32 %v1896_v26, 16  ;;  %v1923_v46 = vor.u32 %v1922_v35, %v1919_v31  ;;  %v1936_v47 = vrot.slane %v1934_v38, 5  ;;  %v1906_v20 = vld [vmem:[#allocation2 + $0x70] sm:$0xf]  ;;  %v1907_v31 = vld [vmem:[#allocation2 + $0x74] sm:$0x1] }
  0x7a   : > { %v2454_v45 = vcombine.low %v1634_v30, %v1647_v41  ;;  %v1954_v49 = vshll.u32 %v1897_v32, 16  ;;  %v1942_v51 = vrot.slane %v1940_v19, 5  ;;  %v1947_v52 = vrot.slane %v1945_v43, 4 }
  0x7b   : > { %v1950_v53 = vrot.slane %v1948_v44, 5  ;;  %v1959_v54 = vshrl.u32 %v1898_v39, 16  ;;  %v1924_v55 = vrot.slane %v1923_v46, 4  ;;  %v1937_v56 = vor.u32 %v1936_v47, %v1933_v37 }
  0x7c   : > { %2609 = vmatmul.mubr.msk.bf16.gmra.mxu0 %vm268_vm2, %v2454_v45  ;;  %v1956_v29 = vrot.slane %v1954_v49, 5  ;;  %v1962_v40 = vshll.u32 %v1898_v39, 16  ;;  %v1968_v62 = vshll.u32 %v1899_v48, 16  ;;  %v1973_v28 = vshrl.u32 %v1900_v50, 16 }
  0x7d   : > { %v1951_v58 = vor.u32 %v1950_v53, %v1947_v52  ;;  %v1961_v60 = vrot.slane %v1959_v54, 4  ;;  %v1929_v0 = vsel %vm2852_vm8, %v1924_v55, %v1928_v36  ;;  %v1938_v1 = vrot.slane %v1937_v56, 4  ;;  %v295_v56 = vld [vmem:[#allocation3 + $0x10] sm:$0xff] }
  0x7e   : > { %2619 = vmatmul.mubr.msk.bf16.gmra.mxu1 %vm268_vm2, %v2665_v42  ;;  %v1964_v2 = vrot.slane %v1962_v40, 5  ;;  %v1976_v3 = vshll.u32 %v1900_v50, 16  ;;  %v1970_v4 = vrot.slane %v1968_v62, 5  ;;  %v1975_v6 = vrot.slane %v1973_v28, 4  ;;  %v293_v40 = vld [vmem:[#allocation3] sm:$0xff]  ;;  %v299_v62 = vld [vmem:[#allocation3 + $0x30] sm:$0xff] }
  0x7f   : > { %v1952_v34 = vrot.slane %v1951_v58, 4  ;;  %v1982_v7 = vshll.u32 %v1901_v57, 16  ;;  %v1943_v8 = vsel %vm2852_vm8, %v1938_v1, %v1942_v51  ;;  %v1987_v13 = vshrl.u32 %v1902_v63, 16 }
  0x80   : > { %v1965_v10 = vor.u32 %v1964_v2, %v1961_v60  ;;  %v1978_v11 = vrot.slane %v1976_v3, 5  ;;  %v2469_v59 = vcombine.low %v1929_v0, %v1943_v8  ;;  %v1990_v18 = vshll.u32 %v1902_v63, 16  ;;  %v296_v60 = vld [vmem:[#allocation3 + $0x18] sm:$0xff]  ;;  %v294_v0 = vld [vmem:[#allocation3 + $0x8] sm:$0xff] }
  0x81   : > { %v1957_v16 = vsel %vm2852_vm8, %v1952_v34, %v1956_v29  ;;  %v1984_v17 = vrot.slane %v1982_v7, 5  ;;  %v1989_v23 = vrot.slane %v1987_v13, 4  ;;  %v1996_v9 = vshll.u32 %v1903_v5, 16  ;;  %v300_v5 = vld [vmem:[#allocation3 + $0x38] sm:$0xff] }
  0x82   : > { %v1966_v21 = vrot.slane %v1965_v10, 4  ;;  %v1979_v22 = vor.u32 %v1978_v11, %v1975_v6  ;;  %2624 = vmatprep.mubr.msk.bf16.mxu0 %vm268_vm2, %v2469_v59  ;;  %v1992_v24 = vrot.slane %v1990_v18, 5  ;;  %v2001_v25 = vshrl.u32 %v1904_v14, 16  ;;  %v298_v10 = vld [vmem:[#allocation3 + $0x28] sm:$0xff] }
  0x83   : > { %v2004_v12 = vshll.u32 %v1904_v14, 16  ;;  %v2010_v26 = vshll.u32 %v1905_v15, 16  ;;  %v1998_v33 = vrot.slane %v1996_v9, 5  ;;  %v2015_v32 = vshrl.u32 %v1906_v20, 16 }
  0x84   : > { %v1971_v27 = vsel %vm2852_vm8, %v1966_v21, %v1970_v4  ;;  %v1980_v30 = vrot.slane %v1979_v22, 4  ;;  %v1993_v36 = vor.u32 %v1992_v24, %v1989_v23  ;;  %v2003_v37 = vrot.slane %v2001_v25, 4 }
  0x85   : > { %v2470_v35 = vcombine.low %v1957_v16, %v1971_v27  ;;  %v2006_v38 = vrot.slane %v2004_v12, 5  ;;  %v2017_v39 = vrot.slane %v2015_v32, 4  ;;  %v2018_v41 = vshll.u32 %v1906_v20, 16 }
  0x86   : > { %v1985_v42 = vsel %vm2852_vm8, %v1980_v30, %v1984_v17  ;;  %v1994_v19 = vrot.slane %v1993_v36, 4  ;;  %v2024_v44 = vshll.u32 %v1907_v31, 16  ;;  %v2012_v45 = vrot.slane %v2010_v26, 5 }
  0x87   : > { %2625 = vmatmul.mubr.msk.bf16.vlgmr.msra.gmra.mxu0 %vm268_vm2, %v2470_v35  ;;  %v2007_v43 = vor.u32 %v2006_v38, %v2003_v37  ;;  %v2020_v46 = vrot.slane %v2018_v41, 5 }
  0x88   : > { %v1999_v47 = vsel %vm2852_vm8, %v1994_v19, %v1998_v33  ;;  %v2026_v51 = vrot.slane %v2024_v44, 5 }
  0x89   : > { %v2008_v48 = vrot.slane %v2007_v43, 4  ;;  %v2471_v49 = vcombine.low %v1985_v42, %v1999_v47  ;;  %v2021_v50 = vor.u32 %v2020_v46, %v2017_v39 }
  0x8b   : > { %2628 = vmatprep.mubr.msk.bf16.mxu0 %vm268_vm2, %v2471_v49  ;;  %v2013_v52 = vsel %vm2852_vm8, %v2008_v48, %v2012_v45  ;;  %v2022_v53 = vrot.slane %v2021_v50, 4 }
  0x8d   : > { %v2027_v54 = vsel %vm2852_vm8, %v2022_v53, %v2026_v51 }
  0x8e   : > { %v2472_v55 = vcombine.low %v2013_v52, %v2027_v54 }
  0x90   : > { %2629 = vmatmul.mubr.msk.bf16.gmra.mxu0 %vm268_vm2, %v2472_v55 }
  0xf3   : > { %v2546_v29 = vpop.f32.mrf.mxu0 }
  0xf4   : > { %v504_v57 = vadd.f32 %v2546_v29, %v295_v56 }
  0xf5   : > { %v471_v58 = vpop.f32.mrf.mxu0 }
  0xf6   : > { %512 = vst.msk [vmem:[#allocation3 + $0x10] sm:$0xff] %vm268_vm2, %v504_v57  ;;  %v502_v63 = vadd.f32 %v471_v58, %v293_v40 }
  0xf7   : > { %v2547_v28 = vpop.f32.mrf.mxu0  ;;  %v2550_v1 = vpop.f32.mrf.mxu1 }
  0xf8   : > { %510 = vst.msk [vmem:[#allocation3] sm:$0xff] %vm268_vm2, %v502_v63  ;;  %v505_v2 = vadd.f32 %v2547_v28, %v296_v60  ;;  %v508_v3 = vadd.f32 %v2550_v1, %v299_v62 }
  0xf9   : > { %v474_v34 = vpop.f32.mrf.mxu0  ;;  %v487_v4 = vpop.f32.mrf.mxu1 }
  0xfa   : > { %513 = vst.msk [vmem:[#allocation3 + $0x18] sm:$0xff] %vm268_vm2, %v505_v2  ;;  %v503_v6 = vadd.f32 %v474_v34, %v294_v0  ;;  %516 = vst.msk [vmem:[#allocation3 + $0x30] sm:$0xff] %vm268_vm2, %v508_v3  ;;  %v506_v7 = vadd.f32 %v487_v4, %v297_v61 }
  0xfb   : > { %v2551_v8 = vpop.f32.mrf.mxu1 }
  0xfc   : > { %511 = vst.msk [vmem:[#allocation3 + $0x8] sm:$0xff] %vm268_vm2, %v503_v6  ;;  %514 = vst.msk [vmem:[#allocation3 + $0x20] sm:$0xff] %vm268_vm2, %v506_v7  ;;  %v509_v11 = vadd.f32 %v2551_v8, %v300_v5 }
  0xfd   : > { %v490_v13 = vpop.f32.mrf.mxu1  ;;  %v528_v14 = vld [vmem:[#allocation3 + $0x10] sm:$0xff] }
  0xfe   : > { %517 = vst.msk [vmem:[#allocation3 + $0x38] sm:$0xff] %vm268_vm2, %v509_v11  ;;  %v507_v15 = vadd.f32 %v490_v13, %v298_v10 }
  0xff   : > { %v2556_v59 = vpop.f32.mrf.mxu1  ;;  %v526_v16 = vld [vmem:[#allocation3] sm:$0xff] }
 0x100   : > { %515 = vst.msk [vmem:[#allocation3 + $0x28] sm:$0xff] %vm268_vm2, %v507_v15  ;;  %v638_v17 = vadd.f32 %v2556_v59, %v528_v14 }
 0x101   : > { %v605_v18 = vpop.f32.mrf.mxu1  ;;  %v529_v20 = vld [vmem:[#allocation3 + $0x18] sm:$0xff]  ;;  %v2566_v21 = vpop.f32.mrf.mxu0  ;;  %v532_v30 = vld [vmem:[#allocation3 + $0x30] sm:$0xff] }
 0x102   : > { %646 = vst.msk [vmem:[#allocation3 + $0x10] sm:$0xff] %vm268_vm2, %v638_v17  ;;  %v636_v22 = vadd.f32 %v605_v18, %v526_v16 }
 0x103   : > { %v2557_v23 = vpop.f32.mrf.mxu1  ;;  %v527_v9 = vld [vmem:[#allocation3 + $0x8] sm:$0xff]  ;;  %v854_v24 = vpop.f32.mrf.mxu0  ;;  %v530_v36 = vld [vmem:[#allocation3 + $0x20] sm:$0xff] }
 0x104   : > { %644 = vst.msk [vmem:[#allocation3] sm:$0xff] %vm268_vm2, %v636_v22  ;;  %v639_v25 = vadd.f32 %v2557_v23, %v529_v20 }
 0x105   : > { %v608_v12 = vpop.f32.mrf.mxu1  ;;  %v2567_v26 = vpop.f32.mrf.mxu0  ;;  %v533_v42 = vld [vmem:[#allocation3 + $0x38] sm:$0xff] }
 0x106   : > { %647 = vst.msk [vmem:[#allocation3 + $0x18] sm:$0xff] %vm268_vm2, %v639_v25  ;;  %v637_v27 = vadd.f32 %v608_v12, %v527_v9 }
 0x107   : > { %v2560_v33 = vpop.f32.mrf.mxu1  ;;  %v857_v32 = vpop.f32.mrf.mxu0  ;;  %v531_v47 = vld [vmem:[#allocation3 + $0x28] sm:$0xff] }
 0x108   : > { %645 = vst.msk [vmem:[#allocation3 + $0x8] sm:$0xff] %vm268_vm2, %v637_v27  ;;  %v642_v31 = vadd.f32 %v2560_v33, %v532_v30 }
 0x109   : > { %v670_v35 = vld [vmem:[#allocation3 + $0x10] sm:$0xff]  ;;  %v621_v37 = vpop.f32.mrf.mxu1 }
 0x10a   : > { %v887_v38 = vadd.f32 %v2566_v21, %v670_v35  ;;  %650 = vst.msk [vmem:[#allocation3 + $0x30] sm:$0xff] %vm268_vm2, %v642_v31  ;;  %v640_v39 = vadd.f32 %v621_v37, %v530_v36 }
 0x10b   : > { %v668_v41 = vld [vmem:[#allocation3] sm:$0xff]  ;;  %v2561_v19 = vpop.f32.mrf.mxu1 }
 0x10c   : > { %895 = vst.msk [vmem:[#allocation3 + $0x10] sm:$0xff] %vm268_vm2, %v887_v38  ;;  %v885_v43 = vadd.f32 %v854_v24, %v668_v41  ;;  %648 = vst.msk [vmem:[#allocation3 + $0x20] sm:$0xff] %vm268_vm2, %v640_v39  ;;  %v643_v44 = vadd.f32 %v2561_v19, %v533_v42  ;;  %v2570_v45 = vpop.f32.mrf.mxu0 }
 0x10d   : > { %v671_v46 = vld [vmem:[#allocation3 + $0x18] sm:$0xff]  ;;  %v624_v48 = vpop.f32.mrf.mxu1 }
 0x10e   : > { %893 = vst.msk [vmem:[#allocation3] sm:$0xff] %vm268_vm2, %v885_v43  ;;  %v888_v49 = vadd.f32 %v2567_v26, %v671_v46  ;;  %651 = vst.msk [vmem:[#allocation3 + $0x38] sm:$0xff] %vm268_vm2, %v643_v44  ;;  %v641_v50 = vadd.f32 %v624_v48, %v531_v47  ;;  %v870_v51 = vpop.f32.mrf.mxu0 }
 0x10f   : > { %v669_v52 = vld [vmem:[#allocation3 + $0x8] sm:$0xff] }
 0x110   : > { %896 = vst.msk [vmem:[#allocation3 + $0x18] sm:$0xff] %vm268_vm2, %v888_v49  ;;  %v886_v53 = vadd.f32 %v857_v32, %v669_v52  ;;  %649 = vst.msk [vmem:[#allocation3 + $0x28] sm:$0xff] %vm268_vm2, %v641_v50  ;;  %v2571_v54 = vpop.f32.mrf.mxu0 }
 0x111   : > { %v674_v55 = vld [vmem:[#allocation3 + $0x30] sm:$0xff]  ;;  %v2576_v56 = vpop.f32.mrf.mxu1 }
 0x112   : > { %894 = vst.msk [vmem:[#allocation3 + $0x8] sm:$0xff] %vm268_vm2, %v886_v53  ;;  %v891_v29 = vadd.f32 %v2570_v45, %v674_v55  ;;  %v873_v40 = vpop.f32.mrf.mxu0 }
 0x113   : > { %v672_v57 = vld [vmem:[#allocation3 + $0x20] sm:$0xff]  ;;  %v919_v58 = vld [vmem:[#allocation3 + $0x10] sm:$0xff]  ;;  %v1092_v60 = vpop.f32.mrf.mxu1 }
 0x114   : > { %899 = vst.msk [vmem:[#allocation3 + $0x30] sm:$0xff] %vm268_vm2, %v891_v29  ;;  %v889_v62 = vadd.f32 %v870_v51, %v672_v57  ;;  %v1125_v63 = vadd.f32 %v2576_v56, %v919_v58  ;;  %v2586_v28 = vpop.f32.mrf.mxu0 }
 0x115   : > { %v675_v0 = vld [vmem:[#allocation3 + $0x38] sm:$0xff]  ;;  %v917_v1 = vld [vmem:[#allocation3] sm:$0xff]  ;;  %v2577_v61 = vpop.f32.mrf.mxu1 }
 0x116   : > { %897 = vst.msk [vmem:[#allocation3 + $0x20] sm:$0xff] %vm268_vm2, %v889_v62  ;;  %1133 = vst.msk [vmem:[#allocation3 + $0x10] sm:$0xff] %vm268_vm2, %v1125_v63  ;;  %v892_v2 = vadd.f32 %v2571_v54, %v675_v0  ;;  %v1123_v3 = vadd.f32 %v1092_v60, %v917_v1  ;;  %v1226_v34 = vpop.f32.mrf.mxu0 }
 0x117   : > { %v673_v4 = vld [vmem:[#allocation3 + $0x28] sm:$0xff]  ;;  %v920_v5 = vld [vmem:[#allocation3 + $0x18] sm:$0xff]  ;;  %v1095_v6 = vpop.f32.mrf.mxu1 }
 0x118   : > { %900 = vst.msk [vmem:[#allocation3 + $0x38] sm:$0xff] %vm268_vm2, %v892_v2  ;;  %1131 = vst.msk [vmem:[#allocation3] sm:$0xff] %vm268_vm2, %v1123_v3  ;;  %v890_v7 = vadd.f32 %v873_v40, %v673_v4  ;;  %v1126_v8 = vadd.f32 %v2577_v61, %v920_v5  ;;  %v2587_v10 = vpop.f32.mrf.mxu0 }
 0x119   : > { %v918_v11 = vld [vmem:[#allocation3 + $0x8] sm:$0xff]  ;;  %v2580_v13 = vpop.f32.mrf.mxu1 }
 0x11a   : > { %898 = vst.msk [vmem:[#allocation3 + $0x28] sm:$0xff] %vm268_vm2, %v890_v7  ;;  %1134 = vst.msk [vmem:[#allocation3 + $0x18] sm:$0xff] %vm268_vm2, %v1126_v8  ;;  %v1124_v14 = vadd.f32 %v1095_v6, %v918_v11  ;;  %v1229_v16 = vpop.f32.mrf.mxu0 }
 0x11b   : > { %v923_v15 = vld [vmem:[#allocation3 + $0x30] sm:$0xff]  ;;  %v1108_v59 = vpop.f32.mrf.mxu1 }
 0x11c   : > { %1132 = vst.msk [vmem:[#allocation3 + $0x8] sm:$0xff] %vm268_vm2, %v1124_v14  ;;  %v1129_v17 = vadd.f32 %v2580_v13, %v923_v15  ;;  %v2590_v25 = vpop.f32.mrf.mxu0 }
 0x11d   : > { %v921_v18 = vld [vmem:[#allocation3 + $0x20] sm:$0xff]  ;;  %v1149_v20 = vld [vmem:[#allocation3 + $0x10] sm:$0xff]  ;;  %v2581_v21 = vpop.f32.mrf.mxu1 }
 0x11e   : > { %1137 = vst.msk [vmem:[#allocation3 + $0x30] sm:$0xff] %vm268_vm2, %v1129_v17  ;;  %v1127_v22 = vadd.f32 %v1108_v59, %v921_v18  ;;  %v1259_v23 = vadd.f32 %v2586_v28, %v1149_v20  ;;  %v1242_v36 = vpop.f32.mrf.mxu0 }
 0x11f   : > { %v924_v9 = vld [vmem:[#allocation3 + $0x38] sm:$0xff]  ;;  %v1147_v24 = vld [vmem:[#allocation3] sm:$0xff]  ;;  %v1111_v30 = vpop.f32.mrf.mxu1 }
 0x120   : > { %1135 = vst.msk [vmem:[#allocation3 + $0x20] sm:$0xff] %vm268_vm2, %v1127_v22  ;;  %1267 = vst.msk [vmem:[#allocation3 + $0x10] sm:$0xff] %vm268_vm2, %v1259_v23  ;;  %v1130_v12 = vadd.f32 %v2581_v21, %v924_v9  ;;  %v1257_v26 = vadd.f32 %v1226_v34, %v1147_v24  ;;  %v2591_v44 = vpop.f32.mrf.mxu0 }
 0x121   : > { %v922_v27 = vld [vmem:[#allocation3 + $0x28] sm:$0xff]  ;;  %v1150_v33 = vld [vmem:[#allocation3 + $0x18] sm:$0xff] }
 0x122   : > { %1138 = vst.msk [vmem:[#allocation3 + $0x38] sm:$0xff] %vm268_vm2, %v1130_v12  ;;  %1265 = vst.msk [vmem:[#allocation3] sm:$0xff] %vm268_vm2, %v1257_v26  ;;  %v1128_v31 = vadd.f32 %v1111_v30, %v922_v27  ;;  %v1260_v32 = vadd.f32 %v2587_v10, %v1150_v33  ;;  %v1245_v54 = vpop.f32.mrf.mxu0 }
 0x123   : > { %v1148_v35 = vld [vmem:[#allocation3 + $0x8] sm:$0xff] }
 0x124   : > { %1136 = vst.msk [vmem:[#allocation3 + $0x28] sm:$0xff] %vm268_vm2, %v1128_v31  ;;  %1268 = vst.msk [vmem:[#allocation3 + $0x18] sm:$0xff] %vm268_vm2, %v1260_v32  ;;  %v1258_v37 = vadd.f32 %v1229_v16, %v1148_v35  ;;  %v2596_v38 = vpop.f32.mrf.mxu1 }
 0x125   : > { %v1153_v39 = vld [vmem:[#allocation3 + $0x30] sm:$0xff] }
 0x126   : > { %1266 = vst.msk [vmem:[#allocation3 + $0x8] sm:$0xff] %vm268_vm2, %v1258_v37  ;;  %v1263_v41 = vadd.f32 %v2590_v25, %v1153_v39  ;;  %v1472_v42 = vpop.f32.mrf.mxu1 }
 0x127   : > { %v1151_v19 = vld [vmem:[#allocation3 + $0x20] sm:$0xff]  ;;  %v1291_v43 = vld [vmem:[#allocation3 + $0x10] sm:$0xff] }
 0x128   : > { %1271 = vst.msk [vmem:[#allocation3 + $0x30] sm:$0xff] %vm268_vm2, %v1263_v41  ;;  %v1261_v45 = vadd.f32 %v1242_v36, %v1151_v19  ;;  %v1505_v46 = vadd.f32 %v2596_v38, %v1291_v43  ;;  %v2597_v47 = vpop.f32.mrf.mxu1 }
 0x129   : > { %v1154_v48 = vld [vmem:[#allocation3 + $0x38] sm:$0xff]  ;;  %v1289_v49 = vld [vmem:[#allocation3] sm:$0xff] }
 0x12a   : > { %1269 = vst.msk [vmem:[#allocation3 + $0x20] sm:$0xff] %vm268_vm2, %v1261_v45  ;;  %1513 = vst.msk [vmem:[#allocation3 + $0x10] sm:$0xff] %vm268_vm2, %v1505_v46  ;;  %v1264_v50 = vadd.f32 %v2591_v44, %v1154_v48  ;;  %v1503_v51 = vadd.f32 %v1472_v42, %v1289_v49  ;;  %v1475_v52 = vpop.f32.mrf.mxu1 }
 0x12b   : > { %v1152_v53 = vld [vmem:[#allocation3 + $0x28] sm:$0xff]  ;;  %v1292_v55 = vld [vmem:[#allocation3 + $0x18] sm:$0xff] }
 0x12c   : > { %1272 = vst.msk [vmem:[#allocation3 + $0x38] sm:$0xff] %vm268_vm2, %v1264_v50  ;;  %1511 = vst.msk [vmem:[#allocation3] sm:$0xff] %vm268_vm2, %v1503_v51  ;;  %v1262_v56 = vadd.f32 %v1245_v54, %v1152_v53  ;;  %v1506_v29 = vadd.f32 %v2597_v47, %v1292_v55 }
 0x12d   : > { %v1290_v40 = vld [vmem:[#allocation3 + $0x8] sm:$0xff] }
 0x12e   : > { %1270 = vst.msk [vmem:[#allocation3 + $0x28] sm:$0xff] %vm268_vm2, %v1262_v56  ;;  %1514 = vst.msk [vmem:[#allocation3 + $0x18] sm:$0xff] %vm268_vm2, %v1506_v29  ;;  %v1504_v57 = vadd.f32 %v1475_v52, %v1290_v40  ;;  %v2600_v58 = vpop.f32.mrf.mxu1 }
 0x12f   : > { %v1295_v60 = vld [vmem:[#allocation3 + $0x30] sm:$0xff] }
 0x130   : > { %1512 = vst.msk [vmem:[#allocation3 + $0x8] sm:$0xff] %vm268_vm2, %v1504_v57  ;;  %v1509_v62 = vadd.f32 %v2600_v58, %v1295_v60  ;;  %v1488_v63 = vpop.f32.mrf.mxu1 }
 0x131   : > { %v1293_v28 = vld [vmem:[#allocation3 + $0x20] sm:$0xff]  ;;  %v1538_v1 = vld [vmem:[#allocation3 + $0x10] sm:$0xff] }
 0x132   : > { %1517 = vst.msk [vmem:[#allocation3 + $0x30] sm:$0xff] %vm268_vm2, %v1509_v62  ;;  %v1507_v0 = vadd.f32 %v1488_v63, %v1293_v28  ;;  %v2601_v61 = vpop.f32.mrf.mxu1 }
 0x133   : > { %v1296_v2 = vld [vmem:[#allocation3 + $0x38] sm:$0xff]  ;;  %v2606_v3 = vpop.f32.mrf.mxu0  ;;  %v1536_v4 = vld [vmem:[#allocation3] sm:$0xff] }
 0x134   : > { %1515 = vst.msk [vmem:[#allocation3 + $0x20] sm:$0xff] %vm268_vm2, %v1507_v0  ;;  %v1510_v34 = vadd.f32 %v2601_v61, %v1296_v2  ;;  %v1491_v5 = vpop.f32.mrf.mxu1  ;;  %v1744_v6 = vadd.f32 %v2606_v3, %v1538_v1 }
 0x135   : > { %v1294_v7 = vld [vmem:[#allocation3 + $0x28] sm:$0xff]  ;;  %v1711_v8 = vpop.f32.mrf.mxu0  ;;  %v1539_v11 = vld [vmem:[#allocation3 + $0x18] sm:$0xff] }
 0x136   : > { %1518 = vst.msk [vmem:[#allocation3 + $0x38] sm:$0xff] %vm268_vm2, %v1510_v34  ;;  %v1508_v10 = vadd.f32 %v1491_v5, %v1294_v7  ;;  %v2616_v13 = vpop.f32.mrf.mxu1  ;;  %1752 = vst.msk [vmem:[#allocation3 + $0x10] sm:$0xff] %vm268_vm2, %v1744_v6  ;;  %v1742_v14 = vadd.f32 %v1711_v8, %v1536_v4 }
 0x137   : > { %v2607_v15 = vpop.f32.mrf.mxu0  ;;  %v1537_v59 = vld [vmem:[#allocation3 + $0x8] sm:$0xff] }
 0x138   : > { %1516 = vst.msk [vmem:[#allocation3 + $0x28] sm:$0xff] %vm268_vm2, %v1508_v10  ;;  %v1845_v16 = vpop.f32.mrf.mxu1  ;;  %1750 = vst.msk [vmem:[#allocation3] sm:$0xff] %vm268_vm2, %v1742_v14  ;;  %v1745_v17 = vadd.f32 %v2607_v15, %v1539_v11 }
 0x139   : > { %v1714_v18 = vpop.f32.mrf.mxu0  ;;  %v1542_v20 = vld [vmem:[#allocation3 + $0x30] sm:$0xff] }
 0x13a   : > { %v2617_v21 = vpop.f32.mrf.mxu1  ;;  %1753 = vst.msk [vmem:[#allocation3 + $0x18] sm:$0xff] %vm268_vm2, %v1745_v17  ;;  %v1743_v22 = vadd.f32 %v1714_v18, %v1537_v59 }
 0x13b   : > { %v1540_v9 = vld [vmem:[#allocation3 + $0x20] sm:$0xff] }
 0x13c   : > { %v2610_v23 = vpop.f32.mrf.mxu0  ;;  %v1848_v24 = vpop.f32.mrf.mxu1  ;;  %1751 = vst.msk [vmem:[#allocation3 + $0x8] sm:$0xff] %vm268_vm2, %v1743_v22 }
 0x13d   : > { %v1748_v25 = vadd.f32 %v2610_v23, %v1542_v20  ;;  %v1768_v26 = vld [vmem:[#allocation3 + $0x10] sm:$0xff]  ;;  %v1543_v27 = vld [vmem:[#allocation3 + $0x38] sm:$0xff] }
 0x13e   : > { %v1727_v12 = vpop.f32.mrf.mxu0  ;;  %v1878_v33 = vadd.f32 %v2616_v13, %v1768_v26  ;;  %v2620_v36 = vpop.f32.mrf.mxu1 }
 0x13f   : > { %1756 = vst.msk [vmem:[#allocation3 + $0x30] sm:$0xff] %vm268_vm2, %v1748_v25  ;;  %v1746_v30 = vadd.f32 %v1727_v12, %v1540_v9  ;;  %v1766_v32 = vld [vmem:[#allocation3] sm:$0xff]  ;;  %v1541_v35 = vld [vmem:[#allocation3 + $0x28] sm:$0xff] }
 0x140   : > { %v2611_v31 = vpop.f32.mrf.mxu0  ;;  %1886 = vst.msk [vmem:[#allocation3 + $0x10] sm:$0xff] %vm268_vm2, %v1878_v33  ;;  %v1876_v38 = vadd.f32 %v1845_v16, %v1766_v32  ;;  %v1861_v44 = vpop.f32.mrf.mxu1 }
 0x141   : > { %1754 = vst.msk [vmem:[#allocation3 + $0x20] sm:$0xff] %vm268_vm2, %v1746_v30  ;;  %v1749_v37 = vadd.f32 %v2611_v31, %v1543_v27  ;;  %v1769_v41 = vld [vmem:[#allocation3 + $0x18] sm:$0xff] }
 0x142   : > { %v1730_v39 = vpop.f32.mrf.mxu0  ;;  %1884 = vst.msk [vmem:[#allocation3] sm:$0xff] %vm268_vm2, %v1876_v38  ;;  %v1879_v19 = vadd.f32 %v2617_v21, %v1769_v41  ;;  %v2621_v51 = vpop.f32.mrf.mxu1 }
 0x143   : > { %1757 = vst.msk [vmem:[#allocation3 + $0x38] sm:$0xff] %vm268_vm2, %v1749_v37  ;;  %v1747_v42 = vadd.f32 %v1730_v39, %v1541_v35  ;;  %v1767_v43 = vld [vmem:[#allocation3 + $0x8] sm:$0xff] }
 0x144   : > { %1887 = vst.msk [vmem:[#allocation3 + $0x18] sm:$0xff] %vm268_vm2, %v1879_v19  ;;  %v1877_v45 = vadd.f32 %v1848_v24, %v1767_v43  ;;  %v1864_v60 = vpop.f32.mrf.mxu1 }
 0x145   : > { %1755 = vst.msk [vmem:[#allocation3 + $0x28] sm:$0xff] %vm268_vm2, %v1747_v42 }
 0x146   : > { %v1772_v46 = vld [vmem:[#allocation3 + $0x30] sm:$0xff]  ;;  %1885 = vst.msk [vmem:[#allocation3 + $0x8] sm:$0xff] %vm268_vm2, %v1877_v45 }
 0x147   : > { %v1882_v47 = vadd.f32 %v2620_v36, %v1772_v46  ;;  %v2626_v48 = vpop.f32.mrf.mxu0  ;;  %v1910_v50 = vld [vmem:[#allocation3 + $0x10] sm:$0xff] }
 0x148   : > { %v1770_v49 = vld [vmem:[#allocation3 + $0x20] sm:$0xff]  ;;  %v2124_v53 = vadd.f32 %v2626_v48, %v1910_v50 }
 0x149   : > { %1890 = vst.msk [vmem:[#allocation3 + $0x30] sm:$0xff] %vm268_vm2, %v1882_v47  ;;  %v1880_v52 = vadd.f32 %v1861_v44, %v1770_v49  ;;  %v2091_v54 = vpop.f32.mrf.mxu0  ;;  %v1908_v56 = vld [vmem:[#allocation3] sm:$0xff] }
 0x14a   : > { %v1773_v55 = vld [vmem:[#allocation3 + $0x38] sm:$0xff]  ;;  %2132 = vst.msk [vmem:[#allocation3 + $0x10] sm:$0xff] %vm268_vm2, %v2124_v53  ;;  %v2122_v40 = vadd.f32 %v2091_v54, %v1908_v56 }
 0x14b   : > { %1888 = vst.msk [vmem:[#allocation3 + $0x20] sm:$0xff] %vm268_vm2, %v1880_v52  ;;  %v1883_v29 = vadd.f32 %v2621_v51, %v1773_v55  ;;  %v2627_v57 = vpop.f32.mrf.mxu0  ;;  %v1911_v62 = vld [vmem:[#allocation3 + $0x18] sm:$0xff] }
 0x14c   : > { %v1771_v58 = vld [vmem:[#allocation3 + $0x28] sm:$0xff]  ;;  %2130 = vst.msk [vmem:[#allocation3] sm:$0xff] %vm268_vm2, %v2122_v40  ;;  %v2125_v28 = vadd.f32 %v2627_v57, %v1911_v62 }
 0x14d   : > { %1891 = vst.msk [vmem:[#allocation3 + $0x38] sm:$0xff] %vm268_vm2, %v1883_v29  ;;  %v1881_v63 = vadd.f32 %v1864_v60, %v1771_v58  ;;  %v2094_v0 = vpop.f32.mrf.mxu0  ;;  %v1909_v1 = vld [vmem:[#allocation3 + $0x8] sm:$0xff] }
 0x14e   : > { %2133 = vst.msk [vmem:[#allocation3 + $0x18] sm:$0xff] %vm268_vm2, %v2125_v28  ;;  %v2123_v61 = vadd.f32 %v2094_v0, %v1909_v1 }
 0x14f   : > { %1889 = vst.msk [vmem:[#allocation3 + $0x28] sm:$0xff] %vm268_vm2, %v1881_v63 }
 0x150   : > { %v1914_v2 = vld [vmem:[#allocation3 + $0x30] sm:$0xff]  ;;  %2131 = vst.msk [vmem:[#allocation3 + $0x8] sm:$0xff] %vm268_vm2, %v2123_v61  ;;  %v2630_v3 = vpop.f32.mrf.mxu0 }
 0x151   : > { %v2140_v34 = vld [vmem:[#allocation3 + $0x10] sm:$0xff]  ;;  %v2128_v4 = vadd.f32 %v2630_v3, %v1914_v2 }
 0x152   : > { %v1912_v5 = vld [vmem:[#allocation3 + $0x20] sm:$0xff]  ;;  %v2491_v6 = vpack.c.bf16 %v2140_v34, %v2140_v34  ;;  %v2107_v7 = vpop.f32.mrf.mxu0  ;;  %v2216_v21 = vmul.f32 %v2140_v34, %v2140_v34  ;;  %v2192_v27 = vsel %vm268_vm2, %v2140_v34, 0.0 }
 0x153   : > { %v2138_v8 = vld [vmem:[#allocation3] sm:$0xff]  ;;  %2136 = vst.msk [vmem:[#allocation3 + $0x30] sm:$0xff] %vm268_vm2, %v2128_v4  ;;  %v2126_v10 = vadd.f32 %v2107_v7, %v1912_v5  ;;  %v2186_v4 = vlaneseq }
 0x154   : > { %v1915_v11 = vld [vmem:[#allocation3 + $0x38] sm:$0xff]  ;;  %2180 = vst.msk [vmem:[%s3080_s18 + $0x8] sm:$0xf] %vm220_vm1, %v2491_v6  ;;  %v2489_v13 = vpack.c.bf16 %v2138_v8, %v2138_v8  ;;  %v2631_v14 = vpop.f32.mrf.mxu0  ;;  %v2214_v17 = vmul.f32 %v2138_v8, %v2138_v8  ;;  %v2189_v9 = vsel %vm268_vm2, %v2138_v8, 0.0  ;;  %v2225_v38 = vsel %vm268_vm2, %v2216_v21, 0.0 }
 0x155   : > { %v2141_v15 = vld [vmem:[#allocation3 + $0x18] sm:$0xff]  ;;  %2134 = vst.msk [vmem:[#allocation3 + $0x20] sm:$0xff] %vm268_vm2, %v2126_v10  ;;  %v2129_v59 = vadd.f32 %v2631_v14, %v1915_v11  ;;  %v2187_v10 = vshrl.u32 %v2186_v4, 7 }
 0x156   : > { %v1913_v16 = vld [vmem:[#allocation3 + $0x28] sm:$0xff]  ;;  %2178 = vst.msk [vmem:[%s3080_s18] sm:$0xf] %vm220_vm1, %v2489_v13  ;;  %v2492_v18 = vpack.c.bf16 %v2141_v15, %v2141_v15  ;;  %v2110_v20 = vpop.f32.mrf.mxu0  ;;  %v2222_v30 = vsel %vm268_vm2, %v2214_v17, 0.0  ;;  %v2217_v33 = vmul.f32 %v2141_v15, %v2141_v15  ;;  %v2194_v39 = vsel %vm268_vm2, %v2141_v15, 0.0 }
 0x157   : > { %v2139_v22 = vld [vmem:[#allocation3 + $0x8] sm:$0xff]  ;;  %2137 = vst.msk [vmem:[#allocation3 + $0x38] sm:$0xff] %vm268_vm2, %v2129_v59  ;;  %v2127_v23 = vadd.f32 %v2110_v20, %v1913_v16  ;;  %vm2188_vm9 = vcmp.eq.s32.totalorder %v2187_v10, 0 }
 0x158   : > { %2181 = vst.msk [vmem:[%s3080_s18 + $0xc] sm:$0xf] %vm220_vm1, %v2492_v18  ;;  %v2490_v24 = vpack.c.bf16 %v2139_v22, %v2139_v22  ;;  %v2190_v25 = vsel %vm268_vm2, %v2139_v22, 0.0  ;;  %v2215_v12 = vmul.f32 %v2139_v22, %v2139_v22  ;;  %v2227_v44 = vsel %vm268_vm2, %v2217_v33, 0.0 }
 0x159   : > { %v2191_v26 = vadd.f32 %v2190_v25, %v2189_v9  ;;  %2135 = vst.msk [vmem:[#allocation3 + $0x28] sm:$0xff] %vm268_vm2, %v2127_v23 }
 0x15a   : > { %2179 = vst.msk [vmem:[%s3080_s18 + $0x4] sm:$0xf] %vm220_vm1, %v2490_v24  ;;  %v2223_v31 = vsel %vm268_vm2, %v2215_v12, 0.0  ;;  %v2144_v32 = vld [vmem:[#allocation3 + $0x30] sm:$0xff] }
 0x15b   : > { %v2193_v35 = vadd.f32 %v2192_v27, %v2191_v26  ;;  %v2224_v36 = vadd.f32 %v2223_v31, %v2222_v30  ;;  %v2495_v37 = vpack.c.bf16 %v2144_v32, %v2144_v32  ;;  %v2220_v51 = vmul.f32 %v2144_v32, %v2144_v32 }
 0x15c   : > { %v2142_v41 = vld [vmem:[#allocation3 + $0x20] sm:$0xff]  ;;  %v2200_v57 = vsel %vm268_vm2, %v2144_v32, 0.0 }
 0x15d   : > { %v2226_v42 = vadd.f32 %v2225_v38, %v2224_v36  ;;  %2184 = vst.msk [vmem:[%s3080_s18 + $0x18] sm:$0xf] %vm220_vm1, %v2495_v37  ;;  %v2493_v19 = vpack.c.bf16 %v2142_v41, %v2142_v41  ;;  %v2195_v43 = vadd.f32 %v2194_v39, %v2193_v35  ;;  %v2196_v45 = vsel %vm268_vm2, %v2142_v41, 0.0 }
 0x15e   : > { %v2218_v46 = vmul.f32 %v2142_v41, %v2142_v41  ;;  %v2145_v47 = vld [vmem:[#allocation3 + $0x38] sm:$0xff]  ;;  %v2233_v28 = vsel %vm268_vm2, %v2220_v51, 0.0 }
 0x15f   : > { %2182 = vst.msk [vmem:[%s3080_s18 + $0x10] sm:$0xf] %vm220_vm1, %v2493_v19  ;;  %v2197_v48 = vadd.f32 %v2196_v45, %v2195_v43  ;;  %v2228_v49 = vadd.f32 %v2227_v44, %v2226_v42  ;;  %v2496_v50 = vpack.c.bf16 %v2145_v47, %v2145_v47  ;;  %v2221_v58 = vmul.f32 %v2145_v47, %v2145_v47 }
 0x160   : > { %v2229_v52 = vsel %vm268_vm2, %v2218_v46, 0.0  ;;  %v2143_v53 = vld [vmem:[#allocation3 + $0x28] sm:$0xff]  ;;  %v2202_v0 = vsel %vm268_vm2, %v2145_v47, 0.0 }
 0x161   : > { %v2230_v54 = vadd.f32 %v2229_v52, %v2228_v49  ;;  %2185 = vst.msk [vmem:[%s3080_s18 + $0x1c] sm:$0xf] %vm220_vm1, %v2496_v50  ;;  %v2494_v55 = vpack.c.bf16 %v2143_v53, %v2143_v53  ;;  %v2198_v56 = vsel %vm268_vm2, %v2143_v53, 0.0  ;;  %v2219_v29 = vmul.f32 %v2143_v53, %v2143_v53 }
 0x162   : > { %v2199_v40 = vadd.f32 %v2198_v56, %v2197_v48  ;;  %v2235_v2 = vsel %vm268_vm2, %v2221_v58, 0.0 }
 0x163   : > { %2183 = vst.msk [vmem:[%s3080_s18 + $0x14] sm:$0xf] %vm220_vm1, %v2494_v55  ;;  %v2231_v60 = vsel %vm268_vm2, %v2219_v29, 0.0 }
 0x164   : > { %v2201_v62 = vadd.f32 %v2200_v57, %v2199_v40  ;;  %v2232_v63 = vadd.f32 %v2231_v60, %v2230_v54 }
 0x166   : > { %v2203_v1 = vadd.f32 %v2202_v0, %v2201_v62  ;;  %v2234_v61 = vadd.f32 %v2233_v28, %v2232_v63 }
 0x168   : > { %v2204_v3 = vrot.slane %v2203_v1, 4  ;;  %v2236_v34 = vadd.f32 %v2235_v2, %v2234_v61 }
 0x16a   : > { %v2205_v5 = vadd.f32 %v2204_v3, %v2203_v1  ;;  %v2237_v6 = vrot.slane %v2236_v34, 4 }
 0x16c   : > { %v2206_v7 = vrot.slane %v2205_v5, 2  ;;  %v2238_v8 = vadd.f32 %v2237_v6, %v2236_v34 }
 0x16e   : > { %v2207_v11 = vadd.f32 %v2206_v7, %v2205_v5  ;;  %v2239_v13 = vrot.slane %v2238_v8, 2 }
 0x170   : > { %v2208_v14 = vrot.slane %v2207_v11, 1  ;;  %v2240_v15 = vadd.f32 %v2239_v13, %v2238_v8 }
 0x172   : > { %v2209_v59 = vadd.f32 %v2208_v14, %v2207_v11  ;;  %v2241_v16 = vrot.slane %v2240_v15, 1 }
 0x174   : > { %v2212_v17 = vsel %vm2188_vm9, %v2209_v59, 0.0  ;;  %v2242_v18 = vadd.f32 %v2241_v16, %v2240_v15 }
 0x175   : > { %2213 = vst.msk [vmem:[%s214_s22] sm:$0xff] %vm268_vm2, %v2212_v17 }
 0x176   : > { %v2243_v20 = vsel %vm2188_vm9, %v2242_v18, 0.0 }
 0x177   : > { %2244 = vst.msk [vmem:[%s218_s25] sm:$0xff] %vm268_vm2, %v2243_v20 }
 0x178 PF: > { %s15_s15 = sadd.s32 1, %s2672_s15  }
 0x179   : > { %p12_p4 = scmp.ge.s32.totalorder %s15_s15, 4  }
 0x17b   :  { %14 = sbr.rel (!%p12_p4) target bundleno = 1 (0x1), region = 92 }

// kernel: simple_block_forward.5
= control target key start
LH: loop header
LB: loop body
LE: loop exit
PB: predicated region body
PF: predicated region fallthrough
CT: control target
= control target key end

     0   :  { %s2381_s15 = smov 0   ;;  %s2753_s0 = inlined_call_operand.vmem [shape: bf16[8,9,9,4], index: 0, kind: input, shape index: {}]   ;;  %s2754_s1 = inlined_call_operand.vmem [shape: bf16[9,4,8], index: 1, kind: input, shape index: {}]   ;;  %s2755_s2 = inlined_call_operand.vmem [shape: bf16[2,64,8], index: 2, kind: output, shape index: {0}]   ;;  %s2756_s3 = inlined_call_operand.vmem [shape: f32[2,8,8], index: 3, kind: output, shape index: {1}]   ;;  %s2757_s4 = inlined_call_operand.vmem [shape: f32[2,8,8], index: 4, kind: output, shape index: {2}]  }
   0x1 LB: > { %s2387_s16 = sadd.s32 4294967295, %s2353_s15   ;;  %p2012_p0 = scmp.ge.s32.totalorder %s2353_s15, 1  ;;  %s2353_s15 = sphi %s2381_s15, %s15_s15  }
   0x2   : > { %p169_p1 = scmp.lt.s32.totalorder %s2353_s15, 3 }
   0x4   : > { %p170_p2 = pnand %p2012_p0, %p169_p1 }
   0x5   : > { %s2013_s19 = sshll.u32 (!%p170_p2), %s2387_s16, 2  ;;  %p211_p4 = scmp.lt.s32.totalorder (!%p170_p2), %s2387_s16, 1 }
   0x6   : > { %173 = sbr.rel (%p170_p2) target bundleno = 339 (0x153), region = 28  ;;  %p205_p3 = scmp.lt.s32.totalorder (!%p170_p2), %s2013_s19, 7 }
   0xb   : > { %v250_v0 = vld [vmem:[%s2754_s1] sm:$0x3]  ;;  %vm284_vm0 = vcmask 1041408   ;;  %vm225_vm1 = vcmask 64512   ;;  %v2035_v2 = vld [vmem:[%s2754_s1 + $0x2] sm:$0x3] }
   0xc   : > { %2303 = vmatprep.subr.msk.bf16.mxu0 %vm284_vm0, %v250_v0  ;;  %2304 = vmatprep.subr.msk.bf16.mxu1 %vm284_vm0, %v250_v0  ;;  %v286_v1 = vsel %vm284_vm0, %v250_v0, 0  ;;  %v2044_v3 = vld [vmem:[%s2754_s1 + $0x4] sm:$0x3]  ;;  %s2761_s19 = smov (!%p205_p3, %s2013_s19), 7  ;;  %v2355_v4 = vmov 0.0   ;;  %vm271_vm2 = vcmask 31744  }
   0xd   : > { %2212 = vmatpush3.bf16.msra.mxu0 %v286_v1  ;;  %2302 = vmatpush3.bf16.msra.mxu1 %v286_v1  ;;  %228 = vst.msk [vmem:[#allocation2 + $0x10] sm:$0xff] %vm225_vm1, %v2355_v4  ;;  %226 = vst.msk [vmem:[#allocation2] sm:$0xff] %vm225_vm1, %v2355_v4  ;;  %s2313_s24 = smul.u32 72, %s2761_s19  ;;  %v421_v5 = vsel %vm284_vm0, %v2035_v2, 0  ;;  %v670_v6 = vsel %vm284_vm0, %v2044_v3, 0  ;;  %s2763_s16 = smov (!%p211_p4, %s2387_s16), 1 }
   0xe   : > { %2305 = vmatprep.subr.msk.bf16.mxu1 %vm284_vm0, %v2035_v2  ;;  %2306 = vmatprep.subr.msk.bf16.mxu0 %vm284_vm0, %v2044_v3  ;;  %227 = vst.msk [vmem:[#allocation2 + $0x8] sm:$0xff] %vm225_vm1, %v2355_v4  ;;  %229 = vst.msk [vmem:[#allocation2 + $0x18] sm:$0xff] %vm225_vm1, %v2355_v4  ;;  %v2061_v8 = vld [vmem:[%s2754_s1 + $0x6] sm:$0x3]  ;;  %v2078_v9 = vld [vmem:[%s2754_s1 + $0x8] sm:$0x3] }
   0xf   : > { %230 = vst.msk [vmem:[#allocation2 + $0x20] sm:$0xff] %vm225_vm1, %v2355_v4  ;;  %231 = vst.msk [vmem:[#allocation2 + $0x28] sm:$0xff] %vm225_vm1, %v2355_v4  ;;  %s2417_s27 = scalar_lea.vmem %s2753_s0, %s2313_s24  ;;  %vm528_vm3 = vsmask.f32 3328  ;;  %vm529_vm4 = vsmask.f32 7440 }
  0x10   : > { %232 = vst.msk [vmem:[#allocation2 + $0x30] sm:$0xff] %vm225_vm1, %v2355_v4  ;;  %233 = vst.msk [vmem:[#allocation2 + $0x38] sm:$0xff] %vm225_vm1, %v2355_v4  ;;  %v2323_v7 = vld [vmem:[%s2417_s27] ss:$8 sps:$4 sm:$0xff]   ;;  %v2325_v11 = vld [vmem:[%s2417_s27 + $0x10] ss:$8 sps:$4 sm:$0xff]  }
  0x11   : > { %v2324_v10 = vld [vmem:[%s2417_s27 + $0x20] ss:$8 sps:$4 sm:$0xff]   ;;  %2213 = vmatprep.mubr.msk.bf16.mxu0 %vm271_vm2, %v2323_v7  ;;  %v2326_v12 = vld [vmem:[%s2417_s27 + $0x30] ss:$8 sps:$4 sm:$0xff]   ;;  %v805_v14 = vsel %vm284_vm0, %v2061_v8, 0  ;;  %v2438_v15 = vsel %vm284_vm0, %v2078_v9, 0  ;;  %vm2459_vm5 = vmor %vm528_vm3, %vm529_vm4 }
  0x12   : > { %2217 = vmatprep.mubr.msk.bf16.mxu1 %vm271_vm2, %v2324_v10  ;;  %2214 = vmatmul.mubr.msk.bf16.vlgmr.msra.gmra.mxu0 %vm271_vm2, %v2325_v11  ;;  %v2327_v13 = vld [vmem:[%s2417_s27 + $0x48] ss:$8 sps:$4 sm:$0xff]   ;;  %v504_v16 = vld [vmem:[%s2417_s27] sm:$0xf]  ;;  %v505_v17 = vld [vmem:[%s2417_s27 + $0x4] sm:$0x1] }
  0x13   : > { %2218 = vmatmul.mubr.msk.bf16.vlgmr.msra.gmra.mxu1 %vm271_vm2, %v2326_v12  ;;  %2232 = vmatpush3.bf16.msra.mxu0 %v670_v6  ;;  %v506_v18 = vld [vmem:[%s2417_s27 + $0x8] sm:$0xf]  ;;  %v2328_v19 = vld [vmem:[%s2417_s27 + $0x58] ss:$8 sps:$4 sm:$0xff]   ;;  %v507_v20 = vld [vmem:[%s2417_s27 + $0xc] sm:$0x1] }
  0x14   : > { %2222 = vmatpush3.bf16.msra.mxu1 %v421_v5  ;;  %2223 = vmatprep.mubr.msk.bf16.mxu1 %vm271_vm2, %v2327_v13  ;;  %v532_v21 = vshrl.u32 %v504_v16, 16  ;;  %v535_v22 = vshll.u32 %v504_v16, 16  ;;  %v541_v23 = vshll.u32 %v505_v17, 16  ;;  %v546_v24 = vshrl.u32 %v506_v18, 16  ;;  %v508_v27 = vld [vmem:[%s2417_s27 + $0x10] sm:$0xf] }
  0x15   : > { %2307 = vmatprep.subr.msk.bf16.mxu1 %vm284_vm0, %v2061_v8  ;;  %2308 = vmatprep.subr.msk.bf16.mxu0 %vm284_vm0, %v2078_v9  ;;  %v549_v25 = vshll.u32 %v506_v18, 16  ;;  %v555_v26 = vshll.u32 %v507_v20, 16  ;;  %v509_v28 = vld [vmem:[%s2417_s27 + $0x14] sm:$0x1]  ;;  %v510_v33 = vld [vmem:[%s2417_s27 + $0x18] sm:$0xf] }
  0x16   : > { %v534_v29 = vrot.slane %v532_v21, 4  ;;  %v537_v30 = vrot.slane %v535_v22, 5  ;;  %v543_v31 = vrot.slane %v541_v23, 5  ;;  %v548_v32 = vrot.slane %v546_v24, 4  ;;  %v511_v36 = vld [vmem:[%s2417_s27 + $0x1c] sm:$0x1] }
  0x17   : > { %v551_v34 = vrot.slane %v549_v25, 5  ;;  %v557_v35 = vrot.slane %v555_v26, 5  ;;  %v560_v37 = vshrl.u32 %v508_v27, 16  ;;  %v563_v38 = vshll.u32 %v508_v27, 16  ;;  %v2455_v39 = vld [vmem:[%s2754_s1 + $0xa] sm:$0x3] }
  0x18   : > { %v538_v40 = vor.u32 %v537_v30, %v534_v29  ;;  %v569_v41 = vshll.u32 %v509_v28, 16  ;;  %v574_v42 = vshrl.u32 %v510_v33, 16  ;;  %v577_v43 = vshll.u32 %v510_v33, 16  ;;  %v2329_v53 = vld [vmem:[%s2417_s27 + $0x68] ss:$8 sps:$4 sm:$0xff]   ;;  %s2157_s14 = sshll.u32 %s2763_s16, 5 }
  0x19   : > { %v552_v45 = vor.u32 %v551_v34, %v548_v32  ;;  %v562_v46 = vrot.slane %v560_v37, 4  ;;  %v565_v47 = vrot.slane %v563_v38, 5  ;;  %v583_v48 = vshll.u32 %v511_v36, 16  ;;  %v2330_v59 = vld [vmem:[%s2417_s27 + $0x78] ss:$8 sps:$4 sm:$0xff]   ;;  %s2703_s19 = scalar_lea.vmem %s2755_s2, %s2157_s14  ;;  %s2017_s20 = sshll.u32 %s2763_s16, 3 }
  0x1a   : > { %v539_v49 = vrot.slane %v538_v40, 4  ;;  %v571_v50 = vrot.slane %v569_v41, 5  ;;  %v576_v51 = vrot.slane %v574_v42, 4  ;;  %v579_v52 = vrot.slane %v577_v43, 5  ;;  %v512_v60 = vld [vmem:[%s2417_s27 + $0x20] sm:$0xf]  ;;  %s219_s23 = scalar_lea.vmem %s2756_s3, %s2017_s20  ;;  %s223_s26 = scalar_lea.vmem %s2757_s4, %s2017_s20 }
  0x1b   : > { %2224 = vmatmul.mubr.msk.bf16.vlgmr.msra.gmra.mxu1 %vm271_vm2, %v2328_v19  ;;  %v553_v54 = vrot.slane %v552_v45, 4  ;;  %v566_v55 = vor.u32 %v565_v47, %v562_v46  ;;  %v585_v56 = vrot.slane %v583_v48, 5  ;;  %v513_v61 = vld [vmem:[%s2417_s27 + $0x24] sm:$0x1]  ;;  %v514_v0 = vld [vmem:[%s2417_s27 + $0x28] sm:$0xf] }
  0x1c   : > { %2242 = vmatpush3.bf16.msra.mxu1 %v805_v14  ;;  %v544_v57 = vsel %vm2459_vm5, %v539_v49, %v543_v31  ;;  %v580_v58 = vor.u32 %v579_v52, %v576_v51  ;;  %2227 = vmatprep.mubr.msk.bf16.mxu1 %vm271_vm2, %v2329_v53  ;;  %v515_v1 = vld [vmem:[%s2417_s27 + $0x2c] sm:$0x1]  ;;  %v588_v2 = vshrl.u32 %v512_v60, 16  ;;  %v591_v5 = vshll.u32 %v512_v60, 16  ;;  %v516_v7 = vld [vmem:[%s2417_s27 + $0x30] sm:$0xf] }
  0x1d   : > { %2309 = vmatprep.subr.msk.bf16.mxu1 %vm284_vm0, %v2455_v39  ;;  %v558_v62 = vsel %vm2459_vm5, %v553_v54, %v557_v35  ;;  %v567_v63 = vrot.slane %v566_v55, 4  ;;  %v597_v6 = vshll.u32 %v513_v61, 16  ;;  %v602_v10 = vshrl.u32 %v514_v0, 16  ;;  %v517_v12 = vld [vmem:[%s2417_s27 + $0x34] sm:$0x1] }
  0x1e   : > { %v2045_v3 = vcombine.low %v544_v57, %v558_v62  ;;  %v581_v4 = vrot.slane %v580_v58, 4  ;;  %v590_v9 = vrot.slane %v588_v2, 4  ;;  %v605_v11 = vshll.u32 %v514_v0, 16  ;;  %v518_v18 = vld [vmem:[%s2417_s27 + $0x38] sm:$0xf] }
  0x1f   : > { %v572_v8 = vsel %vm2459_vm5, %v567_v63, %v571_v50  ;;  %v593_v14 = vrot.slane %v591_v5, 5  ;;  %v599_v16 = vrot.slane %v597_v6, 5  ;;  %v611_v17 = vshll.u32 %v515_v1, 16  ;;  %v2112_v19 = vld [vmem:[%s2754_s1 + $0xc] sm:$0x3] }
  0x20   : > { %2233 = vmatprep.mubr.msk.bf16.mxu0 %vm271_vm2, %v2045_v3  ;;  %v586_v13 = vsel %vm2459_vm5, %v581_v4, %v585_v56  ;;  %v604_v21 = vrot.slane %v602_v10, 4  ;;  %v607_v22 = vrot.slane %v605_v11, 5  ;;  %v519_v23 = vld [vmem:[%s2417_s27 + $0x3c] sm:$0x1]  ;;  %v616_v24 = vshrl.u32 %v516_v7, 16 }
  0x21   : > { %v2046_v20 = vcombine.low %v572_v8, %v586_v13  ;;  %v594_v25 = vor.u32 %v593_v14, %v590_v9  ;;  %v613_v26 = vrot.slane %v611_v17, 5  ;;  %v619_v27 = vshll.u32 %v516_v7, 16  ;;  %v2331_v36 = vld [vmem:[%s2417_s27 + $0x90] ss:$8 sps:$4 sm:$0xff]   ;;  %v2332_v46 = vld [vmem:[%s2417_s27 + $0xa0] ss:$8 sps:$4 sm:$0xff]  }
  0x22   : > { %v625_v28 = vshll.u32 %v517_v12, 16  ;;  %v608_v29 = vor.u32 %v607_v22, %v604_v21  ;;  %v618_v30 = vrot.slane %v616_v24, 4  ;;  %v630_v31 = vshrl.u32 %v518_v18, 16  ;;  %v2129_v53 = vld [vmem:[%s2754_s1 + $0xe] sm:$0x3] }
  0x23   : > { %2228 = vmatmul.mubr.msk.bf16.gmra.mxu1 %vm271_vm2, %v2330_v59  ;;  %2234 = vmatmul.mubr.msk.bf16.vlgmr.msra.gmra.mxu0 %vm271_vm2, %v2046_v20  ;;  %v633_v32 = vshll.u32 %v518_v18, 16  ;;  %v595_v33 = vrot.slane %v594_v25, 4  ;;  %v621_v34 = vrot.slane %v619_v27, 5  ;;  %v639_v35 = vshll.u32 %v519_v23, 16  ;;  %v2334_v59 = vld [vmem:[%s2417_s27 + $0xc0] ss:$8 sps:$4 sm:$0xff]  }
  0x24   : > { %2252 = vmatpush3.bf16.msra.mxu0 %v2438_v15  ;;  %v609_v37 = vrot.slane %v608_v29, 4  ;;  %v632_v38 = vrot.slane %v630_v31, 4  ;;  %v627_v43 = vrot.slane %v625_v28, 5  ;;  %2243 = vmatprep.mubr.msk.bf16.mxu1 %vm271_vm2, %v2331_v36  ;;  %v2333_v15 = vld [vmem:[%s2417_s27 + $0xb0] ss:$8 sps:$4 sm:$0xff]   ;;  %v1186_v51 = vsel %vm284_vm0, %v2455_v39, 0 }
  0x25   : > { %v635_v40 = vrot.slane %v633_v32, 5  ;;  %2310 = vmatprep.subr.msk.bf16.mxu0 %vm284_vm0, %v2112_v19  ;;  %v600_v41 = vsel %vm2459_vm5, %v595_v33, %v599_v16  ;;  %v622_v42 = vor.u32 %v621_v34, %v618_v30  ;;  %v641_v45 = vrot.slane %v639_v35, 5  ;;  %v2335_v39 = vld [vmem:[%s2417_s27 + $0xd8] ss:$8 sps:$4 sm:$0xff]   ;;  %v2087_v60 = vld [vmem:[%s2417_s27 + $0x90] sm:$0xf] }
  0x26   : > { %v614_v47 = vsel %vm2459_vm5, %v609_v37, %v613_v26  ;;  %v1320_v57 = vsel %vm284_vm0, %v2112_v19, 0  ;;  %v2517_v58 = vsel %vm284_vm0, %v2129_v53, 0  ;;  %v2088_v61 = vld [vmem:[%s2417_s27 + $0x94] sm:$0x1]  ;;  %v2089_v62 = vld [vmem:[%s2417_s27 + $0x98] sm:$0xf] }
  0x27   : > { %v636_v48 = vor.u32 %v635_v40, %v632_v38  ;;  %v2047_v49 = vcombine.low %v600_v41, %v614_v47  ;;  %v623_v50 = vrot.slane %v622_v42, 4  ;;  %v2090_v63 = vld [vmem:[%s2417_s27 + $0x9c] sm:$0x1]  ;;  %v1048_v0 = vshrl.u32 %v2087_v60, 16  ;;  %v2091_v4 = vld [vmem:[%s2417_s27 + $0xa0] sm:$0xf] }
  0x28   : > { %v1051_v1 = vshll.u32 %v2087_v60, 16  ;;  %v1057_v2 = vshll.u32 %v2088_v61, 16  ;;  %v1062_v3 = vshrl.u32 %v2089_v62, 16  ;;  %v2336_v5 = vld [vmem:[%s2417_s27 + $0xe8] ss:$8 sps:$4 sm:$0xff]   ;;  %v1065_v6 = vshll.u32 %v2089_v62, 16 }
  0x29   : > { %v637_v52 = vrot.slane %v636_v48, 4  ;;  %2237 = vmatprep.mubr.msk.bf16.mxu0 %vm271_vm2, %v2047_v49  ;;  %v628_v54 = vsel %vm2459_vm5, %v623_v50, %v627_v43  ;;  %v1071_v7 = vshll.u32 %v2090_v63, 16  ;;  %v2092_v8 = vld [vmem:[%s2417_s27 + $0xa4] sm:$0x1]  ;;  %v2093_v9 = vld [vmem:[%s2417_s27 + $0xa8] sm:$0xf] }
  0x2a   : > { %v1050_v10 = vrot.slane %v1048_v0, 4  ;;  %v1053_v11 = vrot.slane %v1051_v1, 5  ;;  %v1059_v12 = vrot.slane %v1057_v2, 5  ;;  %v1064_v13 = vrot.slane %v1062_v3, 4  ;;  %v2094_v14 = vld [vmem:[%s2417_s27 + $0xac] sm:$0x1] }
  0x2b   : > { %2244 = vmatmul.mubr.msk.bf16.vlgmr.msra.gmra.mxu1 %vm271_vm2, %v2332_v46  ;;  %v642_v55 = vsel %vm2459_vm5, %v637_v52, %v641_v45  ;;  %v2337_v16 = vld [vmem:[%s2417_s27 + $0xf8] ss:$8 sps:$4 sm:$0xff]   ;;  %v1067_v17 = vrot.slane %v1065_v6, 5  ;;  %v1073_v18 = vrot.slane %v1071_v7, 5  ;;  %v1076_v19 = vshrl.u32 %v2091_v4, 16 }
  0x2c   : > { %2247 = vmatprep.mubr.msk.bf16.mxu1 %vm271_vm2, %v2333_v15  ;;  %2262 = vmatpush3.bf16.msra.mxu1 %v1186_v51  ;;  %v2048_v56 = vcombine.low %v628_v54, %v642_v55  ;;  %v1079_v20 = vshll.u32 %v2091_v4, 16  ;;  %v1054_v21 = vor.u32 %v1053_v11, %v1050_v10  ;;  %v1085_v22 = vshll.u32 %v2092_v8, 16  ;;  %v2095_v25 = vld [vmem:[%s2417_s27 + $0xb0] sm:$0xf]  ;;  %v2096_v31 = vld [vmem:[%s2417_s27 + $0xb4] sm:$0x1] }
  0x2d   : > { %2311 = vmatprep.subr.msk.bf16.mxu1 %vm284_vm0, %v2129_v53  ;;  %v1090_v23 = vshrl.u32 %v2093_v9, 16  ;;  %v1093_v24 = vshll.u32 %v2093_v9, 16  ;;  %v2537_v26 = vld [vmem:[%s2754_s1 + $0x10] sm:$0x3]  ;;  %v1068_v27 = vor.u32 %v1067_v17, %v1064_v13  ;;  %v1078_v28 = vrot.slane %v1076_v19, 4 }
  0x2e   : > { %2238 = vmatmul.mubr.msk.bf16.gmra.mxu0 %vm271_vm2, %v2048_v56  ;;  %v1081_v29 = vrot.slane %v1079_v20, 5  ;;  %v1099_v30 = vshll.u32 %v2094_v14, 16  ;;  %v1055_v32 = vrot.slane %v1054_v21, 4  ;;  %v1087_v33 = vrot.slane %v1085_v22, 5  ;;  %v2097_v36 = vld [vmem:[%s2417_s27 + $0xb8] sm:$0xf] }
  0x2f   : > { %2253 = vmatprep.mubr.msk.bf16.mxu0 %vm271_vm2, %v2335_v39  ;;  %v1092_v34 = vrot.slane %v1090_v23, 4  ;;  %v1095_v35 = vrot.slane %v1093_v24, 5  ;;  %v1069_v37 = vrot.slane %v1068_v27, 4  ;;  %v2098_v41 = vld [vmem:[%s2417_s27 + $0xbc] sm:$0x1]  ;;  %v1104_v42 = vshrl.u32 %v2095_v25, 16 }
  0x30   : > { %v1082_v38 = vor.u32 %v1081_v29, %v1078_v28  ;;  %v1101_v40 = vrot.slane %v1099_v30, 5  ;;  %v1060_v43 = vsel %vm2459_vm5, %v1055_v32, %v1059_v12  ;;  %v1107_v46 = vshll.u32 %v2095_v25, 16  ;;  %v2099_v48 = vld [vmem:[%s2417_s27 + $0xc0] sm:$0xf]  ;;  %v2100_v15 = vld [vmem:[%s2417_s27 + $0xc4] sm:$0x1] }
  0x31   : > { %v1096_v45 = vor.u32 %v1095_v35, %v1092_v34  ;;  %v1113_v47 = vshll.u32 %v2096_v31, 16  ;;  %v2338_v49 = vld [vmem:[%s2417_s27 + $0x108] ss:$8 sps:$4 sm:$0xff]   ;;  %v1074_v50 = vsel %vm2459_vm5, %v1069_v37, %v1073_v18  ;;  %v1106_v52 = vrot.slane %v1104_v42, 4  ;;  %v2340_v24 = vld [vmem:[%s2417_s27 + $0x18] ss:$8 sps:$4 sm:$0xff]  }
  0x32   : > { %v1083_v51 = vrot.slane %v1082_v38, 4  ;;  %v1118_v53 = vshrl.u32 %v2097_v36, 16  ;;  %v2101_v54 = vld [vmem:[%s2417_s27 + $0xc8] sm:$0xf]  ;;  %v2104_v55 = vcombine.low %v1060_v43, %v1074_v50  ;;  %v1109_v56 = vrot.slane %v1107_v46, 5 }
  0x33   : > { %2248 = vmatmul.mubr.msk.bf16.gmra.mxu1 %vm271_vm2, %v2334_v59  ;;  %v1097_v39 = vrot.slane %v1096_v45, 4  ;;  %v1121_v61 = vshll.u32 %v2097_v36, 16  ;;  %v1127_v62 = vshll.u32 %v2098_v41, 16  ;;  %v1132_v1 = vshrl.u32 %v2099_v48, 16  ;;  %v2339_v3 = vld [vmem:[%s2417_s27 + $0x8] ss:$8 sps:$4 sm:$0xff]  }
  0x34   : > { %v1088_v59 = vsel %vm2459_vm5, %v1083_v51, %v1087_v33  ;;  %v1120_v60 = vrot.slane %v1118_v53, 4  ;;  %2263 = vmatprep.mubr.msk.bf16.mxu1 %vm271_vm2, %v2104_v55  ;;  %v1110_v0 = vor.u32 %v1109_v56, %v1106_v52  ;;  %v1135_v2 = vshll.u32 %v2099_v48, 16  ;;  %v2343_v34 = vld [vmem:[%s2417_s27 + $0x50] ss:$8 sps:$4 sm:$0xff]   ;;  %v1537_v35 = vld [vmem:[%s2417_s27 + $0x8] sm:$0xf] }
  0x35   : > { %v1102_v63 = vsel %vm2459_vm5, %v1097_v39, %v1101_v40  ;;  %v1123_v6 = vrot.slane %v1121_v61, 5  ;;  %v1141_v7 = vshll.u32 %v2100_v15, 16  ;;  %v1134_v9 = vrot.slane %v1132_v1, 4  ;;  %v1538_v36 = vld [vmem:[%s2417_s27 + $0xc] sm:$0x1] }
  0x36   : > { %2254 = vmatmul.mubr.msk.bf16.vlgmr.msra.gmra.mxu0 %vm271_vm2, %v2336_v5  ;;  %v2105_v4 = vcombine.low %v1088_v59, %v1102_v63  ;;  %v1115_v5 = vrot.slane %v1113_v47, 5  ;;  %v1111_v8 = vrot.slane %v1110_v0, 4  ;;  %v1137_v10 = vrot.slane %v1135_v2, 5  ;;  %v1539_v38 = vld [vmem:[%s2417_s27 + $0x10] sm:$0xf] }
  0x37   : > { %2257 = vmatprep.mubr.msk.bf16.mxu0 %vm271_vm2, %v2337_v16  ;;  %2272 = vmatpush3.bf16.msra.mxu0 %v1320_v57  ;;  %v2102_v57 = vld [vmem:[%s2417_s27 + $0xcc] sm:$0x1]  ;;  %v1146_v11 = vshrl.u32 %v2101_v54, 16  ;;  %v1124_v12 = vor.u32 %v1123_v6, %v1120_v60  ;;  %v1129_v13 = vrot.slane %v1127_v62, 5  ;;  %v1149_v14 = vshll.u32 %v2101_v54, 16 }
  0x38   : > { %2312 = vmatprep.subr.msk.bf16.mxu0 %vm284_vm0, %v2537_v26  ;;  %v1155_v16 = vshll.u32 %v2102_v57, 16  ;;  %v1138_v17 = vor.u32 %v1137_v10, %v1134_v9  ;;  %v1116_v19 = vsel %vm2459_vm5, %v1111_v8, %v1115_v5  ;;  %v1143_v21 = vrot.slane %v1141_v7, 5  ;;  %v1540_v40 = vld [vmem:[%s2417_s27 + $0x14] sm:$0x1]  ;;  %v2342_v42 = vld [vmem:[%s2417_s27 + $0x38] ss:$8 sps:$4 sm:$0xff]  }
  0x39   : > { %v1148_v18 = vrot.slane %v1146_v11, 4  ;;  %v1125_v20 = vrot.slane %v1124_v12, 4  ;;  %v1151_v22 = vrot.slane %v1149_v14, 5  ;;  %v1700_v32 = vsel %vm284_vm0, %v2537_v26, 0  ;;  %v1541_v48 = vld [vmem:[%s2417_s27 + $0x18] sm:$0xf] }
  0x3a   : > { %v1139_v23 = vrot.slane %v1138_v17, 4  ;;  %v1157_v28 = vrot.slane %v1155_v16, 5  ;;  %v1562_v26 = vshrl.u32 %v1537_v35, 16  ;;  %v1565_v41 = vshll.u32 %v1537_v35, 16  ;;  %v1542_v50 = vld [vmem:[%s2417_s27 + $0x1c] sm:$0x1] }
  0x3b   : > { %2264 = vmatmul.mubr.msk.bf16.vlgmr.msra.gmra.mxu1 %vm271_vm2, %v2105_v4  ;;  %v1130_v25 = vsel %vm2459_vm5, %v1125_v20, %v1129_v13  ;;  %v1152_v27 = vor.u32 %v1151_v22, %v1148_v18  ;;  %v1571_v43 = vshll.u32 %v1538_v36, 16  ;;  %v1576_v45 = vshrl.u32 %v1539_v38, 16  ;;  %v1543_v51 = vld [vmem:[%s2417_s27 + $0x20] sm:$0xf]  ;;  %v1544_v39 = vld [vmem:[%s2417_s27 + $0x24] sm:$0x1] }
  0x3c   : > { %2282 = vmatpush3.bf16.msra.mxu1 %v2517_v58  ;;  %v2106_v29 = vcombine.low %v1116_v19, %v1130_v25  ;;  %v2341_v58 = vld [vmem:[%s2417_s27 + $0x28] ss:$8 sps:$4 sm:$0xff]   ;;  %v1144_v30 = vsel %vm2459_vm5, %v1139_v23, %v1143_v21  ;;  %v1579_v46 = vshll.u32 %v1539_v38, 16  ;;  %v1585_v47 = vshll.u32 %v1540_v40, 16  ;;  %v1548_v21 = vld [vmem:[%s2417_s27 + $0x34] sm:$0x1] }
  0x3d   : > { %v1153_v31 = vrot.slane %v1152_v27, 4  ;;  %v1564_v15 = vrot.slane %v1562_v26, 4  ;;  %v1573_v52 = vrot.slane %v1571_v43, 5  ;;  %v1578_v53 = vrot.slane %v1576_v45, 4  ;;  %v2344_v56 = vld [vmem:[%s2417_s27 + $0x60] ss:$8 sps:$4 sm:$0xff]  }
  0x3e   : > { %2258 = vmatmul.mubr.msk.bf16.gmra.mxu0 %vm271_vm2, %v2338_v49  ;;  %2267 = vmatprep.mubr.msk.bf16.mxu1 %vm271_vm2, %v2106_v29  ;;  %v1567_v49 = vrot.slane %v1565_v41, 5  ;;  %v1581_v54 = vrot.slane %v1579_v46, 5  ;;  %v1587_v55 = vrot.slane %v1585_v47, 5  ;;  %v1590_v59 = vshrl.u32 %v1541_v48, 16  ;;  %v1545_v62 = vld [vmem:[%s2417_s27 + $0x28] sm:$0xf] }
  0x3f   : > { %2273 = vmatprep.mubr.msk.bf16.mxu0 %vm271_vm2, %v2339_v3  ;;  %v1158_v33 = vsel %vm2459_vm5, %v1153_v31, %v1157_v28  ;;  %v1593_v60 = vshll.u32 %v1541_v48, 16  ;;  %v1599_v61 = vshll.u32 %v1542_v50, 16  ;;  %v1604_v0 = vshrl.u32 %v1543_v51, 16  ;;  %v1546_v3 = vld [vmem:[%s2417_s27 + $0x2c] sm:$0x1] }
  0x40   : > { %v2107_v37 = vcombine.low %v1144_v30, %v1158_v33  ;;  %v1568_v57 = vor.u32 %v1567_v49, %v1564_v15  ;;  %v1582_v63 = vor.u32 %v1581_v54, %v1578_v53  ;;  %v1607_v1 = vshll.u32 %v1543_v51, 16  ;;  %v1547_v8 = vld [vmem:[%s2417_s27 + $0x30] sm:$0xf]  ;;  %v1551_v36 = vld [vmem:[%s2417_s27 + $0x40] sm:$0xf] }
  0x41   : > { %v1613_v2 = vshll.u32 %v1544_v39, 16  ;;  %v1592_v5 = vrot.slane %v1590_v59, 4  ;;  %v1595_v6 = vrot.slane %v1593_v60, 5  ;;  %v1601_v7 = vrot.slane %v1599_v61, 5  ;;  %v2345_v9 = vld [vmem:[%s2417_s27 + $0x70] ss:$8 sps:$4 sm:$0xff]  }
  0x42   : > { %v1569_v4 = vrot.slane %v1568_v57, 4  ;;  %v1583_v10 = vrot.slane %v1582_v63, 4  ;;  %v1606_v11 = vrot.slane %v1604_v0, 4  ;;  %v1609_v12 = vrot.slane %v1607_v1, 5  ;;  %v1552_v41 = vld [vmem:[%s2417_s27 + $0x44] sm:$0x1] }
  0x43   : > { %2268 = vmatmul.mubr.msk.bf16.gmra.mxu1 %vm271_vm2, %v2107_v37  ;;  %v1615_v13 = vrot.slane %v1613_v2, 5  ;;  %v1596_v16 = vor.u32 %v1595_v6, %v1592_v5  ;;  %v1618_v17 = vshrl.u32 %v1545_v62, 16  ;;  %v1621_v18 = vshll.u32 %v1545_v62, 16  ;;  %v2346_v43 = vld [vmem:[%s2417_s27 + $0x80] ss:$8 sps:$4 sm:$0xff]   ;;  %v244_v5 = vld [vmem:[#allocation2 + $0x10] sm:$0xff] }
  0x44   : > { %2283 = vmatprep.mubr.msk.bf16.mxu1 %vm271_vm2, %v2343_v34  ;;  %v1574_v14 = vsel %vm2459_vm5, %v1569_v4, %v1573_v52  ;;  %v1588_v19 = vsel %vm2459_vm5, %v1583_v10, %v1587_v55  ;;  %v1610_v20 = vor.u32 %v1609_v12, %v1606_v11  ;;  %v1627_v22 = vshll.u32 %v1546_v3, 16  ;;  %v248_v6 = vld [vmem:[#allocation2 + $0x30] sm:$0xff]  ;;  %v246_v11 = vld [vmem:[#allocation2 + $0x20] sm:$0xff] }
  0x45   : > { %v1632_v23 = vshrl.u32 %v1547_v8, 16  ;;  %v2139_v25 = vcombine.low %v1574_v14, %v1588_v19  ;;  %v1597_v27 = vrot.slane %v1596_v16, 4  ;;  %v1620_v28 = vrot.slane %v1618_v17, 4  ;;  %v245_v14 = vld [vmem:[#allocation2 + $0x18] sm:$0xff] }
  0x46   : > { %2274 = vmatmul.mubr.msk.bf16.vlgmr.msra.gmra.mxu0 %vm271_vm2, %v2340_v24  ;;  %v1549_v24 = vld [vmem:[%s2417_s27 + $0x38] sm:$0xf]  ;;  %v1623_v29 = vrot.slane %v1621_v18, 5  ;;  %v1635_v31 = vshll.u32 %v1547_v8, 16  ;;  %v1641_v35 = vshll.u32 %v1548_v21, 16  ;;  %v1629_v40 = vrot.slane %v1627_v22, 5 }
  0x47   : > { %2277 = vmatprep.mubr.msk.bf16.mxu0 %vm271_vm2, %v2341_v58  ;;  %2292 = vmatpush3.bf16.msra.mxu0 %v1700_v32  ;;  %v1611_v58 = vrot.slane %v1610_v20, 4  ;;  %v1634_v30 = vrot.slane %v1632_v23, 4  ;;  %v1550_v32 = vld [vmem:[%s2417_s27 + $0x3c] sm:$0x1]  ;;  %v1602_v33 = vsel %vm2459_vm5, %v1597_v27, %v1601_v7  ;;  %v1646_v37 = vshrl.u32 %v1549_v24, 16  ;;  %v242_v8 = vld [vmem:[#allocation2] sm:$0xff] }
  0x48   : > { %v1624_v34 = vor.u32 %v1623_v29, %v1620_v28  ;;  %v1637_v26 = vrot.slane %v1635_v31, 5  ;;  %v1655_v48 = vshll.u32 %v1550_v32, 16  ;;  %v1643_v49 = vrot.slane %v1641_v35, 5  ;;  %v249_v18 = vld [vmem:[#allocation2 + $0x38] sm:$0xff]  ;;  %v243_v20 = vld [vmem:[#allocation2 + $0x8] sm:$0xff] }
  0x49   : > { %v1616_v38 = vsel %vm2459_vm5, %v1611_v58, %v1615_v13  ;;  %v1648_v47 = vrot.slane %v1646_v37, 4  ;;  %v1660_v51 = vshrl.u32 %v1551_v36, 16  ;;  %v1663_v52 = vshll.u32 %v1551_v36, 16  ;;  %v247_v23 = vld [vmem:[#allocation2 + $0x28] sm:$0xff] }
  0x4a   : > { %v2140_v45 = vcombine.low %v1602_v33, %v1616_v38  ;;  %v1625_v46 = vrot.slane %v1624_v34, 4  ;;  %v1638_v15 = vor.u32 %v1637_v26, %v1634_v30  ;;  %v1669_v53 = vshll.u32 %v1552_v41, 16 }
  0x4b   : > { %2284 = vmatmul.mubr.msk.bf16.vlgmr.msra.gmra.mxu1 %vm271_vm2, %v2344_v56  ;;  %v1662_v56 = vrot.slane %v1660_v51, 4  ;;  %v1657_v57 = vrot.slane %v1655_v48, 5  ;;  %v1665_v59 = vrot.slane %v1663_v52, 5  ;;  %vm1823_vm6 = vcmask 60416  }
  0x4c   : > { %2287 = vmatprep.mubr.msk.bf16.mxu1 %vm271_vm2, %v2345_v9  ;;  %v1630_v54 = vsel %vm2459_vm5, %v1625_v46, %v1629_v40  ;;  %v1639_v55 = vrot.slane %v1638_v15, 4  ;;  %v1671_v0 = vrot.slane %v1669_v53, 5 }
  0x4d   : > { %v1666_v63 = vor.u32 %v1665_v59, %v1662_v56 }
  0x4e   : > { %2278 = vmatmul.mubr.msk.bf16.gmra.mxu0 %vm271_vm2, %v2342_v42  ;;  %v1649_v42 = vshll.u32 %v1549_v24, 16  ;;  %v1644_v60 = vsel %vm2459_vm5, %v1639_v55, %v1643_v49 }
  0x4f   : > { %2293 = vmatprep.mubr.msk.bf16.mxu0 %vm271_vm2, %v2139_v25  ;;  %v2141_v62 = vcombine.low %v1630_v54, %v1644_v60  ;;  %v1667_v2 = vrot.slane %v1666_v63, 4 }
  0x50   : > { %v1651_v50 = vrot.slane %v1649_v42, 5 }
  0x51   : > { %v1672_v3 = vsel %vm2459_vm5, %v1667_v2, %v1671_v0 }
  0x52   : > { %v1652_v39 = vor.u32 %v1651_v50, %v1648_v47 }
  0x53   : > { %2288 = vmatmul.mubr.msk.bf16.gmra.mxu1 %vm271_vm2, %v2346_v43 }
  0x54   : > { %v1653_v61 = vrot.slane %v1652_v39, 4 }
  0x56   : > { %2294 = vmatmul.mubr.msk.bf16.vlgmr.msra.gmra.mxu0 %vm271_vm2, %v2140_v45  ;;  %v1658_v1 = vsel %vm2459_vm5, %v1653_v61, %v1657_v57 }
  0x57   : > { %2297 = vmatprep.mubr.msk.bf16.mxu0 %vm271_vm2, %v2141_v62  ;;  %v2142_v4 = vcombine.low %v1658_v1, %v1672_v3 }
  0x5e   : > { %2298 = vmatmul.mubr.msk.bf16.gmra.mxu0 %vm271_vm2, %v2142_v4 }
  0xd2   : > { %v2215_v7 = vpop.f32.mrf.mxu0 }
  0xd3   : > { %v355_v9 = vadd.f32 %v2215_v7, %v244_v5  ;;  %v2219_v10 = vpop.f32.mrf.mxu1 }
  0xd4   : > { %v359_v12 = vadd.f32 %v2219_v10, %v248_v6  ;;  %v322_v13 = vpop.f32.mrf.mxu0 }
  0xd5   : > { %363 = vst.msk [vmem:[#allocation2 + $0x10] sm:$0xff] %vm225_vm1, %v355_v9  ;;  %v353_v16 = vadd.f32 %v322_v13, %v242_v8  ;;  %v338_v17 = vpop.f32.mrf.mxu1 }
  0xd6   : > { %367 = vst.msk [vmem:[#allocation2 + $0x30] sm:$0xff] %vm225_vm1, %v359_v12  ;;  %v357_v44 = vadd.f32 %v338_v17, %v246_v11  ;;  %v2216_v19 = vpop.f32.mrf.mxu0 }
  0xd7   : > { %361 = vst.msk [vmem:[#allocation2] sm:$0xff] %vm225_vm1, %v353_v16  ;;  %v356_v21 = vadd.f32 %v2216_v19, %v245_v14  ;;  %v2220_v22 = vpop.f32.mrf.mxu1 }
  0xd8   : > { %365 = vst.msk [vmem:[#allocation2 + $0x20] sm:$0xff] %vm225_vm1, %v357_v44  ;;  %v360_v24 = vadd.f32 %v2220_v22, %v249_v18  ;;  %v325_v25 = vpop.f32.mrf.mxu0 }
  0xd9   : > { %364 = vst.msk [vmem:[#allocation2 + $0x18] sm:$0xff] %vm225_vm1, %v356_v21  ;;  %v354_v27 = vadd.f32 %v325_v25, %v243_v20  ;;  %v341_v28 = vpop.f32.mrf.mxu1 }
  0xda   : > { %368 = vst.msk [vmem:[#allocation2 + $0x38] sm:$0xff] %vm225_vm1, %v360_v24  ;;  %v358_v29 = vadd.f32 %v341_v28, %v247_v23 }
  0xdb   : > { %362 = vst.msk [vmem:[#allocation2 + $0x8] sm:$0xff] %vm225_vm1, %v354_v27  ;;  %v2225_v58 = vpop.f32.mrf.mxu1 }
  0xdc   : > { %366 = vst.msk [vmem:[#allocation2 + $0x28] sm:$0xff] %vm225_vm1, %v358_v29  ;;  %v380_v30 = vld [vmem:[#allocation2 + $0x10] sm:$0xff] }
  0xdd   : > { %v490_v31 = vadd.f32 %v2225_v58, %v380_v30  ;;  %v457_v32 = vpop.f32.mrf.mxu1  ;;  %v384_v41 = vld [vmem:[#allocation2 + $0x30] sm:$0xff] }
  0xde   : > { %v378_v33 = vld [vmem:[#allocation2] sm:$0xff] }
  0xdf   : > { %498 = vst.msk [vmem:[#allocation2 + $0x10] sm:$0xff] %vm225_vm1, %v490_v31  ;;  %v488_v34 = vadd.f32 %v457_v32, %v378_v33  ;;  %v2226_v35 = vpop.f32.mrf.mxu1  ;;  %v382_v46 = vld [vmem:[#allocation2 + $0x20] sm:$0xff] }
  0xe0   : > { %v381_v36 = vld [vmem:[#allocation2 + $0x18] sm:$0xff] }
  0xe1   : > { %496 = vst.msk [vmem:[#allocation2] sm:$0xff] %vm225_vm1, %v488_v34  ;;  %v491_v37 = vadd.f32 %v2226_v35, %v381_v36  ;;  %v460_v38 = vpop.f32.mrf.mxu1  ;;  %v385_v51 = vld [vmem:[#allocation2 + $0x38] sm:$0xff] }
  0xe2   : > { %v379_v40 = vld [vmem:[#allocation2 + $0x8] sm:$0xff] }
  0xe3   : > { %499 = vst.msk [vmem:[#allocation2 + $0x18] sm:$0xff] %vm225_vm1, %v491_v37  ;;  %v489_v26 = vadd.f32 %v460_v38, %v379_v40  ;;  %v2229_v42 = vpop.f32.mrf.mxu1  ;;  %v2235_v43 = vpop.f32.mrf.mxu0  ;;  %v383_v56 = vld [vmem:[#allocation2 + $0x28] sm:$0xff] }
  0xe4   : > { %v494_v45 = vadd.f32 %v2229_v42, %v384_v41 }
  0xe5   : > { %497 = vst.msk [vmem:[#allocation2 + $0x8] sm:$0xff] %vm225_vm1, %v489_v26  ;;  %v473_v47 = vpop.f32.mrf.mxu1  ;;  %v706_v15 = vpop.f32.mrf.mxu0 }
  0xe6   : > { %v522_v48 = vld [vmem:[#allocation2 + $0x10] sm:$0xff]  ;;  %502 = vst.msk [vmem:[#allocation2 + $0x30] sm:$0xff] %vm225_vm1, %v494_v45  ;;  %v492_v49 = vadd.f32 %v473_v47, %v382_v46 }
  0xe7   : > { %v739_v50 = vadd.f32 %v2235_v43, %v522_v48  ;;  %v2230_v52 = vpop.f32.mrf.mxu1  ;;  %v2236_v54 = vpop.f32.mrf.mxu0 }
  0xe8   : > { %v520_v53 = vld [vmem:[#allocation2] sm:$0xff]  ;;  %500 = vst.msk [vmem:[#allocation2 + $0x20] sm:$0xff] %vm225_vm1, %v492_v49  ;;  %v495_v55 = vadd.f32 %v2230_v52, %v385_v51 }
  0xe9   : > { %747 = vst.msk [vmem:[#allocation2 + $0x10] sm:$0xff] %vm225_vm1, %v739_v50  ;;  %v737_v39 = vadd.f32 %v706_v15, %v520_v53  ;;  %v476_v57 = vpop.f32.mrf.mxu1  ;;  %v709_v62 = vpop.f32.mrf.mxu0 }
  0xea   : > { %v523_v59 = vld [vmem:[#allocation2 + $0x18] sm:$0xff]  ;;  %503 = vst.msk [vmem:[#allocation2 + $0x38] sm:$0xff] %vm225_vm1, %v495_v55  ;;  %v493_v60 = vadd.f32 %v476_v57, %v383_v56 }
  0xeb   : > { %745 = vst.msk [vmem:[#allocation2] sm:$0xff] %vm225_vm1, %v737_v39  ;;  %v740_v61 = vadd.f32 %v2236_v54, %v523_v59  ;;  %v2245_v63 = vpop.f32.mrf.mxu1 }
  0xec   : > { %v521_v0 = vld [vmem:[#allocation2 + $0x8] sm:$0xff]  ;;  %501 = vst.msk [vmem:[#allocation2 + $0x28] sm:$0xff] %vm225_vm1, %v493_v60 }
  0xed   : > { %748 = vst.msk [vmem:[#allocation2 + $0x18] sm:$0xff] %vm225_vm1, %v740_v61  ;;  %v738_v1 = vadd.f32 %v709_v62, %v521_v0  ;;  %v526_v2 = vld [vmem:[#allocation2 + $0x30] sm:$0xff]  ;;  %v841_v3 = vpop.f32.mrf.mxu1 }
  0xee   : > { %v2239_v4 = vpop.f32.mrf.mxu0 }
  0xef   : > { %746 = vst.msk [vmem:[#allocation2 + $0x8] sm:$0xff] %vm225_vm1, %v738_v1  ;;  %v524_v5 = vld [vmem:[#allocation2 + $0x20] sm:$0xff]  ;;  %v2246_v6 = vpop.f32.mrf.mxu1  ;;  %v743_v7 = vadd.f32 %v2239_v4, %v526_v2 }
  0xf0   : > { %v764_v8 = vld [vmem:[#allocation2 + $0x10] sm:$0xff]  ;;  %v722_v9 = vpop.f32.mrf.mxu0 }
  0xf1   : > { %v874_v10 = vadd.f32 %v2245_v63, %v764_v8  ;;  %v527_v11 = vld [vmem:[#allocation2 + $0x38] sm:$0xff]  ;;  %v844_v12 = vpop.f32.mrf.mxu1  ;;  %751 = vst.msk [vmem:[#allocation2 + $0x30] sm:$0xff] %vm225_vm1, %v743_v7  ;;  %v741_v13 = vadd.f32 %v722_v9, %v524_v5 }
  0xf2   : > { %v762_v14 = vld [vmem:[#allocation2] sm:$0xff]  ;;  %v2240_v16 = vpop.f32.mrf.mxu0 }
  0xf3   : > { %882 = vst.msk [vmem:[#allocation2 + $0x10] sm:$0xff] %vm225_vm1, %v874_v10  ;;  %v872_v17 = vadd.f32 %v841_v3, %v762_v14  ;;  %v525_v18 = vld [vmem:[#allocation2 + $0x28] sm:$0xff]  ;;  %v2249_v44 = vpop.f32.mrf.mxu1  ;;  %749 = vst.msk [vmem:[#allocation2 + $0x20] sm:$0xff] %vm225_vm1, %v741_v13  ;;  %v744_v19 = vadd.f32 %v2240_v16, %v527_v11 }
  0xf4   : > { %v765_v20 = vld [vmem:[#allocation2 + $0x18] sm:$0xff]  ;;  %v725_v21 = vpop.f32.mrf.mxu0 }
  0xf5   : > { %880 = vst.msk [vmem:[#allocation2] sm:$0xff] %vm225_vm1, %v872_v17  ;;  %v875_v22 = vadd.f32 %v2246_v6, %v765_v20  ;;  %v857_v23 = vpop.f32.mrf.mxu1  ;;  %752 = vst.msk [vmem:[#allocation2 + $0x38] sm:$0xff] %vm225_vm1, %v744_v19  ;;  %v742_v24 = vadd.f32 %v725_v21, %v525_v18 }
  0xf6   : > { %v763_v25 = vld [vmem:[#allocation2 + $0x8] sm:$0xff]  ;;  %v2255_v28 = vpop.f32.mrf.mxu0 }
  0xf7   : > { %883 = vst.msk [vmem:[#allocation2 + $0x18] sm:$0xff] %vm225_vm1, %v875_v22  ;;  %v873_v27 = vadd.f32 %v844_v12, %v763_v25  ;;  %750 = vst.msk [vmem:[#allocation2 + $0x28] sm:$0xff] %vm225_vm1, %v742_v24  ;;  %v2250_v58 = vpop.f32.mrf.mxu1 }
  0xf8   : > { %v768_v29 = vld [vmem:[#allocation2 + $0x30] sm:$0xff]  ;;  %v976_v30 = vpop.f32.mrf.mxu0 }
  0xf9   : > { %881 = vst.msk [vmem:[#allocation2 + $0x8] sm:$0xff] %vm225_vm1, %v873_v27  ;;  %v878_v31 = vadd.f32 %v2249_v44, %v768_v29  ;;  %v860_v26 = vpop.f32.mrf.mxu1 }
  0xfa   : > { %v899_v32 = vld [vmem:[#allocation2 + $0x10] sm:$0xff]  ;;  %v766_v33 = vld [vmem:[#allocation2 + $0x20] sm:$0xff]  ;;  %v2256_v35 = vpop.f32.mrf.mxu0 }
  0xfb   : > { %v1009_v34 = vadd.f32 %v2255_v28, %v899_v32  ;;  %886 = vst.msk [vmem:[#allocation2 + $0x30] sm:$0xff] %vm225_vm1, %v878_v31  ;;  %v876_v36 = vadd.f32 %v857_v23, %v766_v33  ;;  %v2265_v48 = vpop.f32.mrf.mxu1 }
  0xfc   : > { %v897_v37 = vld [vmem:[#allocation2] sm:$0xff]  ;;  %v769_v38 = vld [vmem:[#allocation2 + $0x38] sm:$0xff]  ;;  %v979_v41 = vpop.f32.mrf.mxu0 }
  0xfd   : > { %1017 = vst.msk [vmem:[#allocation2 + $0x10] sm:$0xff] %vm225_vm1, %v1009_v34  ;;  %v1007_v40 = vadd.f32 %v976_v30, %v897_v37  ;;  %884 = vst.msk [vmem:[#allocation2 + $0x20] sm:$0xff] %vm225_vm1, %v876_v36  ;;  %v879_v42 = vadd.f32 %v2250_v58, %v769_v38  ;;  %v1222_v52 = vpop.f32.mrf.mxu1 }
  0xfe   : > { %v900_v43 = vld [vmem:[#allocation2 + $0x18] sm:$0xff]  ;;  %v767_v45 = vld [vmem:[#allocation2 + $0x28] sm:$0xff]  ;;  %v2259_v47 = vpop.f32.mrf.mxu0 }
  0xff   : > { %1015 = vst.msk [vmem:[#allocation2] sm:$0xff] %vm225_vm1, %v1007_v40  ;;  %v1010_v46 = vadd.f32 %v2256_v35, %v900_v43  ;;  %887 = vst.msk [vmem:[#allocation2 + $0x38] sm:$0xff] %vm225_vm1, %v879_v42  ;;  %v877_v15 = vadd.f32 %v860_v26, %v767_v45  ;;  %v2266_v55 = vpop.f32.mrf.mxu1 }
 0x100   : > { %v898_v49 = vld [vmem:[#allocation2 + $0x8] sm:$0xff]  ;;  %v992_v51 = vpop.f32.mrf.mxu0 }
 0x101   : > { %1018 = vst.msk [vmem:[#allocation2 + $0x18] sm:$0xff] %vm225_vm1, %v1010_v46  ;;  %v1008_v50 = vadd.f32 %v979_v41, %v898_v49  ;;  %885 = vst.msk [vmem:[#allocation2 + $0x28] sm:$0xff] %vm225_vm1, %v877_v15  ;;  %v1225_v63 = vpop.f32.mrf.mxu1 }
 0x102   : > { %v903_v53 = vld [vmem:[#allocation2 + $0x30] sm:$0xff]  ;;  %v2260_v54 = vpop.f32.mrf.mxu0 }
 0x103   : > { %1016 = vst.msk [vmem:[#allocation2 + $0x8] sm:$0xff] %vm225_vm1, %v1008_v50  ;;  %v1013_v39 = vadd.f32 %v2259_v47, %v903_v53  ;;  %v2269_v10 = vpop.f32.mrf.mxu1 }
 0x104   : > { %v1041_v56 = vld [vmem:[#allocation2 + $0x10] sm:$0xff]  ;;  %v901_v57 = vld [vmem:[#allocation2 + $0x20] sm:$0xff]  ;;  %v995_v60 = vpop.f32.mrf.mxu0 }
 0x105   : > { %v1255_v59 = vadd.f32 %v2265_v48, %v1041_v56  ;;  %1021 = vst.msk [vmem:[#allocation2 + $0x30] sm:$0xff] %vm225_vm1, %v1013_v39  ;;  %v1011_v61 = vadd.f32 %v992_v51, %v901_v57  ;;  %v1238_v13 = vpop.f32.mrf.mxu1 }
 0x106   : > { %v1039_v62 = vld [vmem:[#allocation2] sm:$0xff]  ;;  %v904_v0 = vld [vmem:[#allocation2 + $0x38] sm:$0xff]  ;;  %v2275_v2 = vpop.f32.mrf.mxu0 }
 0x107   : > { %1263 = vst.msk [vmem:[#allocation2 + $0x10] sm:$0xff] %vm225_vm1, %v1255_v59  ;;  %v1253_v1 = vadd.f32 %v1222_v52, %v1039_v62  ;;  %1019 = vst.msk [vmem:[#allocation2 + $0x20] sm:$0xff] %vm225_vm1, %v1011_v61  ;;  %v1014_v3 = vadd.f32 %v2260_v54, %v904_v0  ;;  %v2270_v44 = vpop.f32.mrf.mxu1 }
 0x108   : > { %v1042_v4 = vld [vmem:[#allocation2 + $0x18] sm:$0xff]  ;;  %v902_v5 = vld [vmem:[#allocation2 + $0x28] sm:$0xff]  ;;  %v1356_v7 = vpop.f32.mrf.mxu0 }
 0x109   : > { %1261 = vst.msk [vmem:[#allocation2] sm:$0xff] %vm225_vm1, %v1253_v1  ;;  %v1256_v6 = vadd.f32 %v2266_v55, %v1042_v4  ;;  %1022 = vst.msk [vmem:[#allocation2 + $0x38] sm:$0xff] %vm225_vm1, %v1014_v3  ;;  %v1012_v8 = vadd.f32 %v995_v60, %v902_v5  ;;  %v1241_v24 = vpop.f32.mrf.mxu1 }
 0x10a   : > { %v1040_v9 = vld [vmem:[#allocation2 + $0x8] sm:$0xff]  ;;  %v2276_v12 = vpop.f32.mrf.mxu0 }
 0x10b   : > { %1264 = vst.msk [vmem:[#allocation2 + $0x18] sm:$0xff] %vm225_vm1, %v1256_v6  ;;  %v1254_v11 = vadd.f32 %v1225_v63, %v1040_v9  ;;  %1020 = vst.msk [vmem:[#allocation2 + $0x28] sm:$0xff] %vm225_vm1, %v1012_v8  ;;  %v2285_v30 = vpop.f32.mrf.mxu1 }
 0x10c   : > { %v1045_v14 = vld [vmem:[#allocation2 + $0x30] sm:$0xff]  ;;  %v1359_v16 = vpop.f32.mrf.mxu0 }
 0x10d   : > { %1262 = vst.msk [vmem:[#allocation2 + $0x8] sm:$0xff] %vm225_vm1, %v1254_v11  ;;  %v1259_v17 = vadd.f32 %v2269_v10, %v1045_v14  ;;  %v1490_v36 = vpop.f32.mrf.mxu1 }
 0x10e   : > { %v1279_v18 = vld [vmem:[#allocation2 + $0x10] sm:$0xff]  ;;  %v1043_v19 = vld [vmem:[#allocation2 + $0x20] sm:$0xff]  ;;  %v2279_v21 = vpop.f32.mrf.mxu0 }
 0x10f   : > { %v1389_v20 = vadd.f32 %v2275_v2, %v1279_v18  ;;  %1267 = vst.msk [vmem:[#allocation2 + $0x30] sm:$0xff] %vm225_vm1, %v1259_v17  ;;  %v1257_v22 = vadd.f32 %v1238_v13, %v1043_v19  ;;  %v2286_v40 = vpop.f32.mrf.mxu1 }
 0x110   : > { %v1277_v23 = vld [vmem:[#allocation2] sm:$0xff]  ;;  %v1046_v25 = vld [vmem:[#allocation2 + $0x38] sm:$0xff]  ;;  %v1372_v28 = vpop.f32.mrf.mxu0 }
 0x111   : > { %1397 = vst.msk [vmem:[#allocation2 + $0x10] sm:$0xff] %vm225_vm1, %v1389_v20  ;;  %v1387_v27 = vadd.f32 %v1356_v7, %v1277_v23  ;;  %1265 = vst.msk [vmem:[#allocation2 + $0x20] sm:$0xff] %vm225_vm1, %v1257_v22  ;;  %v1260_v29 = vadd.f32 %v2270_v44, %v1046_v25  ;;  %v1493_v43 = vpop.f32.mrf.mxu1 }
 0x112   : > { %v1280_v58 = vld [vmem:[#allocation2 + $0x18] sm:$0xff]  ;;  %v1044_v31 = vld [vmem:[#allocation2 + $0x28] sm:$0xff]  ;;  %v2280_v33 = vpop.f32.mrf.mxu0 }
 0x113   : > { %1395 = vst.msk [vmem:[#allocation2] sm:$0xff] %vm225_vm1, %v1387_v27  ;;  %v1390_v32 = vadd.f32 %v2276_v12, %v1280_v58  ;;  %1268 = vst.msk [vmem:[#allocation2 + $0x38] sm:$0xff] %vm225_vm1, %v1260_v29  ;;  %v1258_v34 = vadd.f32 %v1241_v24, %v1044_v31  ;;  %v2289_v52 = vpop.f32.mrf.mxu1 }
 0x114   : > { %v1278_v35 = vld [vmem:[#allocation2 + $0x8] sm:$0xff]  ;;  %v1375_v38 = vpop.f32.mrf.mxu0 }
 0x115   : > { %1398 = vst.msk [vmem:[#allocation2 + $0x18] sm:$0xff] %vm225_vm1, %v1390_v32  ;;  %v1388_v37 = vadd.f32 %v1359_v16, %v1278_v35  ;;  %1266 = vst.msk [vmem:[#allocation2 + $0x28] sm:$0xff] %vm225_vm1, %v1258_v34  ;;  %v1506_v61 = vpop.f32.mrf.mxu1 }
 0x116   : > { %v1283_v26 = vld [vmem:[#allocation2 + $0x30] sm:$0xff]  ;;  %v2295_v45 = vpop.f32.mrf.mxu0 }
 0x117   : > { %1396 = vst.msk [vmem:[#allocation2 + $0x8] sm:$0xff] %vm225_vm1, %v1388_v37  ;;  %v1393_v41 = vadd.f32 %v2279_v21, %v1283_v26  ;;  %v2290_v4 = vpop.f32.mrf.mxu1 }
 0x118   : > { %v1413_v42 = vld [vmem:[#allocation2 + $0x10] sm:$0xff]  ;;  %v1281_v46 = vld [vmem:[#allocation2 + $0x20] sm:$0xff]  ;;  %v1736_v49 = vpop.f32.mrf.mxu0 }
 0x119   : > { %v1523_v47 = vadd.f32 %v2285_v30, %v1413_v42  ;;  %1401 = vst.msk [vmem:[#allocation2 + $0x30] sm:$0xff] %vm225_vm1, %v1393_v41  ;;  %v1391_v48 = vadd.f32 %v1372_v28, %v1281_v46  ;;  %v1509_v13 = vpop.f32.mrf.mxu1 }
 0x11a   : > { %v1411_v15 = vld [vmem:[#allocation2] sm:$0xff]  ;;  %v1284_v50 = vld [vmem:[#allocation2 + $0x38] sm:$0xff]  ;;  %v2296_v56 = vpop.f32.mrf.mxu0 }
 0x11b   : > { %1531 = vst.msk [vmem:[#allocation2 + $0x10] sm:$0xff] %vm225_vm1, %v1523_v47  ;;  %v1521_v51 = vadd.f32 %v1490_v36, %v1411_v15  ;;  %1399 = vst.msk [vmem:[#allocation2 + $0x20] sm:$0xff] %vm225_vm1, %v1391_v48  ;;  %v1394_v53 = vadd.f32 %v2280_v33, %v1284_v50 }
 0x11c   : > { %v1414_v54 = vld [vmem:[#allocation2 + $0x18] sm:$0xff]  ;;  %v1282_v55 = vld [vmem:[#allocation2 + $0x28] sm:$0xff]  ;;  %v1739_v63 = vpop.f32.mrf.mxu0 }
 0x11d   : > { %1529 = vst.msk [vmem:[#allocation2] sm:$0xff] %vm225_vm1, %v1521_v51  ;;  %v1524_v39 = vadd.f32 %v2286_v40, %v1414_v54  ;;  %1402 = vst.msk [vmem:[#allocation2 + $0x38] sm:$0xff] %vm225_vm1, %v1394_v53  ;;  %v1392_v57 = vadd.f32 %v1375_v38, %v1282_v55 }
 0x11e   : > { %v1412_v59 = vld [vmem:[#allocation2 + $0x8] sm:$0xff]  ;;  %v2299_v9 = vpop.f32.mrf.mxu0 }
 0x11f   : > { %1532 = vst.msk [vmem:[#allocation2 + $0x18] sm:$0xff] %vm225_vm1, %v1524_v39  ;;  %v1522_v60 = vadd.f32 %v1493_v43, %v1412_v59  ;;  %1400 = vst.msk [vmem:[#allocation2 + $0x28] sm:$0xff] %vm225_vm1, %v1392_v57 }
 0x120   : > { %v1417_v62 = vld [vmem:[#allocation2 + $0x30] sm:$0xff]  ;;  %v1752_v44 = vpop.f32.mrf.mxu0 }
 0x121   : > { %1530 = vst.msk [vmem:[#allocation2 + $0x8] sm:$0xff] %vm225_vm1, %v1522_v60  ;;  %v1527_v0 = vadd.f32 %v2289_v52, %v1417_v62 }
 0x122   : > { %v1555_v1 = vld [vmem:[#allocation2 + $0x10] sm:$0xff]  ;;  %v1415_v2 = vld [vmem:[#allocation2 + $0x20] sm:$0xff]  ;;  %v2300_v24 = vpop.f32.mrf.mxu0 }
 0x123   : > { %v1769_v3 = vadd.f32 %v2295_v45, %v1555_v1  ;;  %1535 = vst.msk [vmem:[#allocation2 + $0x30] sm:$0xff] %vm225_vm1, %v1527_v0  ;;  %v1525_v5 = vadd.f32 %v1506_v61, %v1415_v2 }
 0x124   : > { %v1553_v6 = vld [vmem:[#allocation2] sm:$0xff]  ;;  %v1418_v7 = vld [vmem:[#allocation2 + $0x38] sm:$0xff]  ;;  %v1755_v34 = vpop.f32.mrf.mxu0 }
 0x125   : > { %1777 = vst.msk [vmem:[#allocation2 + $0x10] sm:$0xff] %vm225_vm1, %v1769_v3  ;;  %v1767_v8 = vadd.f32 %v1736_v49, %v1553_v6  ;;  %1533 = vst.msk [vmem:[#allocation2 + $0x20] sm:$0xff] %vm225_vm1, %v1525_v5  ;;  %v1528_v10 = vadd.f32 %v2290_v4, %v1418_v7 }
 0x126   : > { %v1556_v11 = vld [vmem:[#allocation2 + $0x18] sm:$0xff]  ;;  %v1416_v12 = vld [vmem:[#allocation2 + $0x28] sm:$0xff] }
 0x127   : > { %1775 = vst.msk [vmem:[#allocation2] sm:$0xff] %vm225_vm1, %v1767_v8  ;;  %v1770_v14 = vadd.f32 %v2296_v56, %v1556_v11  ;;  %1536 = vst.msk [vmem:[#allocation2 + $0x38] sm:$0xff] %vm225_vm1, %v1528_v10  ;;  %v1526_v16 = vadd.f32 %v1509_v13, %v1416_v12 }
 0x128   : > { %v1554_v17 = vld [vmem:[#allocation2 + $0x8] sm:$0xff] }
 0x129   : > { %1778 = vst.msk [vmem:[#allocation2 + $0x18] sm:$0xff] %vm225_vm1, %v1770_v14  ;;  %v1768_v18 = vadd.f32 %v1739_v63, %v1554_v17  ;;  %1534 = vst.msk [vmem:[#allocation2 + $0x28] sm:$0xff] %vm225_vm1, %v1526_v16 }
 0x12a   : > { %v1559_v19 = vld [vmem:[#allocation2 + $0x30] sm:$0xff] }
 0x12b   : > { %1776 = vst.msk [vmem:[#allocation2 + $0x8] sm:$0xff] %vm225_vm1, %v1768_v18  ;;  %v1773_v21 = vadd.f32 %v2299_v9, %v1559_v19 }
 0x12c   : > { %v1785_v20 = vld [vmem:[#allocation2 + $0x10] sm:$0xff]  ;;  %v1557_v23 = vld [vmem:[#allocation2 + $0x20] sm:$0xff] }
 0x12d   : > { %v2160_v22 = vpack.c.bf16 %v1785_v20, %v1785_v20  ;;  %1781 = vst.msk [vmem:[#allocation2 + $0x30] sm:$0xff] %vm225_vm1, %v1773_v21  ;;  %v1771_v27 = vadd.f32 %v1752_v44, %v1557_v23  ;;  %v1862_v35 = vmul.f32 %v1785_v20, %v1785_v20  ;;  %v1838_v43 = vsel %vm225_vm1, %v1785_v20, 0.0 }
 0x12e   : > { %v1783_v25 = vld [vmem:[#allocation2] sm:$0xff]  ;;  %v1560_v29 = vld [vmem:[#allocation2 + $0x38] sm:$0xff]  ;;  %v1832_v20 = vlaneseq }
 0x12f   : > { %1826 = vst.msk [vmem:[%s2703_s19 + $0x8] sm:$0xf] %vm1823_vm6, %v2160_v22  ;;  %v2158_v28 = vpack.c.bf16 %v1783_v25, %v1783_v25  ;;  %v1774_v30 = vadd.f32 %v2300_v24, %v1560_v29  ;;  %v1860_v31 = vmul.f32 %v1783_v25, %v1783_v25  ;;  %v1835_v38 = vsel %vm225_vm1, %v1783_v25, 0.0 }
 0x130   : > { %v1786_v58 = vld [vmem:[#allocation2 + $0x18] sm:$0xff]  ;;  %1779 = vst.msk [vmem:[#allocation2 + $0x20] sm:$0xff] %vm225_vm1, %v1771_v27  ;;  %v1558_v33 = vld [vmem:[#allocation2 + $0x28] sm:$0xff]  ;;  %v1871_v51 = vsel %vm225_vm1, %v1862_v35, 0.0  ;;  %v1833_v25 = vshrl.u32 %v1832_v20, 7 }
 0x131   : > { %1824 = vst.msk [vmem:[%s2703_s19] sm:$0xf] %vm1823_vm6, %v2158_v28  ;;  %v2161_v32 = vpack.c.bf16 %v1786_v58, %v1786_v58  ;;  %v1772_v37 = vadd.f32 %v1755_v34, %v1558_v33  ;;  %v1868_v45 = vsel %vm225_vm1, %v1860_v31, 0.0  ;;  %v1863_v46 = vmul.f32 %v1786_v58, %v1786_v58 }
 0x132   : > { %v1784_v36 = vld [vmem:[#allocation2 + $0x8] sm:$0xff]  ;;  %1782 = vst.msk [vmem:[#allocation2 + $0x38] sm:$0xff] %vm225_vm1, %v1774_v30  ;;  %v1840_v52 = vsel %vm225_vm1, %v1786_v58, 0.0  ;;  %vm1834_vm7 = vcmp.eq.s32.totalorder %v1833_v25, 0 }
 0x133   : > { %1827 = vst.msk [vmem:[%s2703_s19 + $0xc] sm:$0xf] %vm1823_vm6, %v2161_v32  ;;  %v2159_v40 = vpack.c.bf16 %v1784_v36, %v1784_v36  ;;  %v1836_v26 = vsel %vm225_vm1, %v1784_v36, 0.0  ;;  %v1861_v41 = vmul.f32 %v1784_v36, %v1784_v36  ;;  %v1873_v56 = vsel %vm225_vm1, %v1863_v46, 0.0 }
 0x134   : > { %v1837_v42 = vadd.f32 %v1836_v26, %v1835_v38  ;;  %1780 = vst.msk [vmem:[#allocation2 + $0x28] sm:$0xff] %vm225_vm1, %v1772_v37  ;;  %v1789_v48 = vld [vmem:[#allocation2 + $0x30] sm:$0xff] }
 0x135   : > { %1825 = vst.msk [vmem:[%s2703_s19 + $0x4] sm:$0xf] %vm1823_vm6, %v2159_v40  ;;  %v1869_v47 = vsel %vm225_vm1, %v1861_v41, 0.0  ;;  %v2164_v50 = vpack.c.bf16 %v1789_v48, %v1789_v48  ;;  %v1866_v0 = vmul.f32 %v1789_v48, %v1789_v48  ;;  %v1846_v8 = vsel %vm225_vm1, %v1789_v48, 0.0 }
 0x136   : > { %v1839_v15 = vadd.f32 %v1838_v43, %v1837_v42  ;;  %v1870_v49 = vadd.f32 %v1869_v47, %v1868_v45 }
 0x137   : > { %v1787_v53 = vld [vmem:[#allocation2 + $0x20] sm:$0xff]  ;;  %1830 = vst.msk [vmem:[%s2703_s19 + $0x18] sm:$0xf] %vm1823_vm6, %v2164_v50  ;;  %v1879_v13 = vsel %vm225_vm1, %v1866_v0, 0.0 }
 0x138   : > { %v1872_v54 = vadd.f32 %v1871_v51, %v1870_v49  ;;  %v2162_v55 = vpack.c.bf16 %v1787_v53, %v1787_v53  ;;  %v1841_v39 = vadd.f32 %v1840_v52, %v1839_v15  ;;  %v1842_v57 = vsel %vm225_vm1, %v1787_v53, 0.0 }
 0x139   : > { %v1864_v59 = vmul.f32 %v1787_v53, %v1787_v53  ;;  %v1790_v60 = vld [vmem:[#allocation2 + $0x38] sm:$0xff] }
 0x13a   : > { %1828 = vst.msk [vmem:[%s2703_s19 + $0x10] sm:$0xf] %vm1823_vm6, %v2162_v55  ;;  %v1843_v61 = vadd.f32 %v1842_v57, %v1841_v39  ;;  %v1874_v62 = vadd.f32 %v1873_v56, %v1872_v54  ;;  %v2165_v63 = vpack.c.bf16 %v1790_v60, %v1790_v60  ;;  %v1867_v9 = vmul.f32 %v1790_v60, %v1790_v60 }
 0x13b   : > { %v1875_v1 = vsel %vm225_vm1, %v1864_v59, 0.0  ;;  %v1788_v2 = vld [vmem:[#allocation2 + $0x28] sm:$0xff]  ;;  %v1848_v14 = vsel %vm225_vm1, %v1790_v60, 0.0 }
 0x13c   : > { %v1876_v3 = vadd.f32 %v1875_v1, %v1874_v62  ;;  %1831 = vst.msk [vmem:[%s2703_s19 + $0x1c] sm:$0xf] %vm1823_vm6, %v2165_v63  ;;  %v2163_v4 = vpack.c.bf16 %v1788_v2, %v1788_v2  ;;  %v1844_v5 = vsel %vm225_vm1, %v1788_v2, 0.0  ;;  %v1865_v6 = vmul.f32 %v1788_v2, %v1788_v2 }
 0x13d   : > { %v1845_v7 = vadd.f32 %v1844_v5, %v1843_v61  ;;  %v1881_v18 = vsel %vm225_vm1, %v1867_v9, 0.0 }
 0x13e   : > { %1829 = vst.msk [vmem:[%s2703_s19 + $0x14] sm:$0xf] %vm1823_vm6, %v2163_v4  ;;  %v1877_v10 = vsel %vm225_vm1, %v1865_v6, 0.0 }
 0x13f   : > { %v1847_v11 = vadd.f32 %v1846_v8, %v1845_v7  ;;  %v1878_v12 = vadd.f32 %v1877_v10, %v1876_v3 }
 0x141   : > { %v1849_v16 = vadd.f32 %v1848_v14, %v1847_v11  ;;  %v1880_v17 = vadd.f32 %v1879_v13, %v1878_v12 }
 0x143   : > { %v1850_v44 = vrot.slane %v1849_v16, 4  ;;  %v1882_v19 = vadd.f32 %v1881_v18, %v1880_v17 }
 0x145   : > { %v1851_v21 = vadd.f32 %v1850_v44, %v1849_v16  ;;  %v1883_v22 = vrot.slane %v1882_v19, 4 }
 0x147   : > { %v1852_v23 = vrot.slane %v1851_v21, 2  ;;  %v1884_v24 = vadd.f32 %v1883_v22, %v1882_v19 }
 0x149   : > { %v1853_v27 = vadd.f32 %v1852_v23, %v1851_v21  ;;  %v1885_v28 = vrot.slane %v1884_v24, 2 }
 0x14b   : > { %v1854_v29 = vrot.slane %v1853_v27, 1  ;;  %v1886_v58 = vadd.f32 %v1885_v28, %v1884_v24 }
 0x14d   : > { %v1855_v30 = vadd.f32 %v1854_v29, %v1853_v27  ;;  %v1887_v31 = vrot.slane %v1886_v58, 1 }
 0x14f   : > { %v1858_v32 = vsel %vm1834_vm7, %v1855_v30, 0.0  ;;  %v1888_v33 = vadd.f32 %v1887_v31, %v1886_v58 }
 0x150   : > { %1859 = vst.msk [vmem:[%s219_s23] sm:$0xff] %vm225_vm1, %v1858_v32 }
 0x151   : > { %v1889_v34 = vsel %vm1834_vm7, %v1888_v33, 0.0 }
 0x152   : > { %1890 = vst.msk [vmem:[%s223_s26] sm:$0xff] %vm225_vm1, %v1889_v34 }
 0x153 PF: > { %s15_s15 = sadd.s32 1, %s2353_s15  }
 0x154   : > { %p12_p5 = scmp.ge.s32.totalorder %s15_s15, 4  }
 0x156   :  { %14 = sbr.rel (!%p12_p5) target bundleno = 1 (0x1), region = 93 }

</bundles_post_ra>
